<compile_context>
chip_gen: v6e
topology: v6e:2x2x1
jax: 0.10.0
libtpu: 0.0.40
codegen_flags: <defaults>
</compile_context>

<pallas_src>
import functools

import jax
import jax.numpy as jnp
from jax.experimental import pallas as pl
from jax.experimental.pallas import tpu as pltpu

LANE = 128
_VMEM_LIMIT = 48 * 1024 * 1024  # conservative scoped-VMEM budget (< v7x 64 MiB physical)


# --------------------------------------------------------------------------- helpers
def _round_up(x, m):
    return (x + m - 1) // m * m


def _pad_axis(x, target, axis=-1):
    pad = target - x.shape[axis]
    if pad == 0:
        return x
    widths = [(0, 0)] * x.ndim
    widths[axis] = (0, pad)
    return jnp.pad(x, widths)


def _pick_row_tile(h, requested=None):
    if requested is not None and h % requested == 0:
        return requested
    for cand in (64, 32, 16, 8):
        if h % cand == 0:
            return cand
    return h


# --------------------------------------------------------------------------- kernels
def _pw_conv_kernel(x_ref, a_ref, b_ref, w_ref, y_ref, s_ref, *, in_act, compute_dtype):
    """1x1 conv tile: fused input BN-affine (+ReLU6) of the previous stage, single MXU
    dot with contraction = padded channels, and per-channel sum / sum-of-squares of the
    raw f32 output (partial BN stats)."""
    rows, width, cin = x_ref.shape[1], x_ref.shape[2], x_ref.shape[3]
    cout = w_ref.shape[1]
    x = x_ref[0].reshape(rows * width, cin).astype(jnp.float32)
    x = x * a_ref[0] + b_ref[0]              # previous stage's BN (identity on stage 1)
    if in_act:
        x = jnp.clip(x, 0.0, 6.0)            # previous stage's ReLU6
    acc = jnp.dot(x.astype(compute_dtype), w_ref[...],
                  preferred_element_type=jnp.float32)          # (rows*width, cout) f32
    y_ref[0] = acc.reshape(rows, width, cout).astype(y_ref.dtype)
    s_ref[0, 0:1, :] = jnp.sum(acc, axis=0, keepdims=True)
    s_ref[0, 1:2, :] = jnp.sum(acc * acc, axis=0, keepdims=True)


def _dw_conv_kernel(x_ref, a_ref, b_ref, w_ref, y_ref, s_ref, pad_ref, acc_ref, *,
                    K, stride, padding, out_h, out_w, in_act):
    """Depthwise KxK conv for one batch element: fused input BN-affine + ReLU6,
    in-kernel spatial zero padding (VMEM scratch), K*K per-channel VPU multiply-adds,
    and per-channel partial BN stats of the raw f32 output."""
    h_in, w_in = x_ref.shape[1], x_ref.shape[2]
    act = x_ref[0].astype(jnp.float32) * a_ref[0] + b_ref[0]
    if in_act:
        act = jnp.clip(act, 0.0, 6.0)
    # Zero padding done inside the kernel (no jnp.pad pass over the activations in XLA).
    pad_ref[...] = jnp.zeros_like(pad_ref)
    pad_ref[pl.ds(padding, h_in), pl.ds(padding, w_in), :] = act

    taps = w_ref[...]                                             # (K*K, C) f32
    acc_ref[...] = jnp.zeros_like(acc_ref)
    for kh in range(K):                                           # static unrolled taps
        for kw in range(K):
            if stride == 1:
                win = pad_ref[pl.ds(kh, out_h), pl.ds(kw, out_w), :]
            else:
                # TODO(synk): for stride>1 at very large spatial dims, consider
                # computing the stride-1 result and subsampling once at the end.
                win = pad_ref[pl.ds(kh, out_h, stride), pl.ds(kw, out_w, stride), :]
            acc_ref[...] += win * taps[kh * K + kw]

    res = acc_ref[...]
    y_ref[0] = res.astype(y_ref.dtype)
    flat = res.reshape(out_h * out_w, res.shape[-1])
    s_ref[0, 0:1, :] = jnp.sum(flat, axis=0, keepdims=True)
    s_ref[0, 1:2, :] = jnp.sum(flat * flat, axis=0, keepdims=True)


def _finalize_kernel(y_ref, a_ref, b_ref, *rest, act, residual):
    """Final BN-affine (+ optional ReLU6) (+ optional residual add), row-tiled."""
    if residual:
        r_ref, o_ref = rest
    else:
        (o_ref,) = rest
    y = y_ref[0].astype(jnp.float32) * a_ref[0] + b_ref[0]
    if act:
        y = jnp.clip(y, 0.0, 6.0)
    if residual:
        y = y + r_ref[0].astype(jnp.float32)
    o_ref[0] = y.astype(o_ref.dtype)


# --------------------------------------------------------------------------- pallas_call wrappers
def _pointwise_conv_call(x, a, b, w, *, in_act, compute_dtype, store_dtype, row_tile):
    n, h, width, cin = x.shape
    cout = w.shape[1]
    tr = _pick_row_tile(h, row_tile)
    n_t = h // tr
    kernel = functools.partial(_pw_conv_kernel, in_act=in_act, compute_dtype=compute_dtype)
    y, s = pl.pallas_call(
        kernel,
        out_shape=(
            jax.ShapeDtypeStruct((n, h, width, cout), store_dtype),
            jax.ShapeDtypeStruct((n * n_t, 2, cout), jnp.float32),
        ),
        grid=(n, n_t),
        in_specs=[
            pl.BlockSpec((1, tr, width, cin), lambda i, t: (i, t, 0, 0)),
            pl.BlockSpec((1, cin), lambda i, t: (0, 0)),
            pl.BlockSpec((1, cin), lambda i, t: (0, 0)),
            pl.BlockSpec((cin, cout), lambda i, t: (0, 0)),
        ],
        out_specs=(
            pl.BlockSpec((1, tr, width, cout), lambda i, t: (i, t, 0, 0)),
            pl.BlockSpec((1, 2, cout), lambda i, t: (i * n_t + t, 0, 0)),
        ),
        compiler_params=pltpu.CompilerParams(
            dimension_semantics=("parallel", "parallel"),
            vmem_limit_bytes=_VMEM_LIMIT),
    )(x, a, b, w)
    return y, jnp.sum(s, axis=0)          # (2, cout) per-channel sum / sum-of-squares


def _depthwise_conv_call(x, a, b, taps, *, K, stride, padding, in_act, store_dtype):
    n, h, width, c = x.shape
    out_h = (h + 2 * padding - K) // stride + 1
    out_w = (width + 2 * padding - K) // stride + 1
    kernel = functools.partial(_dw_conv_kernel, K=K, stride=stride, padding=padding,
                               out_h=out_h, out_w=out_w, in_act=in_act)
    # TODO(synk): for very large spatial dims the depthwise input should be row-tiled
    # with a manual haloed DMA (memory_space=pl.ANY + make_async_copy); full-image
    # blocks per batch element are fine at MBConv feature-map sizes.
    y, s = pl.pallas_call(
        kernel,
        out_shape=(
            jax.ShapeDtypeStruct((n, out_h, out_w, c), store_dtype),
            jax.ShapeDtypeStruct((n, 2, c), jnp.float32),
        ),
        grid=(n,),
        in_specs=[
            pl.BlockSpec((1, h, width, c), lambda i: (i, 0, 0, 0)),
            pl.BlockSpec((1, c), lambda i: (0, 0)),
            pl.BlockSpec((1, c), lambda i: (0, 0)),
            pl.BlockSpec((K * K, c), lambda i: (0, 0)),
        ],
        out_specs=(
            pl.BlockSpec((1, out_h, out_w, c), lambda i: (i, 0, 0, 0)),
            pl.BlockSpec((1, 2, c), lambda i: (i, 0, 0)),
        ),
        scratch_shapes=[
            pltpu.VMEM((h + 2 * padding, width + 2 * padding, c), jnp.float32),
            pltpu.VMEM((out_h, out_w, c), jnp.float32),
        ],
        compiler_params=pltpu.CompilerParams(
            dimension_semantics=("parallel",),
            vmem_limit_bytes=_VMEM_LIMIT),
    )(x, a, b, taps)
    return y, jnp.sum(s, axis=0)


def _finalize_call(y, a, b, residual, *, act, row_tile, out_dtype=jnp.float32):
    n, h, width, c = y.shape
    tr = _pick_row_tile(h, row_tile)
    n_t = h // tr
    tile_spec = pl.BlockSpec((1, tr, width, c), lambda i, t: (i, t, 0, 0))
    vec_spec = pl.BlockSpec((1, c), lambda i, t: (0, 0))
    in_specs = [tile_spec, vec_spec, vec_spec]
    args = [y, a, b]
    if residual is not None:
        in_specs.append(tile_spec)
        args.append(residual)
    kernel = functools.partial(_finalize_kernel, act=act, residual=residual is not None)
    return pl.pallas_call(
        kernel,
        out_shape=jax.ShapeDtypeStruct((n, h, width, c), out_dtype),
        grid=(n, n_t),
        in_specs=in_specs,
        out_specs=tile_spec,
        compiler_params=pltpu.CompilerParams(
            dimension_semantics=("parallel", "parallel"),
            vmem_limit_bytes=_VMEM_LIMIT),
    )(*args)


def _bn_affine(stats, gamma, beta, count, eps):
    """Training-mode BatchNorm as a per-channel affine: a = gamma*rsqrt(var+eps),
    b = beta - mean*a, with biased one-pass batch statistics (sum & sum-of-squares
    accumulated inside the conv kernels)."""
    # TODO(synk): running_mean/running_var momentum updates (PyTorch training-mode side
    # effect) are not tracked here; they do not affect the forward output.
    mean = stats[0] / count
    var = jnp.maximum(stats[1] / count - mean * mean, 0.0)
    a = gamma * jax.lax.rsqrt(var + eps)
    b = beta - mean * a
    return a.reshape(1, -1).astype(jnp.float32), b.reshape(1, -1).astype(jnp.float32)


# --------------------------------------------------------------------------- MBConv forward
def mbconv_forward(x_nchw, params, *, kernel_size, stride, eps=1e-5,
                   compute_dtype=jnp.bfloat16, row_tile=None):
    """Forward pass of MBConv (PyTorch semantics, BatchNorm in training mode)."""
    w1, g1, be1 = params["w1"], params["g1"], params["b1"]
    wd, g2, be2 = params["wd"], params["g2"], params["b2"]
    w3, g3, be3 = params["w3"], params["g3"], params["b3"]

    n, c_in, h, w = x_nchw.shape
    c_exp = w1.shape[0]
    c_out = w3.shape[0]
    k = kernel_size
    padding = k // 2
    out_h = (h + 2 * padding - k) // stride + 1
    out_w = (w + 2 * padding - k) // stride + 1
    res_connect = (c_in == c_out) and stride == 1

    cin_p = _round_up(c_in, LANE)
    cexp_p = _round_up(c_exp, LANE)
    cout_p = _round_up(c_out, LANE)
    store_dtype = compute_dtype  # bf16 intermediates halve HBM traffic for activations

    # NCHW -> NHWC (channels on the lane axis), zero-pad channels to a lane multiple.
    x_nhwc = _pad_axis(jnp.transpose(x_nchw, (0, 2, 3, 1)).astype(jnp.float32), cin_p)

    # Weights: 1x1 convs as (Cin, Cout) matrices, depthwise as (K*K, C) taps.
    w1_m = _pad_axis(_pad_axis(jnp.transpose(w1.reshape(c_exp, c_in), (1, 0)), cexp_p),
                     cin_p, axis=0).astype(compute_dtype)
    wd_m = _pad_axis(jnp.transpose(wd.reshape(c_exp, k * k), (1, 0)),
                     cexp_p).astype(jnp.float32)
    w3_m = _pad_axis(_pad_axis(jnp.transpose(w3.reshape(c_out, c_exp), (1, 0)), cout_p),
                     cexp_p, axis=0).astype(compute_dtype)

    g1_p, be1_p = _pad_axis(g1.astype(jnp.float32), cexp_p), _pad_axis(be1.astype(jnp.float32), cexp_p)
    g2_p, be2_p = _pad_axis(g2.astype(jnp.float32), cexp_p), _pad_axis(be2.astype(jnp.float32), cexp_p)
    g3_p, be3_p = _pad_axis(g3.astype(jnp.float32), cout_p), _pad_axis(be3.astype(jnp.float32), cout_p)

    ident_a = jnp.ones((1, cin_p), jnp.float32)
    ident_b = jnp.zeros((1, cin_p), jnp.float32)

    # --- stage 1: 1x1 conv (C_in -> C_exp); its BN + ReLU6 is fused into stage 2 ---
    y1, s1 = _pointwise_conv_call(x_nhwc, ident_a, ident_b, w1_m, in_act=False,
                                  compute_dtype=compute_dtype, store_dtype=store_dtype,
                                  row_tile=row_tile)
    a1, b1 = _bn_affine(s1, g1_p, be1_p, n * h * w, eps)

    # --- stage 2: depthwise KxK conv (stride); input = BN1+ReLU6(y1), fused in-kernel ---
    y2, s2 = _depthwise_conv_call(y1, a1, b1, wd_m, K=k, stride=stride, padding=padding,
                                  in_act=True, store_dtype=store_dtype)
    a2, b2 = _bn_affine(s2, g2_p, be2_p, n * out_h * out_w, eps)

    # --- stage 3: 1x1 conv (C_exp -> C_out); input = BN2+ReLU6(y2), fused in-kernel ---
    y3, s3 = _pointwise_conv_call(y2, a2, b2, w3_m, in_act=True,
                                  compute_dtype=compute_dtype, store_dtype=store_dtype,
                                  row_tile=row_tile)
    a3, b3 = _bn_affine(s3, g3_p, be3_p, n * out_h * out_w, eps)

    # --- finalize: BN3 (no activation) + optional residual add ---
    residual = x_nhwc if res_connect else None
    out_nhwc = _finalize_call(y3, a3, b3, residual, act=False, row_tile=row_tile)

    out = out_nhwc[..., :c_out]
    return jnp.transpose(out, (0, 3, 1, 2))  # back to NCHW


# --------------------------------------------------------------------------- pure-JAX reference
def _reference_mbconv(x_nchw, params, *, kernel_size, stride, eps=1e-5,
                      compute_dtype=jnp.bfloat16):
    """Pure-JAX reference with the module's math (conv -> training-mode BN -> ReLU6, x3,
    + residual) using the same mixed-precision policy as the Pallas path (bf16 matmul
    operands / bf16 stored intermediates, f32 accumulate, f32 BN statistics)."""
    w1, g1, be1 = params["w1"], params["g1"], params["b1"]
    wd, g2, be2 = params["wd"], params["g2"], params["b2"]
    w3, g3, be3 = params["w3"], params["g3"], params["b3"]

    n, c_in, h, w = x_nchw.shape
    c_exp = w1.shape[0]
    c_out = w3.shape[0]
    k = kernel_size
    padding = k // 2
    out_h = (h + 2 * padding - k) // stride + 1
    out_w = (w + 2 * padding - k) // stride + 1
    res_connect = (c_in == c_out) and stride == 1
    cd = compute_dtype

    def bn_affine(y, gamma, beta):
        m = jnp.mean(y, axis=(0, 1, 2))
        v = jnp.maximum(jnp.mean(y * y, axis=(0, 1, 2)) - m * m, 0.0)
        a = gamma * jax.lax.rsqrt(v + eps)
        return a, beta - m * a

    x = jnp.transpose(x_nchw, (0, 2, 3, 1)).astype(jnp.float32)  # NHWC

    # stage 1: 1x1 conv
    w1_m = jnp.transpose(w1.reshape(c_exp, c_in), (1, 0))
    y1 = jnp.einsum("nhwc,cd->nhwd", x.astype(cd), w1_m.astype(cd),
                    preferred_element_type=jnp.float32)
    a1, b1 = bn_affine(y1, g1, be1)
    act1 = jnp.clip(y1.astype(cd).astype(jnp.float32) * a1 + b1, 0.0, 6.0)

    # stage 2: depthwise conv (f32 elementwise, like the in-kernel VPU path)
    wd_m = wd.reshape(c_exp, k * k)
    act1_p = jnp.pad(act1, ((0, 0), (padding, padding), (padding, padding), (0, 0)))
    y2 = jnp.zeros((n, out_h, out_w, c_exp), jnp.float32)
    for kh in range(k):
        for kw in range(k):
            win = jax.lax.slice(
                act1_p, (0, kh, kw, 0),
                (n, kh + (out_h - 1) * stride + 1, kw + (out_w - 1) * stride + 1, c_exp),
                (1, stride, stride, 1))
            y2 = y2 + win * wd_m[:, kh * k + kw]
    a2, b2 = bn_affine(y2, g2, be2)
    act2 = jnp.clip(y2.astype(cd).astype(jnp.float32) * a2 + b2, 0.0, 6.0)

    # stage 3: 1x1 conv, no activation
    w3_m = jnp.transpose(w3.reshape(c_out, c_exp), (1, 0))
    y3 = jnp.einsum("nhwc,cd->nhwd", act2.astype(cd), w3_m.astype(cd),
                    preferred_element_type=jnp.float32)
    a3, b3 = bn_affine(y3, g3, be3)
    out = y3.astype(cd).astype(jnp.float32) * a3 + b3
    if res_connect:
        out = out + x
    return jnp.transpose(out, (0, 3, 1, 2))


# --------------------------------------------------------------------------- demo / check
if __name__ == "__main__":
    # MBConv(C_in=4, C_out=4, kernel_size=3, stride=1, padding=1, expansion_factor=6)
    # -> residual branch active (C_in == C_out and stride == 1).
    N, C_IN, C_OUT, H, W = 2, 4, 4, 16, 16
    K, STRIDE, EXPANSION = 3, 1, 6
    C_EXP = C_IN * EXPANSION

    key = jax.random.PRNGKey(0)
    ks = jax.random.split(key, 10)
    x = jax.random.normal(ks[0], (N, C_IN, H, W), dtype=jnp.float32)
    params = {
        "w1": 0.3 * jax.random.normal(ks[1], (C_EXP, C_IN, 1, 1), dtype=jnp.float32),
        "g1": 1.0 + 0.1 * jax.random.normal(ks[2], (C_EXP,), dtype=jnp.float32),
        "b1": 0.1 * jax.random.normal(ks[3], (C_EXP,), dtype=jnp.float32),
        "wd": 0.3 * jax.random.normal(ks[4], (C_EXP, 1, K, K), dtype=jnp.float32),
        "g2": 1.0 + 0.1 * jax.random.normal(ks[5], (C_EXP,), dtype=jnp.float32),
        "b2": 0.1 * jax.random.normal(ks[6], (C_EXP,), dtype=jnp.float32),
        "w3": 0.3 * jax.random.normal(ks[7], (C_OUT, C_EXP, 1, 1), dtype=jnp.float32),
        "g3": 1.0 + 0.1 * jax.random.normal(ks[8], (C_OUT,), dtype=jnp.float32),
        "b3": 0.1 * jax.random.normal(ks[9], (C_OUT,), dtype=jnp.float32),
    }

    fwd = jax.jit(functools.partial(mbconv_forward, kernel_size=K, stride=STRIDE,
                                    eps=1e-5, compute_dtype=jnp.bfloat16, row_tile=8))
    out = jax.block_until_ready(fwd(x, params))

    ref = _reference_mbconv(x, params, kernel_size=K, stride=STRIDE, eps=1e-5,
                            compute_dtype=jnp.bfloat16)

    assert out.shape == (N, C_OUT, H, W), out.shape
    assert bool(jnp.isfinite(out).all()), "non-finite values in kernel output"
    max_err = float(jnp.max(jnp.abs(out - ref)))
    # The reference applies the same bf16 cast points; the residual tolerance covers
    # f32 accumulation-order differences and occasional bf16 rounding-boundary flips.
    assert jnp.allclose(out, ref, atol=3e-2, rtol=3e-2), f"max abs err {max_err}"
    print("KERNEL_OK")
</pallas_src>

<mosaic_0001>
module attributes {stable_mosaic.version = 11 : i64} {
  func.func @_pw_conv_kernel(%arg0: i32, %arg1: i32, %arg2: memref<1x8x16x128xf32, #tpu.memory_space<vmem>>, %arg3: memref<1x128xf32, #tpu.memory_space<vmem>>, %arg4: memref<1x128xf32, #tpu.memory_space<vmem>>, %arg5: memref<128x128xbf16, #tpu.memory_space<vmem>>, %arg6: memref<1x8x16x128xbf16, #tpu.memory_space<vmem>>, %arg7: memref<1x2x128xf32, #tpu.memory_space<vmem>>) attributes {dimension_semantics = [#tpu.dimension_semantics<parallel>, #tpu.dimension_semantics<parallel>], iteration_bounds = array<i64: 2, 2>, scalar_prefetch = 0 : i64, scratch_operands = 0 : i64, tpu.core_type = #tpu.core_type<tc>, window_params = [{transform_indices = @transform_0, window_bounds = array<i64: 1, 8, 16, 128>}, {pipeline_mode = #tpu.pipeline_mode<synchronous>, transform_indices = @transform_1, window_bounds = array<i64: 1, 128>}, {pipeline_mode = #tpu.pipeline_mode<synchronous>, transform_indices = @transform_2, window_bounds = array<i64: 1, 128>}, {pipeline_mode = #tpu.pipeline_mode<synchronous>, transform_indices = @transform_3, window_bounds = array<i64: 128, 128>}, {transform_indices = @transform_4, window_bounds = array<i64: 1, 8, 16, 128>}, {transform_indices = @transform_5, window_bounds = array<i64: 1, 2, 128>}]} {
    %c0 = arith.constant 0 : index
    %c0_0 = arith.constant 0 : index
    %c0_1 = arith.constant 0 : index
    %c0_2 = arith.constant 0 : index
    %0 = vector.load %arg2[%c0, %c0_0, %c0_1, %c0_2] : memref<1x8x16x128xf32, #tpu.memory_space<vmem>>, vector<1x8x16x128xf32>
    %1 = vector.shape_cast %0 : vector<1x8x16x128xf32> to vector<8x16x128xf32>
    %2 = vector.shape_cast %1 : vector<8x16x128xf32> to vector<128x128xf32>
    %c0_3 = arith.constant 0 : index
    %c0_4 = arith.constant 0 : index
    %3 = vector.load %arg3[%c0_3, %c0_4] : memref<1x128xf32, #tpu.memory_space<vmem>>, vector<1x128xf32>
    %4 = vector.shape_cast %3 : vector<1x128xf32> to vector<128xf32>
    %5 = vector.shape_cast %4 : vector<128xf32> to vector<1x128xf32>
    %6 = vector.broadcast %5 : vector<1x128xf32> to vector<128x128xf32>
    %7 = arith.mulf %2, %6 : vector<128x128xf32>
    %c0_5 = arith.constant 0 : index
    %c0_6 = arith.constant 0 : index
    %8 = vector.load %arg4[%c0_5, %c0_6] : memref<1x128xf32, #tpu.memory_space<vmem>>, vector<1x128xf32>
    %9 = vector.shape_cast %8 : vector<1x128xf32> to vector<128xf32>
    %10 = vector.shape_cast %9 : vector<128xf32> to vector<1x128xf32>
    %11 = vector.broadcast %10 : vector<1x128xf32> to vector<128x128xf32>
    %12 = arith.addf %7, %11 : vector<128x128xf32>
    %13 = arith.truncf %12 : vector<128x128xf32> to vector<128x128xbf16>
    %c0_7 = arith.constant 0 : index
    %c0_8 = arith.constant 0 : index
    %14 = vector.load %arg5[%c0_7, %c0_8] : memref<128x128xbf16, #tpu.memory_space<vmem>>, vector<128x128xbf16>
    %cst = arith.constant dense<0.000000e+00> : vector<128x128xf32>
    %15 = tpu.matmul %13, %14, %cst {dimension_numbers = #tpu.dot_dimension_numbers<[1], [0], [0], [1], [0, 0, 1, 1], [], []>} : vector<128x128xbf16>, vector<128x128xbf16>, vector<128x128xf32> -> vector<128x128xf32>
    %16 = vector.shape_cast %15 : vector<128x128xf32> to vector<8x16x128xf32>
    %17 = arith.truncf %16 : vector<8x16x128xf32> to vector<8x16x128xbf16>
    %c0_9 = arith.constant 0 : index
    %c0_10 = arith.constant 0 : index
    %c0_11 = arith.constant 0 : index
    %c0_12 = arith.constant 0 : index
    %18 = vector.load %arg6[%c0_9, %c0_10, %c0_11, %c0_12] : memref<1x8x16x128xbf16, #tpu.memory_space<vmem>>, vector<1x8x16x128xbf16>
    %19 = vector.shape_cast %18 : vector<1x8x16x128xbf16> to vector<8x16x128xbf16>
    %20 = vector.shape_cast %17 : vector<8x16x128xbf16> to vector<1x8x16x128xbf16>
    tpu.vector_store %arg6[%c0_9, %c0_10, %c0_11, %c0_12], %20 {strides = array<i32>} : memref<1x8x16x128xbf16, #tpu.memory_space<vmem>>, vector<1x8x16x128xbf16>,
    %cst_13 = arith.constant dense<0.000000e+00> : vector<128xf32>
    %21 = vector.multi_reduction <add>, %15, %cst_13 [0] : vector<128x128xf32> to vector<128xf32>
    %22 = vector.shape_cast %21 : vector<128xf32> to vector<1x128xf32>
    %c0_14 = arith.constant 0 : index
    %c0_15 = arith.constant 0 : index
    %c0_16 = arith.constant 0 : index
    %23 = vector.load %arg7[%c0_14, %c0_15, %c0_16] : memref<1x2x128xf32, #tpu.memory_space<vmem>>, vector<1x1x128xf32>
    %24 = vector.shape_cast %23 : vector<1x1x128xf32> to vector<1x128xf32>
    %25 = vector.shape_cast %22 : vector<1x128xf32> to vector<1x1x128xf32>
    tpu.vector_store %arg7[%c0_14, %c0_15, %c0_16], %25 {strides = array<i32>} : memref<1x2x128xf32, #tpu.memory_space<vmem>>, vector<1x1x128xf32>,
    %26 = arith.mulf %15, %15 : vector<128x128xf32>
    %cst_17 = arith.constant dense<0.000000e+00> : vector<128xf32>
    %27 = vector.multi_reduction <add>, %26, %cst_17 [0] : vector<128x128xf32> to vector<128xf32>
    %28 = vector.shape_cast %27 : vector<128xf32> to vector<1x128xf32>
    %c0_18 = arith.constant 0 : index
    %c1 = arith.constant 1 : index
    %c0_19 = arith.constant 0 : index
    %29 = vector.load %arg7[%c0_18, %c1, %c0_19] : memref<1x2x128xf32, #tpu.memory_space<vmem>>, vector<1x1x128xf32>
    %30 = vector.shape_cast %29 : vector<1x1x128xf32> to vector<1x128xf32>
    %31 = vector.shape_cast %28 : vector<1x128xf32> to vector<1x1x128xf32>
    tpu.vector_store %arg7[%c0_18, %c1, %c0_19], %31 {strides = array<i32>} : memref<1x2x128xf32, #tpu.memory_space<vmem>>, vector<1x1x128xf32>,
    return
  }
  func.func @transform_0(%arg0: i32, %arg1: i32) -> (i32, i32, i32, i32) {
    %c0_i32 = arith.constant 0 : i32
    %c0_i32_0 = arith.constant 0 : i32
    %c0_i32_1 = arith.constant 0 : i32
    return %arg0, %arg1, %c0_i32, %c0_i32_0 : i32, i32, i32, i32
  }
  func.func @transform_1(%arg0: i32, %arg1: i32) -> (i32, i32) {
    %c0_i32 = arith.constant 0 : i32
    %c0_i32_0 = arith.constant 0 : i32
    %c0_i32_1 = arith.constant 0 : i32
    return %c0_i32, %c0_i32_0 : i32, i32
  }
  func.func @transform_2(%arg0: i32, %arg1: i32) -> (i32, i32) {
    %c0_i32 = arith.constant 0 : i32
    %c0_i32_0 = arith.constant 0 : i32
    %c0_i32_1 = arith.constant 0 : i32
    return %c0_i32, %c0_i32_0 : i32, i32
  }
  func.func @transform_3(%arg0: i32, %arg1: i32) -> (i32, i32) {
    %c0_i32 = arith.constant 0 : i32
    %c0_i32_0 = arith.constant 0 : i32
    %c0_i32_1 = arith.constant 0 : i32
    return %c0_i32, %c0_i32_0 : i32, i32
  }
  func.func @transform_4(%arg0: i32, %arg1: i32) -> (i32, i32, i32, i32) {
    %c0_i32 = arith.constant 0 : i32
    %c0_i32_0 = arith.constant 0 : i32
    %c0_i32_1 = arith.constant 0 : i32
    return %arg0, %arg1, %c0_i32, %c0_i32_0 : i32, i32, i32, i32
  }
  func.func @transform_5(%arg0: i32, %arg1: i32) -> (i32, i32, i32) {
    %c2_i32 = arith.constant 2 : i32
    %0 = arith.muli %arg0, %c2_i32 : i32
    %1 = arith.addi %0, %arg1 : i32
    %c0_i32 = arith.constant 0 : i32
    %c0_i32_0 = arith.constant 0 : i32
    %c0_i32_1 = arith.constant 0 : i32
    return %1, %c0_i32, %c0_i32_0 : i32, i32, i32
  }
}

module attributes {stable_mosaic.version = 11 : i64} {
  func.func @_dw_conv_kernel(%arg0: i32, %arg1: memref<1x16x16x128xbf16, #tpu.memory_space<vmem>>, %arg2: memref<1x128xf32, #tpu.memory_space<vmem>>, %arg3: memref<1x128xf32, #tpu.memory_space<vmem>>, %arg4: memref<9x128xf32, #tpu.memory_space<vmem>>, %arg5: memref<1x16x16x128xbf16, #tpu.memory_space<vmem>>, %arg6: memref<1x2x128xf32, #tpu.memory_space<vmem>>, %arg7: memref<18x18x128xf32, #tpu.memory_space<vmem>>, %arg8: memref<16x16x128xf32, #tpu.memory_space<vmem>>) attributes {dimension_semantics = [#tpu.dimension_semantics<parallel>], iteration_bounds = array<i64: 2>, scalar_prefetch = 0 : i64, scratch_operands = 2 : i64, tpu.core_type = #tpu.core_type<tc>, window_params = [{transform_indices = @transform_0, window_bounds = array<i64: 1, 16, 16, 128>}, {pipeline_mode = #tpu.pipeline_mode<synchronous>, transform_indices = @transform_1, window_bounds = array<i64: 1, 128>}, {pipeline_mode = #tpu.pipeline_mode<synchronous>, transform_indices = @transform_2, window_bounds = array<i64: 1, 128>}, {pipeline_mode = #tpu.pipeline_mode<synchronous>, transform_indices = @transform_3, window_bounds = array<i64: 9, 128>}, {transform_indices = @transform_4, window_bounds = array<i64: 1, 16, 16, 128>}, {transform_indices = @transform_5, window_bounds = array<i64: 1, 2, 128>}]} {
    %c0 = arith.constant 0 : index
    %c0_0 = arith.constant 0 : index
    %c0_1 = arith.constant 0 : index
    %c0_2 = arith.constant 0 : index
    %0 = vector.load %arg1[%c0, %c0_0, %c0_1, %c0_2] : memref<1x16x16x128xbf16, #tpu.memory_space<vmem>>, vector<1x16x16x128xbf16>
    %1 = vector.shape_cast %0 : vector<1x16x16x128xbf16> to vector<16x16x128xbf16>
    %2 = arith.extf %1 : vector<16x16x128xbf16> to vector<16x16x128xf32>
    %c0_3 = arith.constant 0 : index
    %c0_4 = arith.constant 0 : index
    %3 = vector.load %arg2[%c0_3, %c0_4] : memref<1x128xf32, #tpu.memory_space<vmem>>, vector<1x128xf32>
    %4 = vector.shape_cast %3 : vector<1x128xf32> to vector<128xf32>
    %5 = vector.shape_cast %4 : vector<128xf32> to vector<1x1x128xf32>
    %6 = vector.broadcast %5 : vector<1x1x128xf32> to vector<16x16x128xf32>
    %7 = arith.mulf %2, %6 : vector<16x16x128xf32>
    %c0_5 = arith.constant 0 : index
    %c0_6 = arith.constant 0 : index
    %8 = vector.load %arg3[%c0_5, %c0_6] : memref<1x128xf32, #tpu.memory_space<vmem>>, vector<1x128xf32>
    %9 = vector.shape_cast %8 : vector<1x128xf32> to vector<128xf32>
    %10 = vector.shape_cast %9 : vector<128xf32> to vector<1x1x128xf32>
    %11 = vector.broadcast %10 : vector<1x1x128xf32> to vector<16x16x128xf32>
    %12 = arith.addf %7, %11 : vector<16x16x128xf32>
    %cst = arith.constant 0.000000e+00 : f32
    %cst_7 = arith.constant 6.000000e+00 : f32
    %13 = vector.broadcast %cst : f32 to vector<16x16x128xf32>
    %14 = arith.maximumf %13, %12 : vector<16x16x128xf32>
    %15 = vector.broadcast %cst_7 : f32 to vector<16x16x128xf32>
    %16 = arith.minimumf %15, %14 : vector<16x16x128xf32>
    %cst_8 = arith.constant 0.000000e+00 : f32
    %17 = vector.broadcast %cst_8 : f32 to vector<18x18x128xf32>
    %c0_9 = arith.constant 0 : index
    %c0_10 = arith.constant 0 : index
    %c0_11 = arith.constant 0 : index
    %18 = vector.load %arg7[%c0_9, %c0_10, %c0_11] : memref<18x18x128xf32, #tpu.memory_space<vmem>>, vector<18x18x128xf32>
    tpu.vector_store %arg7[%c0_9, %c0_10, %c0_11], %17 {strides = array<i32>} : memref<18x18x128xf32, #tpu.memory_space<vmem>>, vector<18x18x128xf32>,
    %c1 = arith.constant 1 : index
    %c1_12 = arith.constant 1 : index
    %c0_13 = arith.constant 0 : index
    %19 = vector.load %arg7[%c1, %c1_12, %c0_13] : memref<18x18x128xf32, #tpu.memory_space<vmem>>, vector<16x16x128xf32>
    tpu.vector_store %arg7[%c1, %c1_12, %c0_13], %16 {strides = array<i32>} : memref<18x18x128xf32, #tpu.memory_space<vmem>>, vector<16x16x128xf32>,
    %c0_14 = arith.constant 0 : index
    %c0_15 = arith.constant 0 : index
    %20 = vector.load %arg4[%c0_14, %c0_15] : memref<9x128xf32, #tpu.memory_space<vmem>>, vector<9x128xf32>
    %cst_16 = arith.constant 0.000000e+00 : f32
    %21 = vector.broadcast %cst_16 : f32 to vector<16x16x128xf32>
    %c0_17 = arith.constant 0 : index
    %c0_18 = arith.constant 0 : index
    %c0_19 = arith.constant 0 : index
    %22 = vector.load %arg8[%c0_17, %c0_18, %c0_19] : memref<16x16x128xf32, #tpu.memory_space<vmem>>, vector<16x16x128xf32>
    tpu.vector_store %arg8[%c0_17, %c0_18, %c0_19], %21 {strides = array<i32>} : memref<16x16x128xf32, #tpu.memory_space<vmem>>, vector<16x16x128xf32>,
    %c0_20 = arith.constant 0 : index
    %c0_21 = arith.constant 0 : index
    %c0_22 = arith.constant 0 : index
    %23 = vector.load %arg7[%c0_20, %c0_21, %c0_22] : memref<18x18x128xf32, #tpu.memory_space<vmem>>, vector<16x16x128xf32>
    %c0_23 = arith.constant 0 : index
    %c0_24 = arith.constant 0 : index
    %c0_25 = arith.constant 0 : index
    %24 = vector.load %arg8[%c0_23, %c0_24, %c0_25] : memref<16x16x128xf32, #tpu.memory_space<vmem>>, vector<16x16x128xf32>
    %25 = vector.extract_strided_slice %20 {offsets = [0, 0], sizes = [1, 128], strides = [1, 1]} : vector<9x128xf32> to vector<1x128xf32>
    %26 = vector.shape_cast %25 : vector<1x128xf32> to vector<128xf32>
    %27 = vector.shape_cast %26 : vector<128xf32> to vector<1x1x128xf32>
    %28 = vector.broadcast %27 : vector<1x1x128xf32> to vector<16x16x128xf32>
    %29 = arith.mulf %23, %28 : vector<16x16x128xf32>
    %30 = arith.addf %24, %29 : vector<16x16x128xf32>
    %c0_26 = arith.constant 0 : index
    %c0_27 = arith.constant 0 : index
    %c0_28 = arith.constant 0 : index
    %31 = vector.load %arg8[%c0_26, %c0_27, %c0_28] : memref<16x16x128xf32, #tpu.memory_space<vmem>>, vector<16x16x128xf32>
    tpu.vector_store %arg8[%c0_26, %c0_27, %c0_28], %30 {strides = array<i32>} : memref<16x16x128xf32, #tpu.memory_space<vmem>>, vector<16x16x128xf32>,
    %c0_29 = arith.constant 0 : index
    %c1_30 = arith.constant 1 : index
    %c0_31 = arith.constant 0 : index
    %32 = vector.load %arg7[%c0_29, %c1_30, %c0_31] : memref<18x18x128xf32, #tpu.memory_space<vmem>>, vector<16x16x128xf32>
    %c0_32 = arith.constant 0 : index
    %c0_33 = arith.constant 0 : index
    %c0_34 = arith.constant 0 : index
    %33 = vector.load %arg8[%c0_32, %c0_33, %c0_34] : memref<16x16x128xf32, #tpu.memory_space<vmem>>, vector<16x16x128xf32>
    %34 = vector.extract_strided_slice %20 {offsets = [1, 0], sizes = [1, 128], strides = [1, 1]} : vector<9x128xf32> to vector<1x128xf32>
    %35 = vector.shape_cast %34 : vector<1x128xf32> to vector<128xf32>
    %36 = vector.shape_cast %35 : vector<128xf32> to vector<1x1x128xf32>
    %37 = vector.broadcast %36 : vector<1x1x128xf32> to vector<16x16x128xf32>
    %38 = arith.mulf %32, %37 : vector<16x16x128xf32>
    %39 = arith.addf %33, %38 : vector<16x16x128xf32>
    %c0_35 = arith.constant 0 : index
    %c0_36 = arith.constant 0 : index
    %c0_37 = arith.constant 0 : index
    %40 = vector.load %arg8[%c0_35, %c0_36, %c0_37] : memref<16x16x128xf32, #tpu.memory_space<vmem>>, vector<16x16x128xf32>
    tpu.vector_store %arg8[%c0_35, %c0_36, %c0_37], %39 {strides = array<i32>} : memref<16x16x128xf32, #tpu.memory_space<vmem>>, vector<16x16x128xf32>,
    %c0_38 = arith.constant 0 : index
    %c2 = arith.constant 2 : index
    %c0_39 = arith.constant 0 : index
    %41 = vector.load %arg7[%c0_38, %c2, %c0_39] : memref<18x18x128xf32, #tpu.memory_space<vmem>>, vector<16x16x128xf32>
    %c0_40 = arith.constant 0 : index
    %c0_41 = arith.constant 0 : index
    %c0_42 = arith.constant 0 : index
    %42 = vector.load %arg8[%c0_40, %c0_41, %c0_42] : memref<16x16x128xf32, #tpu.memory_space<vmem>>, vector<16x16x128xf32>
    %43 = vector.extract_strided_slice %20 {offsets = [2, 0], sizes = [1, 128], strides = [1, 1]} : vector<9x128xf32> to vector<1x128xf32>
    %44 = vector.shape_cast %43 : vector<1x128xf32> to vector<128xf32>
    %45 = vector.shape_cast %44 : vector<128xf32> to vector<1x1x128xf32>
    %46 = vector.broadcast %45 : vector<1x1x128xf32> to vector<16x16x128xf32>
    %47 = arith.mulf %41, %46 : vector<16x16x128xf32>
    %48 = arith.addf %42, %47 : vector<16x16x128xf32>
    %c0_43 = arith.constant 0 : index
    %c0_44 = arith.constant 0 : index
    %c0_45 = arith.constant 0 : index
    %49 = vector.load %arg8[%c0_43, %c0_44, %c0_45] : memref<16x16x128xf32, #tpu.memory_space<vmem>>, vector<16x16x128xf32>
    tpu.vector_store %arg8[%c0_43, %c0_44, %c0_45], %48 {strides = array<i32>} : memref<16x16x128xf32, #tpu.memory_space<vmem>>, vector<16x16x128xf32>,
    %c1_46 = arith.constant 1 : index
    %c0_47 = arith.constant 0 : index
    %c0_48 = arith.constant 0 : index
    %50 = vector.load %arg7[%c1_46, %c0_47, %c0_48] : memref<18x18x128xf32, #tpu.memory_space<vmem>>, vector<16x16x128xf32>
    %c0_49 = arith.constant 0 : index
    %c0_50 = arith.constant 0 : index
    %c0_51 = arith.constant 0 : index
    %51 = vector.load %arg8[%c0_49, %c0_50, %c0_51] : memref<16x16x128xf32, #tpu.memory_space<vmem>>, vector<16x16x128xf32>
    %52 = vector.extract_strided_slice %20 {offsets = [3, 0], sizes = [1, 128], strides = [1, 1]} : vector<9x128xf32> to vector<1x128xf32>
    %53 = vector.shape_cast %52 : vector<1x128xf32> to vector<128xf32>
    %54 = vector.shape_cast %53 : vector<128xf32> to vector<1x1x128xf32>
    %55 = vector.broadcast %54 : vector<1x1x128xf32> to vector<16x16x128xf32>
    %56 = arith.mulf %50, %55 : vector<16x16x128xf32>
    %57 = arith.addf %51, %56 : vector<16x16x128xf32>
    %c0_52 = arith.constant 0 : index
    %c0_53 = arith.constant 0 : index
    %c0_54 = arith.constant 0 : index
    %58 = vector.load %arg8[%c0_52, %c0_53, %c0_54] : memref<16x16x128xf32, #tpu.memory_space<vmem>>, vector<16x16x128xf32>
    tpu.vector_store %arg8[%c0_52, %c0_53, %c0_54], %57 {strides = array<i32>} : memref<16x16x128xf32, #tpu.memory_space<vmem>>, vector<16x16x128xf32>,
    %c1_55 = arith.constant 1 : index
    %c1_56 = arith.constant 1 : index
    %c0_57 = arith.constant 0 : index
    %59 = vector.load %arg7[%c1_55, %c1_56, %c0_57] : memref<18x18x128xf32, #tpu.memory_space<vmem>>, vector<16x16x128xf32>
    %c0_58 = arith.constant 0 : index
    %c0_59 = arith.constant 0 : index
    %c0_60 = arith.constant 0 : index
    %60 = vector.load %arg8[%c0_58, %c0_59, %c0_60] : memref<16x16x128xf32, #tpu.memory_space<vmem>>, vector<16x16x128xf32>
    %61 = vector.extract_strided_slice %20 {offsets = [4, 0], sizes = [1, 128], strides = [1, 1]} : vector<9x128xf32> to vector<1x128xf32>
    %62 = vector.shape_cast %61 : vector<1x128xf32> to vector<128xf32>
    %63 = vector.shape_cast %62 : vector<128xf32> to vector<1x1x128xf32>
    %64 = vector.broadcast %63 : vector<1x1x128xf32> to vector<16x16x128xf32>
    %65 = arith.mulf %59, %64 : vector<16x16x128xf32>
    %66 = arith.addf %60, %65 : vector<16x16x128xf32>
    %c0_61 = arith.constant 0 : index
    %c0_62 = arith.constant 0 : index
    %c0_63 = arith.constant 0 : index
    %67 = vector.load %arg8[%c0_61, %c0_62, %c0_63] : memref<16x16x128xf32, #tpu.memory_space<vmem>>, vector<16x16x128xf32>
    tpu.vector_store %arg8[%c0_61, %c0_62, %c0_63], %66 {strides = array<i32>} : memref<16x16x128xf32, #tpu.memory_space<vmem>>, vector<16x16x128xf32>,
    %c1_64 = arith.constant 1 : index
    %c2_65 = arith.constant 2 : index
    %c0_66 = arith.constant 0 : index
    %68 = vector.load %arg7[%c1_64, %c2_65, %c0_66] : memref<18x18x128xf32, #tpu.memory_space<vmem>>, vector<16x16x128xf32>
    %c0_67 = arith.constant 0 : index
    %c0_68 = arith.constant 0 : index
    %c0_69 = arith.constant 0 : index
    %69 = vector.load %arg8[%c0_67, %c0_68, %c0_69] : memref<16x16x128xf32, #tpu.memory_space<vmem>>, vector<16x16x128xf32>
    %70 = vector.extract_strided_slice %20 {offsets = [5, 0], sizes = [1, 128], strides = [1, 1]} : vector<9x128xf32> to vector<1x128xf32>
    %71 = vector.shape_cast %70 : vector<1x128xf32> to vector<128xf32>
    %72 = vector.shape_cast %71 : vector<128xf32> to vector<1x1x128xf32>
    %73 = vector.broadcast %72 : vector<1x1x128xf32> to vector<16x16x128xf32>
    %74 = arith.mulf %68, %73 : vector<16x16x128xf32>
    %75 = arith.addf %69, %74 : vector<16x16x128xf32>
    %c0_70 = arith.constant 0 : index
    %c0_71 = arith.constant 0 : index
    %c0_72 = arith.constant 0 : index
    %76 = vector.load %arg8[%c0_70, %c0_71, %c0_72] : memref<16x16x128xf32, #tpu.memory_space<vmem>>, vector<16x16x128xf32>
    tpu.vector_store %arg8[%c0_70, %c0_71, %c0_72], %75 {strides = array<i32>} : memref<16x16x128xf32, #tpu.memory_space<vmem>>, vector<16x16x128xf32>,
    %c2_73 = arith.constant 2 : index
    %c0_74 = arith.constant 0 : index
    %c0_75 = arith.constant 0 : index
    %77 = vector.load %arg7[%c2_73, %c0_74, %c0_75] : memref<18x18x128xf32, #tpu.memory_space<vmem>>, vector<16x16x128xf32>
    %c0_76 = arith.constant 0 : index
    %c0_77 = arith.constant 0 : index
    %c0_78 = arith.constant 0 : index
    %78 = vector.load %arg8[%c0_76, %c0_77, %c0_78] : memref<16x16x128xf32, #tpu.memory_space<vmem>>, vector<16x16x128xf32>
    %79 = vector.extract_strided_slice %20 {offsets = [6, 0], sizes = [1, 128], strides = [1, 1]} : vector<9x128xf32> to vector<1x128xf32>
    %80 = vector.shape_cast %79 : vector<1x128xf32> to vector<128xf32>
    %81 = vector.shape_cast %80 : vector<128xf32> to vector<1x1x128xf32>
    %82 = vector.broadcast %81 : vector<1x1x128xf32> to vector<16x16x128xf32>
    %83 = arith.mulf %77, %82 : vector<16x16x128xf32>
    %84 = arith.addf %78, %83 : vector<16x16x128xf32>
    %c0_79 = arith.constant 0 : index
    %c0_80 = arith.constant 0 : index
    %c0_81 = arith.constant 0 : index
    %85 = vector.load %arg8[%c0_79, %c0_80, %c0_81] : memref<16x16x128xf32, #tpu.memory_space<vmem>>, vector<16x16x128xf32>
    tpu.vector_store %arg8[%c0_79, %c0_80, %c0_81], %84 {strides = array<i32>} : memref<16x16x128xf32, #tpu.memory_space<vmem>>, vector<16x16x128xf32>,
    %c2_82 = arith.constant 2 : index
    %c1_83 = arith.constant 1 : index
    %c0_84 = arith.constant 0 : index
    %86 = vector.load %arg7[%c2_82, %c1_83, %c0_84] : memref<18x18x128xf32, #tpu.memory_space<vmem>>, vector<16x16x128xf32>
    %c0_85 = arith.constant 0 : index
    %c0_86 = arith.constant 0 : index
    %c0_87 = arith.constant 0 : index
    %87 = vector.load %arg8[%c0_85, %c0_86, %c0_87] : memref<16x16x128xf32, #tpu.memory_space<vmem>>, vector<16x16x128xf32>
    %88 = vector.extract_strided_slice %20 {offsets = [7, 0], sizes = [1, 128], strides = [1, 1]} : vector<9x128xf32> to vector<1x128xf32>
    %89 = vector.shape_cast %88 : vector<1x128xf32> to vector<128xf32>
    %90 = vector.shape_cast %89 : vector<128xf32> to vector<1x1x128xf32>
    %91 = vector.broadcast %90 : vector<1x1x128xf32> to vector<16x16x128xf32>
    %92 = arith.mulf %86, %91 : vector<16x16x128xf32>
    %93 = arith.addf %87, %92 : vector<16x16x128xf32>
    %c0_88 = arith.constant 0 : index
    %c0_89 = arith.constant 0 : index
    %c0_90 = arith.constant 0 : index
    %94 = vector.load %arg8[%c0_88, %c0_89, %c0_90] : memref<16x16x128xf32, #tpu.memory_space<vmem>>, vector<16x16x128xf32>
    tpu.vector_store %arg8[%c0_88, %c0_89, %c0_90], %93 {strides = array<i32>} : memref<16x16x128xf32, #tpu.memory_space<vmem>>, vector<16x16x128xf32>,
    %c2_91 = arith.constant 2 : index
    %c2_92 = arith.constant 2 : index
    %c0_93 = arith.constant 0 : index
    %95 = vector.load %arg7[%c2_91, %c2_92, %c0_93] : memref<18x18x128xf32, #tpu.memory_space<vmem>>, vector<16x16x128xf32>
    %c0_94 = arith.constant 0 : index
    %c0_95 = arith.constant 0 : index
    %c0_96 = arith.constant 0 : index
    %96 = vector.load %arg8[%c0_94, %c0_95, %c0_96] : memref<16x16x128xf32, #tpu.memory_space<vmem>>, vector<16x16x128xf32>
    %97 = vector.extract_strided_slice %20 {offsets = [8, 0], sizes = [1, 128], strides = [1, 1]} : vector<9x128xf32> to vector<1x128xf32>
    %98 = vector.shape_cast %97 : vector<1x128xf32> to vector<128xf32>
    %99 = vector.shape_cast %98 : vector<128xf32> to vector<1x1x128xf32>
    %100 = vector.broadcast %99 : vector<1x1x128xf32> to vector<16x16x128xf32>
    %101 = arith.mulf %95, %100 : vector<16x16x128xf32>
    %102 = arith.addf %96, %101 : vector<16x16x128xf32>
    %c0_97 = arith.constant 0 : index
    %c0_98 = arith.constant 0 : index
    %c0_99 = arith.constant 0 : index
    %103 = vector.load %arg8[%c0_97, %c0_98, %c0_99] : memref<16x16x128xf32, #tpu.memory_space<vmem>>, vector<16x16x128xf32>
    tpu.vector_store %arg8[%c0_97, %c0_98, %c0_99], %102 {strides = array<i32>} : memref<16x16x128xf32, #tpu.memory_space<vmem>>, vector<16x16x128xf32>,
    %c0_100 = arith.constant 0 : index
    %c0_101 = arith.constant 0 : index
    %c0_102 = arith.constant 0 : index
    %104 = vector.load %arg8[%c0_100, %c0_101, %c0_102] : memref<16x16x128xf32, #tpu.memory_space<vmem>>, vector<16x16x128xf32>
    %105 = arith.truncf %104 : vector<16x16x128xf32> to vector<16x16x128xbf16>
    %c0_103 = arith.constant 0 : index
    %c0_104 = arith.constant 0 : index
    %c0_105 = arith.constant 0 : index
    %c0_106 = arith.constant 0 : index
    %106 = vector.load %arg5[%c0_103, %c0_104, %c0_105, %c0_106] : memref<1x16x16x128xbf16, #tpu.memory_space<vmem>>, vector<1x16x16x128xbf16>
    %107 = vector.shape_cast %106 : vector<1x16x16x128xbf16> to vector<16x16x128xbf16>
    %108 = vector.shape_cast %105 : vector<16x16x128xbf16> to vector<1x16x16x128xbf16>
    tpu.vector_store %arg5[%c0_103, %c0_104, %c0_105, %c0_106], %108 {strides = array<i32>} : memref<1x16x16x128xbf16, #tpu.memory_space<vmem>>, vector<1x16x16x128xbf16>,
    %109 = vector.shape_cast %104 : vector<16x16x128xf32> to vector<256x128xf32>
    %cst_107 = arith.constant dense<0.000000e+00> : vector<128xf32>
    %110 = vector.multi_reduction <add>, %109, %cst_107 [0] : vector<256x128xf32> to vector<128xf32>
    %111 = vector.shape_cast %110 : vector<128xf32> to vector<1x128xf32>
    %c0_108 = arith.constant 0 : index
    %c0_109 = arith.constant 0 : index
    %c0_110 = arith.constant 0 : index
    %112 = vector.load %arg6[%c0_108, %c0_109, %c0_110] : memref<1x2x128xf32, #tpu.memory_space<vmem>>, vector<1x1x128xf32>
    %113 = vector.shape_cast %112 : vector<1x1x128xf32> to vector<1x128xf32>
    %114 = vector.shape_cast %111 : vector<1x128xf32> to vector<1x1x128xf32>
    tpu.vector_store %arg6[%c0_108, %c0_109, %c0_110], %114 {strides = array<i32>} : memref<1x2x128xf32, #tpu.memory_space<vmem>>, vector<1x1x128xf32>,
    %115 = arith.mulf %109, %109 : vector<256x128xf32>
    %cst_111 = arith.constant dense<0.000000e+00> : vector<128xf32>
    %116 = vector.multi_reduction <add>, %115, %cst_111 [0] : vector<256x128xf32> to vector<128xf32>
    %117 = vector.shape_cast %116 : vector<128xf32> to vector<1x128xf32>
    %c0_112 = arith.constant 0 : index
    %c1_113 = arith.constant 1 : index
    %c0_114 = arith.constant 0 : index
    %118 = vector.load %arg6[%c0_112, %c1_113, %c0_114] : memref<1x2x128xf32, #tpu.memory_space<vmem>>, vector<1x1x128xf32>
    %119 = vector.shape_cast %118 : vector<1x1x128xf32> to vector<1x128xf32>
    %120 = vector.shape_cast %117 : vector<1x128xf32> to vector<1x1x128xf32>
    tpu.vector_store %arg6[%c0_112, %c1_113, %c0_114], %120 {strides = array<i32>} : memref<1x2x128xf32, #tpu.memory_space<vmem>>, vector<1x1x128xf32>,
    return
  }
  func.func @transform_0(%arg0: i32) -> (i32, i32, i32, i32) {
    %c0_i32 = arith.constant 0 : i32
    %c0_i32_0 = arith.constant 0 : i32
    %c0_i32_1 = arith.constant 0 : i32
    %c0_i32_2 = arith.constant 0 : i32
    return %arg0, %c0_i32, %c0_i32_0, %c0_i32_1 : i32, i32, i32, i32
  }
  func.func @transform_1(%arg0: i32) -> (i32, i32) {
    %c0_i32 = arith.constant 0 : i32
    %c0_i32_0 = arith.constant 0 : i32
    %c0_i32_1 = arith.constant 0 : i32
    return %c0_i32, %c0_i32_0 : i32, i32
  }
  func.func @transform_2(%arg0: i32) -> (i32, i32) {
    %c0_i32 = arith.constant 0 : i32
    %c0_i32_0 = arith.constant 0 : i32
    %c0_i32_1 = arith.constant 0 : i32
    return %c0_i32, %c0_i32_0 : i32, i32
  }
  func.func @transform_3(%arg0: i32) -> (i32, i32) {
    %c0_i32 = arith.constant 0 : i32
    %c0_i32_0 = arith.constant 0 : i32
    %c0_i32_1 = arith.constant 0 : i32
    return %c0_i32, %c0_i32_0 : i32, i32
  }
  func.func @transform_4(%arg0: i32) -> (i32, i32, i32, i32) {
    %c0_i32 = arith.constant 0 : i32
    %c0_i32_0 = arith.constant 0 : i32
    %c0_i32_1 = arith.constant 0 : i32
    %c0_i32_2 = arith.constant 0 : i32
    return %arg0, %c0_i32, %c0_i32_0, %c0_i32_1 : i32, i32, i32, i32
  }
  func.func @transform_5(%arg0: i32) -> (i32, i32, i32) {
    %c0_i32 = arith.constant 0 : i32
    %c0_i32_0 = arith.constant 0 : i32
    %c0_i32_1 = arith.constant 0 : i32
    return %arg0, %c0_i32, %c0_i32_0 : i32, i32, i32
  }
}

module attributes {stable_mosaic.version = 11 : i64} {
  func.func @_pw_conv_kernel(%arg0: i32, %arg1: i32, %arg2: memref<1x8x16x128xbf16, #tpu.memory_space<vmem>>, %arg3: memref<1x128xf32, #tpu.memory_space<vmem>>, %arg4: memref<1x128xf32, #tpu.memory_space<vmem>>, %arg5: memref<128x128xbf16, #tpu.memory_space<vmem>>, %arg6: memref<1x8x16x128xbf16, #tpu.memory_space<vmem>>, %arg7: memref<1x2x128xf32, #tpu.memory_space<vmem>>) attributes {dimension_semantics = [#tpu.dimension_semantics<parallel>, #tpu.dimension_semantics<parallel>], iteration_bounds = array<i64: 2, 2>, scalar_prefetch = 0 : i64, scratch_operands = 0 : i64, tpu.core_type = #tpu.core_type<tc>, window_params = [{transform_indices = @transform_0, window_bounds = array<i64: 1, 8, 16, 128>}, {pipeline_mode = #tpu.pipeline_mode<synchronous>, transform_indices = @transform_1, window_bounds = array<i64: 1, 128>}, {pipeline_mode = #tpu.pipeline_mode<synchronous>, transform_indices = @transform_2, window_bounds = array<i64: 1, 128>}, {pipeline_mode = #tpu.pipeline_mode<synchronous>, transform_indices = @transform_3, window_bounds = array<i64: 128, 128>}, {transform_indices = @transform_4, window_bounds = array<i64: 1, 8, 16, 128>}, {transform_indices = @transform_5, window_bounds = array<i64: 1, 2, 128>}]} {
    %c0 = arith.constant 0 : index
    %c0_0 = arith.constant 0 : index
    %c0_1 = arith.constant 0 : index
    %c0_2 = arith.constant 0 : index
    %0 = vector.load %arg2[%c0, %c0_0, %c0_1, %c0_2] : memref<1x8x16x128xbf16, #tpu.memory_space<vmem>>, vector<1x8x16x128xbf16>
    %1 = vector.shape_cast %0 : vector<1x8x16x128xbf16> to vector<8x16x128xbf16>
    %2 = vector.shape_cast %1 : vector<8x16x128xbf16> to vector<128x128xbf16>
    %3 = arith.extf %2 : vector<128x128xbf16> to vector<128x128xf32>
    %c0_3 = arith.constant 0 : index
    %c0_4 = arith.constant 0 : index
    %4 = vector.load %arg3[%c0_3, %c0_4] : memref<1x128xf32, #tpu.memory_space<vmem>>, vector<1x128xf32>
    %5 = vector.shape_cast %4 : vector<1x128xf32> to vector<128xf32>
    %6 = vector.shape_cast %5 : vector<128xf32> to vector<1x128xf32>
    %7 = vector.broadcast %6 : vector<1x128xf32> to vector<128x128xf32>
    %8 = arith.mulf %3, %7 : vector<128x128xf32>
    %c0_5 = arith.constant 0 : index
    %c0_6 = arith.constant 0 : index
    %9 = vector.load %arg4[%c0_5, %c0_6] : memref<1x128xf32, #tpu.memory_space<vmem>>, vector<1x128xf32>
    %10 = vector.shape_cast %9 : vector<1x128xf32> to vector<128xf32>
    %11 = vector.shape_cast %10 : vector<128xf32> to vector<1x128xf32>
    %12 = vector.broadcast %11 : vector<1x128xf32> to vector<128x128xf32>
    %13 = arith.addf %8, %12 : vector<128x128xf32>
    %cst = arith.constant 0.000000e+00 : f32
    %cst_7 = arith.constant 6.000000e+00 : f32
    %14 = vector.broadcast %cst : f32 to vector<128x128xf32>
    %15 = arith.maximumf %14, %13 : vector<128x128xf32>
    %16 = vector.broadcast %cst_7 : f32 to vector<128x128xf32>
    %17 = arith.minimumf %16, %15 : vector<128x128xf32>
    %18 = arith.truncf %17 : vector<128x128xf32> to vector<128x128xbf16>
    %c0_8 = arith.constant 0 : index
    %c0_9 = arith.constant 0 : index
    %19 = vector.load %arg5[%c0_8, %c0_9] : memref<128x128xbf16, #tpu.memory_space<vmem>>, vector<128x128xbf16>
    %cst_10 = arith.constant dense<0.000000e+00> : vector<128x128xf32>
    %20 = tpu.matmul %18, %19, %cst_10 {dimension_numbers = #tpu.dot_dimension_numbers<[1], [0], [0], [1], [0, 0, 1, 1], [], []>} : vector<128x128xbf16>, vector<128x128xbf16>, vector<128x128xf32> -> vector<128x128xf32>
    %21 = vector.shape_cast %20 : vector<128x128xf32> to vector<8x16x128xf32>
    %22 = arith.truncf %21 : vector<8x16x128xf32> to vector<8x16x128xbf16>
    %c0_11 = arith.constant 0 : index
    %c0_12 = arith.constant 0 : index
    %c0_13 = arith.constant 0 : index
    %c0_14 = arith.constant 0 : index
    %23 = vector.load %arg6[%c0_11, %c0_12, %c0_13, %c0_14] : memref<1x8x16x128xbf16, #tpu.memory_space<vmem>>, vector<1x8x16x128xbf16>
    %24 = vector.shape_cast %23 : vector<1x8x16x128xbf16> to vector<8x16x128xbf16>
    %25 = vector.shape_cast %22 : vector<8x16x128xbf16> to vector<1x8x16x128xbf16>
    tpu.vector_store %arg6[%c0_11, %c0_12, %c0_13, %c0_14], %25 {strides = array<i32>} : memref<1x8x16x128xbf16, #tpu.memory_space<vmem>>, vector<1x8x16x128xbf16>,
    %cst_15 = arith.constant dense<0.000000e+00> : vector<128xf32>
    %26 = vector.multi_reduction <add>, %20, %cst_15 [0] : vector<128x128xf32> to vector<128xf32>
    %27 = vector.shape_cast %26 : vector<128xf32> to vector<1x128xf32>
    %c0_16 = arith.constant 0 : index
    %c0_17 = arith.constant 0 : index
    %c0_18 = arith.constant 0 : index
    %28 = vector.load %arg7[%c0_16, %c0_17, %c0_18] : memref<1x2x128xf32, #tpu.memory_space<vmem>>, vector<1x1x128xf32>
    %29 = vector.shape_cast %28 : vector<1x1x128xf32> to vector<1x128xf32>
    %30 = vector.shape_cast %27 : vector<1x128xf32> to vector<1x1x128xf32>
    tpu.vector_store %arg7[%c0_16, %c0_17, %c0_18], %30 {strides = array<i32>} : memref<1x2x128xf32, #tpu.memory_space<vmem>>, vector<1x1x128xf32>,
    %31 = arith.mulf %20, %20 : vector<128x128xf32>
    %cst_19 = arith.constant dense<0.000000e+00> : vector<128xf32>
    %32 = vector.multi_reduction <add>, %31, %cst_19 [0] : vector<128x128xf32> to vector<128xf32>
    %33 = vector.shape_cast %32 : vector<128xf32> to vector<1x128xf32>
    %c0_20 = arith.constant 0 : index
    %c1 = arith.constant 1 : index
    %c0_21 = arith.constant 0 : index
    %34 = vector.load %arg7[%c0_20, %c1, %c0_21] : memref<1x2x128xf32, #tpu.memory_space<vmem>>, vector<1x1x128xf32>
    %35 = vector.shape_cast %34 : vector<1x1x128xf32> to vector<1x128xf32>
    %36 = vector.shape_cast %33 : vector<1x128xf32> to vector<1x1x128xf32>
    tpu.vector_store %arg7[%c0_20, %c1, %c0_21], %36 {strides = array<i32>} : memref<1x2x128xf32, #tpu.memory_space<vmem>>, vector<1x1x128xf32>,
    return
  }
  func.func @transform_0(%arg0: i32, %arg1: i32) -> (i32, i32, i32, i32) {
    %c0_i32 = arith.constant 0 : i32
    %c0_i32_0 = arith.constant 0 : i32
    %c0_i32_1 = arith.constant 0 : i32
    return %arg0, %arg1, %c0_i32, %c0_i32_0 : i32, i32, i32, i32
  }
  func.func @transform_1(%arg0: i32, %arg1: i32) -> (i32, i32) {
    %c0_i32 = arith.constant 0 : i32
    %c0_i32_0 = arith.constant 0 : i32
    %c0_i32_1 = arith.constant 0 : i32
    return %c0_i32, %c0_i32_0 : i32, i32
  }
  func.func @transform_2(%arg0: i32, %arg1: i32) -> (i32, i32) {
    %c0_i32 = arith.constant 0 : i32
    %c0_i32_0 = arith.constant 0 : i32
    %c0_i32_1 = arith.constant 0 : i32
    return %c0_i32, %c0_i32_0 : i32, i32
  }
  func.func @transform_3(%arg0: i32, %arg1: i32) -> (i32, i32) {
    %c0_i32 = arith.constant 0 : i32
    %c0_i32_0 = arith.constant 0 : i32
    %c0_i32_1 = arith.constant 0 : i32
    return %c0_i32, %c0_i32_0 : i32, i32
  }
  func.func @transform_4(%arg0: i32, %arg1: i32) -> (i32, i32, i32, i32) {
    %c0_i32 = arith.constant 0 : i32
    %c0_i32_0 = arith.constant 0 : i32
    %c0_i32_1 = arith.constant 0 : i32
    return %arg0, %arg1, %c0_i32, %c0_i32_0 : i32, i32, i32, i32
  }
  func.func @transform_5(%arg0: i32, %arg1: i32) -> (i32, i32, i32) {
    %c2_i32 = arith.constant 2 : i32
    %0 = arith.muli %arg0, %c2_i32 : i32
    %1 = arith.addi %0, %arg1 : i32
    %c0_i32 = arith.constant 0 : i32
    %c0_i32_0 = arith.constant 0 : i32
    %c0_i32_1 = arith.constant 0 : i32
    return %1, %c0_i32, %c0_i32_0 : i32, i32, i32
  }
}

module attributes {stable_mosaic.version = 11 : i64} {
  func.func @_finalize_kernel(%arg0: i32, %arg1: i32, %arg2: memref<1x8x16x128xbf16, #tpu.memory_space<vmem>>, %arg3: memref<1x128xf32, #tpu.memory_space<vmem>>, %arg4: memref<1x128xf32, #tpu.memory_space<vmem>>, %arg5: memref<1x8x16x128xf32, #tpu.memory_space<vmem>>, %arg6: memref<1x8x16x128xf32, #tpu.memory_space<vmem>>) attributes {dimension_semantics = [#tpu.dimension_semantics<parallel>, #tpu.dimension_semantics<parallel>], iteration_bounds = array<i64: 2, 2>, scalar_prefetch = 0 : i64, scratch_operands = 0 : i64, tpu.core_type = #tpu.core_type<tc>, window_params = [{transform_indices = @transform_0, window_bounds = array<i64: 1, 8, 16, 128>}, {pipeline_mode = #tpu.pipeline_mode<synchronous>, transform_indices = @transform_1, window_bounds = array<i64: 1, 128>}, {pipeline_mode = #tpu.pipeline_mode<synchronous>, transform_indices = @transform_2, window_bounds = array<i64: 1, 128>}, {transform_indices = @transform_3, window_bounds = array<i64: 1, 8, 16, 128>}, {transform_indices = @transform_4, window_bounds = array<i64: 1, 8, 16, 128>}]} {
    %c0 = arith.constant 0 : index
    %c0_0 = arith.constant 0 : index
    %c0_1 = arith.constant 0 : index
    %c0_2 = arith.constant 0 : index
    %0 = vector.load %arg2[%c0, %c0_0, %c0_1, %c0_2] : memref<1x8x16x128xbf16, #tpu.memory_space<vmem>>, vector<1x8x16x128xbf16>
    %1 = vector.shape_cast %0 : vector<1x8x16x128xbf16> to vector<8x16x128xbf16>
    %2 = arith.extf %1 : vector<8x16x128xbf16> to vector<8x16x128xf32>
    %c0_3 = arith.constant 0 : index
    %c0_4 = arith.constant 0 : index
    %3 = vector.load %arg3[%c0_3, %c0_4] : memref<1x128xf32, #tpu.memory_space<vmem>>, vector<1x128xf32>
    %4 = vector.shape_cast %3 : vector<1x128xf32> to vector<128xf32>
    %5 = vector.shape_cast %4 : vector<128xf32> to vector<1x1x128xf32>
    %6 = vector.broadcast %5 : vector<1x1x128xf32> to vector<8x16x128xf32>
    %7 = arith.mulf %2, %6 : vector<8x16x128xf32>
    %c0_5 = arith.constant 0 : index
    %c0_6 = arith.constant 0 : index
    %8 = vector.load %arg4[%c0_5, %c0_6] : memref<1x128xf32, #tpu.memory_space<vmem>>, vector<1x128xf32>
    %9 = vector.shape_cast %8 : vector<1x128xf32> to vector<128xf32>
    %10 = vector.shape_cast %9 : vector<128xf32> to vector<1x1x128xf32>
    %11 = vector.broadcast %10 : vector<1x1x128xf32> to vector<8x16x128xf32>
    %12 = arith.addf %7, %11 : vector<8x16x128xf32>
    %c0_7 = arith.constant 0 : index
    %c0_8 = arith.constant 0 : index
    %c0_9 = arith.constant 0 : index
    %c0_10 = arith.constant 0 : index
    %13 = vector.load %arg5[%c0_7, %c0_8, %c0_9, %c0_10] : memref<1x8x16x128xf32, #tpu.memory_space<vmem>>, vector<1x8x16x128xf32>
    %14 = vector.shape_cast %13 : vector<1x8x16x128xf32> to vector<8x16x128xf32>
    %15 = arith.addf %12, %14 : vector<8x16x128xf32>
    %c0_11 = arith.constant 0 : index
    %c0_12 = arith.constant 0 : index
    %c0_13 = arith.constant 0 : index
    %c0_14 = arith.constant 0 : index
    %16 = vector.load %arg6[%c0_11, %c0_12, %c0_13, %c0_14] : memref<1x8x16x128xf32, #tpu.memory_space<vmem>>, vector<1x8x16x128xf32>
    %17 = vector.shape_cast %16 : vector<1x8x16x128xf32> to vector<8x16x128xf32>
    %18 = vector.shape_cast %15 : vector<8x16x128xf32> to vector<1x8x16x128xf32>
    tpu.vector_store %arg6[%c0_11, %c0_12, %c0_13, %c0_14], %18 {strides = array<i32>} : memref<1x8x16x128xf32, #tpu.memory_space<vmem>>, vector<1x8x16x128xf32>,
    return
  }
  func.func @transform_0(%arg0: i32, %arg1: i32) -> (i32, i32, i32, i32) {
    %c0_i32 = arith.constant 0 : i32
    %c0_i32_0 = arith.constant 0 : i32
    %c0_i32_1 = arith.constant 0 : i32
    return %arg0, %arg1, %c0_i32, %c0_i32_0 : i32, i32, i32, i32
  }
  func.func @transform_1(%arg0: i32, %arg1: i32) -> (i32, i32) {
    %c0_i32 = arith.constant 0 : i32
    %c0_i32_0 = arith.constant 0 : i32
    %c0_i32_1 = arith.constant 0 : i32
    return %c0_i32, %c0_i32_0 : i32, i32
  }
  func.func @transform_2(%arg0: i32, %arg1: i32) -> (i32, i32) {
    %c0_i32 = arith.constant 0 : i32
    %c0_i32_0 = arith.constant 0 : i32
    %c0_i32_1 = arith.constant 0 : i32
    return %c0_i32, %c0_i32_0 : i32, i32
  }
  func.func @transform_3(%arg0: i32, %arg1: i32) -> (i32, i32, i32, i32) {
    %c0_i32 = arith.constant 0 : i32
    %c0_i32_0 = arith.constant 0 : i32
    %c0_i32_1 = arith.constant 0 : i32
    return %arg0, %arg1, %c0_i32, %c0_i32_0 : i32, i32, i32, i32
  }
  func.func @transform_4(%arg0: i32, %arg1: i32) -> (i32, i32, i32, i32) {
    %c0_i32 = arith.constant 0 : i32
    %c0_i32_0 = arith.constant 0 : i32
    %c0_i32_1 = arith.constant 0 : i32
    return %arg0, %arg1, %c0_i32, %c0_i32_0 : i32, i32, i32, i32
  }
}

</mosaic_0001>

<bundles_post_ra>
// kernel: mbconv_forward.7
= control target key start
LH: loop header
LB: loop body
LE: loop exit
PB: predicated region body
PF: predicated region fallthrough
CT: control target
= control target key end

     0   :  { %s692_s15 = smov 0   ;;  %s694_s16 = smov 0   ;;  %s842_s0 = inlined_call_operand.vmem [shape: bf16[2,16,16,128], index: 0, kind: input, shape index: {}]   ;;  %s843_s1 = inlined_call_operand.vmem [shape: f32[1,128], index: 1, kind: input, shape index: {}]   ;;  %s844_s2 = inlined_call_operand.vmem [shape: f32[1,128], index: 2, kind: input, shape index: {}]   ;;  %s845_s3 = inlined_call_operand.vmem [shape: f32[2,16,16,128], index: 3, kind: input, shape index: {}]   ;;  %s846_s4 = inlined_call_operand.vmem [shape: f32[2,16,16,128], index: 4, kind: output, shape index: {}]  }
   0x1   :  { %s696_s17 = smov 0   ;;  %s698_s18 = smov 0  }
   0x2   :  { %s700_s19 = smov 0  }
   0x3 LB: > { %s23_s20 = sadd.s32 1, %s657_s17  ;;  %s26_s21 = sadd.s32 1, %s661_s18  ;;  %s665_s19 = sphi %s700_s19, %s14_s19   ;;  %s661_s18 = sphi %s698_s18, %s850_s18   ;;  %s657_s17 = sphi %s696_s17, %s849_s17   ;;  %s653_s16 = sphi %s694_s16, %s848_s16   ;;  %s649_s15 = sphi %s692_s15, %s847_s15  }
   0x4   : > { %p24_p0 = scmp.ge.s32.totalorder %s23_s20, 2  ;;  %p531_p1 = scmp.ge.s32.totalorder %s665_s19, 1 }
   0x5   : > { %p202_p2 = scmp.lt.s32.totalorder %s665_s19, 5 }
   0x6   : > { %s852_s20 = smov (%p24_p0, %s23_s20), 0  ;;  %s854_s21 = smov (!%p24_p0, %s26_s21), %s661_s18 }
   0x7   : > { %p203_p3 = pnand %p531_p1, %p202_p2  ;;  %p28_p4 = scmp.ge.s32.totalorder %s854_s21, 2 }
   0x8   : > { %s532_s22 = sshll.u32 (!%p203_p3), %s649_s15, 3  ;;  %p249_p5 = scmp.lt.s32.totalorder (!%p203_p3), %s653_s16, 1 }
   0x9   : > { %s856_s21 = smov (%p28_p4, %s854_s21), 0  ;;  %206 = sbr.rel (%p203_p3) target bundleno = 40 (0x28), region = 36 }
   0xa   : > { %p251_p6 = scmp.lt.s32.totalorder (!%p203_p3), %s532_s22, 15 }
   0xe   : > { %s858_s16 = smov (!%p249_p5, %s653_s16), 1  ;;  %s860_s22 = smov (!%p251_p6, %s532_s22), 15  ;;  %v735_v1 = vld [vmem:[%s843_s1] ss:$0 sm:$0xff] }
   0xf   : > { %s534_s23 = sshll.u32 %s858_s16, 5  ;;  %s533_s24 = sshll.u32 %s860_s22, 1  ;;  %v748_v5 = vld [vmem:[%s844_s2] ss:$0 sm:$0xff] }
  0x10   : > { %s722_s25 = sadd.s32 %s534_s23, %s533_s24 }
  0x11   : > { %s535_s26 = sshll.u32 %s722_s25, 2  ;;  %s539_s27 = sshll.u32 %s722_s25, 3 }
  0x12   : > { %s729_s30 = scalar_lea.vmem %s842_s0, %s535_s26  ;;  %s742_s9 = scalar_lea.vmem %s845_s3, %s539_s27 }
  0x13   : > { %v549_v0 = vld [vmem:[%s729_s30] sm:$0xff]   ;;  %v580_v4 = vld [vmem:[%s729_s30 + $0x8] sm:$0xff]   ;;  %v581_v8 = vld [vmem:[%s729_s30 + $0x10] sm:$0xff]   ;;  %s769_s14 = scalar_lea.vmem %s846_s4, %s539_s27 }
  0x14   : > { %v550_v2 = vunpack.c.l.bf16 %v549_v0  ;;  %v551_v3 = vunpack.c.h.bf16 %v549_v0  ;;  %v554_v6 = vunpack.c.l.bf16 %v580_v4  ;;  %v555_v7 = vunpack.c.h.bf16 %v580_v4  ;;  %v582_v13 = vld [vmem:[%s729_s30 + $0x18] sm:$0xff]   ;;  %v359_v14 = vld [vmem:[%s742_s9] sm:$0xff]  ;;  %v360_v15 = vld [vmem:[%s742_s9 + $0x8] sm:$0xff] }
  0x15   : > { %v558_v11 = vunpack.c.l.bf16 %v581_v8  ;;  %v559_v12 = vunpack.c.h.bf16 %v581_v8  ;;  %v562_v18 = vunpack.c.l.bf16 %v582_v13  ;;  %v563_v19 = vunpack.c.h.bf16 %v582_v13  ;;  %v361_v22 = vld [vmem:[%s742_s9 + $0x10] sm:$0xff]  ;;  %v362_v23 = vld [vmem:[%s742_s9 + $0x18] sm:$0xff]  ;;  %v363_v28 = vld [vmem:[%s742_s9 + $0x20] sm:$0xff] }
  0x16   : > { %v320_v9 = vmul.f32 %v550_v2, %v735_v1  ;;  %v321_v10 = vmul.f32 %v551_v3, %v735_v1  ;;  %v322_v16 = vmul.f32 %v554_v6, %v735_v1  ;;  %v323_v17 = vmul.f32 %v555_v7, %v735_v1  ;;  %v364_v29 = vld [vmem:[%s742_s9 + $0x28] sm:$0xff]  ;;  %v583_v32 = vld [vmem:[%s729_s30 + $0x20] sm:$0xff]   ;;  %v365_v37 = vld [vmem:[%s742_s9 + $0x30] sm:$0xff] }
  0x17   : > { %v324_v24 = vmul.f32 %v558_v11, %v735_v1  ;;  %v325_v25 = vmul.f32 %v559_v12, %v735_v1  ;;  %v326_v30 = vmul.f32 %v562_v18, %v735_v1  ;;  %v327_v31 = vmul.f32 %v563_v19, %v735_v1  ;;  %v366_v38 = vld [vmem:[%s742_s9 + $0x38] sm:$0xff]  ;;  %v584_v39 = vld [vmem:[%s729_s30 + $0x28] sm:$0xff]   ;;  %v585_v44 = vld [vmem:[%s729_s30 + $0x30] sm:$0xff]  }
  0x18   : > { %v343_v20 = vadd.f32 %v748_v5, %v320_v9  ;;  %v344_v21 = vadd.f32 %v748_v5, %v321_v10  ;;  %v345_v26 = vadd.f32 %v748_v5, %v322_v16  ;;  %v346_v27 = vadd.f32 %v748_v5, %v323_v17  ;;  %v586_v49 = vld [vmem:[%s729_s30 + $0x38] sm:$0xff]   ;;  %v367_v58 = vld [vmem:[%s742_s9 + $0x40] sm:$0xff]  ;;  %v368_v59 = vld [vmem:[%s742_s9 + $0x48] sm:$0xff] }
  0x19   : > { %v347_v35 = vadd.f32 %v748_v5, %v324_v24  ;;  %v348_v36 = vadd.f32 %v748_v5, %v325_v25  ;;  %v349_v42 = vadd.f32 %v748_v5, %v326_v30  ;;  %v350_v43 = vadd.f32 %v748_v5, %v327_v31  ;;  %v369_v3 = vld [vmem:[%s742_s9 + $0x50] sm:$0xff]  ;;  %v370_v4 = vld [vmem:[%s742_s9 + $0x58] sm:$0xff]  ;;  %v371_v10 = vld [vmem:[%s742_s9 + $0x60] sm:$0xff] }
  0x1a   : > { %v375_v33 = vadd.f32 %v359_v14, %v343_v20  ;;  %v376_v34 = vadd.f32 %v360_v15, %v344_v21  ;;  %v377_v40 = vadd.f32 %v361_v22, %v345_v26  ;;  %v378_v41 = vadd.f32 %v362_v23, %v346_v27  ;;  %v372_v11 = vld [vmem:[%s742_s9 + $0x68] sm:$0xff]  ;;  %v373_v18 = vld [vmem:[%s742_s9 + $0x70] sm:$0xff]  ;;  %v374_v19 = vld [vmem:[%s742_s9 + $0x78] sm:$0xff] }
  0x1b   : > { %v379_v45 = vadd.f32 %v363_v28, %v347_v35  ;;  %v380_v46 = vadd.f32 %v364_v29, %v348_v36  ;;  %v566_v47 = vunpack.c.l.bf16 %v583_v32  ;;  %v567_v48 = vunpack.c.h.bf16 %v583_v32 }
  0x1c   : > { %391 = vst [vmem:[%s769_s14] sm:$0xff] %v375_v33  ;;  %392 = vst [vmem:[%s769_s14 + $0x8] sm:$0xff] %v376_v34  ;;  %v381_v50 = vadd.f32 %v365_v37, %v349_v42  ;;  %v382_v51 = vadd.f32 %v366_v38, %v350_v43  ;;  %v570_v52 = vunpack.c.l.bf16 %v584_v39  ;;  %v571_v53 = vunpack.c.h.bf16 %v584_v39 }
  0x1d   : > { %393 = vst [vmem:[%s769_s14 + $0x10] sm:$0xff] %v377_v40  ;;  %394 = vst [vmem:[%s769_s14 + $0x18] sm:$0xff] %v378_v41  ;;  %v328_v54 = vmul.f32 %v566_v47, %v735_v1  ;;  %v329_v55 = vmul.f32 %v567_v48, %v735_v1  ;;  %v574_v56 = vunpack.c.l.bf16 %v585_v44  ;;  %v575_v57 = vunpack.c.h.bf16 %v585_v44 }
  0x1e   : > { %395 = vst [vmem:[%s769_s14 + $0x20] sm:$0xff] %v379_v45  ;;  %396 = vst [vmem:[%s769_s14 + $0x28] sm:$0xff] %v380_v46  ;;  %v330_v60 = vmul.f32 %v570_v52, %v735_v1  ;;  %v331_v61 = vmul.f32 %v571_v53, %v735_v1  ;;  %v578_v62 = vunpack.c.l.bf16 %v586_v49  ;;  %v579_v63 = vunpack.c.h.bf16 %v586_v49 }
  0x1f   : > { %397 = vst [vmem:[%s769_s14 + $0x30] sm:$0xff] %v381_v50  ;;  %398 = vst [vmem:[%s769_s14 + $0x38] sm:$0xff] %v382_v51  ;;  %v351_v0 = vadd.f32 %v748_v5, %v328_v54  ;;  %v352_v2 = vadd.f32 %v748_v5, %v329_v55  ;;  %v332_v6 = vmul.f32 %v574_v56, %v735_v1 }
  0x20   : > { %v333_v7 = vmul.f32 %v575_v57, %v735_v1  ;;  %v353_v8 = vadd.f32 %v748_v5, %v330_v60  ;;  %v354_v9 = vadd.f32 %v748_v5, %v331_v61  ;;  %v334_v12 = vmul.f32 %v578_v62, %v735_v1 }
  0x21   : > { %v335_v13 = vmul.f32 %v579_v63, %v735_v1  ;;  %v383_v14 = vadd.f32 %v367_v58, %v351_v0  ;;  %v384_v15 = vadd.f32 %v368_v59, %v352_v2  ;;  %v355_v16 = vadd.f32 %v748_v5, %v332_v6 }
  0x22   : > { %v356_v17 = vadd.f32 %v748_v5, %v333_v7  ;;  %v385_v20 = vadd.f32 %v369_v3, %v353_v8  ;;  %v386_v21 = vadd.f32 %v370_v4, %v354_v9  ;;  %v357_v22 = vadd.f32 %v748_v5, %v334_v12 }
  0x23   : > { %v358_v23 = vadd.f32 %v748_v5, %v335_v13  ;;  %399 = vst [vmem:[%s769_s14 + $0x40] sm:$0xff] %v383_v14  ;;  %400 = vst [vmem:[%s769_s14 + $0x48] sm:$0xff] %v384_v15  ;;  %v387_v1 = vadd.f32 %v371_v10, %v355_v16 }
  0x24   : > { %v388_v24 = vadd.f32 %v372_v11, %v356_v17  ;;  %401 = vst [vmem:[%s769_s14 + $0x50] sm:$0xff] %v385_v20  ;;  %402 = vst [vmem:[%s769_s14 + $0x58] sm:$0xff] %v386_v21  ;;  %v389_v25 = vadd.f32 %v373_v18, %v357_v22 }
  0x25   : > { %v390_v26 = vadd.f32 %v374_v19, %v358_v23  ;;  %403 = vst [vmem:[%s769_s14 + $0x60] sm:$0xff] %v387_v1 }
  0x26   : > { %404 = vst [vmem:[%s769_s14 + $0x68] sm:$0xff] %v388_v24  ;;  %405 = vst [vmem:[%s769_s14 + $0x70] sm:$0xff] %v389_v25 }
  0x27   : > { %406 = vst [vmem:[%s769_s14 + $0x78] sm:$0xff] %v390_v26 }
  0x28 PF: > { %s14_s19 = sadd.s32 1, %s665_s19   ;;  %s847_s15 = smov %s657_s17 }
  0x29   : > { %p11_p7 = scmp.ge.s32.totalorder %s14_s19, 6   ;;  %s848_s16 = smov %s661_s18 }
  0x2a   : > { %s849_s17 = smov %s852_s20  ;;  %s850_s18 = smov %s856_s21 }
  0x2b   :  { %13 = sbr.rel (!%p11_p7) target bundleno = 3 (0x3), region = 69 }

// kernel: mbconv_forward.6
= control target key start
LH: loop header
LB: loop body
LE: loop exit
PB: predicated region body
PF: predicated region fallthrough
CT: control target
= control target key end

     0   :  { %s1175_s18 = smov 0   ;;  %s1177_s19 = smov 0   ;;  %s1337_s0 = inlined_call_operand.vmem [shape: bf16[2,16,16,128], index: 0, kind: input, shape index: {}]   ;;  %s1338_s1 = inlined_call_operand.vmem [shape: f32[1,128], index: 1, kind: input, shape index: {}]   ;;  %s1339_s2 = inlined_call_operand.vmem [shape: f32[1,128], index: 2, kind: input, shape index: {}]   ;;  %s1340_s3 = inlined_call_operand.vmem [shape: bf16[128,128], index: 3, kind: input, shape index: {}]   ;;  %s1341_s4 = inlined_call_operand.vmem [shape: bf16[2,16,16,128], index: 4, kind: output, shape index: {0}]   ;;  %s1342_s5 = inlined_call_operand.vmem [shape: f32[4,2,128], index: 5, kind: output, shape index: {1}]  }
   0x1   :  { %s1179_s20 = smov 0   ;;  %s1181_s21 = smov 0  }
   0x2   :  { %s1183_s22 = smov 0  }
   0x3 LB: > { %s25_s23 = sadd.s32 1, %s1135_s20  ;;  %s28_s24 = sadd.s32 1, %s1139_s21  ;;  %s1143_s22 = sphi %s1183_s22, %s16_s22   ;;  %s1139_s21 = sphi %s1181_s21, %s1346_s21   ;;  %s1135_s20 = sphi %s1179_s20, %s1345_s20   ;;  %s1131_s19 = sphi %s1177_s19, %s1344_s19   ;;  %s1127_s18 = sphi %s1175_s18, %s1343_s18  }
   0x4   : > { %p26_p0 = scmp.ge.s32.totalorder %s25_s23, 2  ;;  %p852_p1 = scmp.ge.s32.totalorder %s1143_s22, 1 }
   0x5   : > { %p216_p2 = scmp.lt.s32.totalorder %s1143_s22, 5 }
   0x6   : > { %s1348_s23 = smov (%p26_p0, %s25_s23), 0  ;;  %s1350_s24 = smov (!%p26_p0, %s28_s24), %s1139_s21 }
   0x7   : > { %p217_p3 = pnand %p852_p1, %p216_p2  ;;  %p30_p4 = scmp.ge.s32.totalorder %s1350_s24, 2 }
   0x8   : > { %s853_s27 = sshll.u32 (!%p217_p3), %s1127_s18, 3  ;;  %p261_p5 = scmp.lt.s32.totalorder (!%p217_p3), %s1131_s19, 1 }
   0x9   : > { %s1352_s24 = smov (%p30_p4, %s1350_s24), 0  ;;  %220 = sbr.rel (%p217_p3) target bundleno = 291 (0x123), region = 36 }
   0xa   : > { %p263_p6 = scmp.lt.s32.totalorder (!%p217_p3), %s853_s27, 15 }
   0xe   : > { %v1097_v0 = vld [vmem:[%s1340_s3 + $0x38] sm:$0xff]   ;;  %v1098_v1 = vld [vmem:[%s1340_s3 + $0x30] sm:$0xff]   ;;  %s262_s30 = scalar_select %p261_p5, %s1131_s19, 1  ;;  %v1099_v2 = vld [vmem:[%s1340_s3 + $0x28] sm:$0xff]  }
   0xf   : > { %1009 = vmatprep.subr.bf16.mxu0 %v1097_v0  ;;  %1041 = vmatprep.subr.bf16.mxu1 %v1097_v0  ;;  %s1354_s27 = smov (!%p263_p6, %s853_s27), 15  ;;  %v1100_v3 = vld [vmem:[%s1340_s3 + $0x20] sm:$0xff]   ;;  %v1101_v13 = vld [vmem:[%s1340_s3 + $0x18] sm:$0xff]   ;;  %v1102_v31 = vld [vmem:[%s1340_s3 + $0x10] sm:$0xff]  }
  0x10   : > { %1010 = vmatpush3.bf16.msra.mxu0 %v1097_v0  ;;  %1049 = vmatpush3.bf16.msra.mxu1 %v1097_v0  ;;  %s855_s8 = sshll.u32 %s262_s30, 5  ;;  %s854_s9 = sshll.u32 %s1354_s27, 1  ;;  %v1237_v4 = vld [vmem:[%s1338_s1] ss:$0 sm:$0xff]  ;;  %v1103_v46 = vld [vmem:[%s1340_s3 + $0x8] sm:$0xff]  }
  0x11   : > { %1011 = vmatprep.subr.bf16.mxu0 %v1098_v1  ;;  %1042 = vmatprep.subr.bf16.mxu1 %v1098_v1  ;;  %s1221_s10 = sadd.s32 %s855_s8, %s854_s9  ;;  %v1249_v14 = vld [vmem:[%s1339_s2] ss:$0 sm:$0xff] }
  0x12   : > { %s856_s13 = sshll.u32 %s1221_s10, 2  ;;  %v1104_v63 = vld [vmem:[%s1340_s3] sm:$0xff]   ;;  %s861_s10 = sshll.u32 %s1131_s19, 1 }
  0x13   : > { %s1232_s16 = scalar_lea.vmem %s1337_s0, %s856_s13  ;;  %s1307_s15 = scalar_lea.vmem %s1341_s4, %s856_s13 }
  0x14   : > { %1012 = vmatpush3.bf16.msra.mxu0 %v1098_v1  ;;  %1050 = vmatpush3.bf16.msra.mxu1 %v1098_v1  ;;  %v908_v5 = vld [vmem:[%s1232_s16] sm:$0xff]   ;;  %v979_v6 = vld [vmem:[%s1232_s16 + $0x8] sm:$0xff]   ;;  %v980_v7 = vld [vmem:[%s1232_s16 + $0x10] sm:$0xff]   ;;  %s283_s13 = sadd.s32 %s1127_s18, %s861_s10 }
  0x15   : > { %1013 = vmatprep.subr.bf16.mxu0 %v1099_v2  ;;  %1043 = vmatprep.subr.bf16.mxu1 %v1099_v2  ;;  %v909_v8 = vunpack.c.l.bf16 %v908_v5  ;;  %v910_v9 = vunpack.c.h.bf16 %v908_v5  ;;  %v913_v10 = vunpack.c.l.bf16 %v979_v6  ;;  %v914_v11 = vunpack.c.h.bf16 %v979_v6  ;;  %v981_v12 = vld [vmem:[%s1232_s16 + $0x18] sm:$0xff]   ;;  %v982_v23 = vld [vmem:[%s1232_s16 + $0x20] sm:$0xff]   ;;  %v983_v45 = vld [vmem:[%s1232_s16 + $0x28] sm:$0xff]   ;;  %p284_p7 = scmp.lt.s32.totalorder %s283_s13, 3 }
  0x16   : > { %v917_v15 = vunpack.c.l.bf16 %v980_v7  ;;  %v918_v16 = vunpack.c.h.bf16 %v980_v7  ;;  %v921_v17 = vunpack.c.l.bf16 %v981_v12  ;;  %v922_v18 = vunpack.c.h.bf16 %v981_v12  ;;  %v984_v49 = vld [vmem:[%s1232_s16 + $0x30] sm:$0xff]   ;;  %v985_v54 = vld [vmem:[%s1232_s16 + $0x38] sm:$0xff]  }
  0x17   : > { %v330_v19 = vmul.f32 %v909_v8, %v1237_v4  ;;  %v331_v20 = vmul.f32 %v910_v9, %v1237_v4  ;;  %v332_v21 = vmul.f32 %v913_v10, %v1237_v4  ;;  %v333_v22 = vmul.f32 %v914_v11, %v1237_v4  ;;  %s1356_s13 = smov (!%p284_p7, %s283_s13), 3 }
  0x18   : > { %1014 = vmatpush3.bf16.msra.mxu0 %v1099_v2  ;;  %1051 = vmatpush3.bf16.msra.mxu1 %v1099_v2  ;;  %v334_v24 = vmul.f32 %v917_v15, %v1237_v4  ;;  %v335_v25 = vmul.f32 %v918_v16, %v1237_v4  ;;  %v336_v26 = vmul.f32 %v921_v17, %v1237_v4  ;;  %v925_v35 = vunpack.c.l.bf16 %v982_v23  ;;  %s862_s16 = sshll.u32 %s1356_s13, 1 }
  0x19   : > { %1015 = vmatprep.subr.bf16.mxu0 %v1100_v3  ;;  %1044 = vmatprep.subr.bf16.mxu1 %v1100_v3  ;;  %v337_v27 = vmul.f32 %v922_v18, %v1237_v4  ;;  %v353_v28 = vadd.f32 %v1249_v14, %v330_v19  ;;  %v354_v29 = vadd.f32 %v1249_v14, %v331_v20  ;;  %v926_v39 = vunpack.c.h.bf16 %v982_v23  ;;  %s287_s17 = scalar_lea.vmem %s1342_s5, %s862_s16 }
  0x1a   : > { %v355_v30 = vadd.f32 %v1249_v14, %v332_v21  ;;  %v356_v32 = vadd.f32 %v1249_v14, %v333_v22  ;;  %v357_v33 = vadd.f32 %v1249_v14, %v334_v24  ;;  %v358_v34 = vadd.f32 %v1249_v14, %v335_v25 }
  0x1b   : > { %v369_v36 = vmax.f32 %v353_v28, 0.0  ;;  %v370_v37 = vmax.f32 %v354_v29, 0.0  ;;  %v1270_v42 = vadd.f32 %v1249_v14, %v336_v26  ;;  %v1277_v48 = vadd.f32 %v1249_v14, %v337_v27 }
  0x1c   : > { %1016 = vmatpush3.bf16.msra.mxu0 %v1100_v3  ;;  %1052 = vmatpush3.bf16.msra.mxu1 %v1100_v3  ;;  %v371_v38 = vmax.f32 %v355_v30, 0.0  ;;  %v372_v40 = vmax.f32 %v356_v32, 0.0  ;;  %v373_v41 = vmax.f32 %v357_v33, 0.0  ;;  %v374_v47 = vmax.f32 %v358_v34, 0.0 }
  0x1d   : > { %1017 = vmatprep.subr.bf16.mxu0 %v1101_v13  ;;  %1045 = vmatprep.subr.bf16.mxu1 %v1101_v13  ;;  %v385_v43 = vmin.f32 %v369_v36, 6.0  ;;  %v386_v44 = vmin.f32 %v370_v37, 6.0  ;;  %v338_v52 = vmul.f32 %v925_v35, %v1237_v4  ;;  %v339_v53 = vmul.f32 %v926_v39, %v1237_v4 }
  0x1e   : > { %v387_v51 = vmin.f32 %v371_v38, 6.0  ;;  %v388_v55 = vmin.f32 %v372_v40, 6.0  ;;  %v389_v56 = vmin.f32 %v373_v41, 6.0  ;;  %v375_v57 = vmax.f32 %v1270_v42, 0.0 }
  0x1f   : > { %v401_v50 = vpack.c.bf16 %v386_v44, %v385_v43  ;;  %v929_v58 = vunpack.c.l.bf16 %v983_v45  ;;  %v361_v59 = vadd.f32 %v1249_v14, %v338_v52  ;;  %v362_v60 = vadd.f32 %v1249_v14, %v339_v53 }
  0x20   : > { %1018 = vmatpush3.bf16.msra.mxu0 %v1101_v13  ;;  %1053 = vmatpush3.bf16.msra.mxu1 %v1101_v13  ;;  %v930_v61 = vunpack.c.h.bf16 %v983_v45  ;;  %v933_v62 = vunpack.c.l.bf16 %v984_v49  ;;  %v390_v0 = vmin.f32 %v374_v47, 6.0  ;;  %v934_v2 = vunpack.c.h.bf16 %v984_v49 }
  0x21   : > { %1019 = vmatprep.subr.bf16.mxu0 %v1102_v31  ;;  %1046 = vmatprep.subr.bf16.mxu1 %v1102_v31  ;;  %v340_v1 = vmul.f32 %v929_v58, %v1237_v4  ;;  %v937_v3 = vunpack.c.l.bf16 %v985_v54  ;;  %v377_v5 = vmax.f32 %v361_v59, 0.0  ;;  %v378_v6 = vmax.f32 %v362_v60, 0.0 }
  0x22   : > { %1025 = vmatprep.mubr.bf16.mxu0 %v401_v50  ;;  %v341_v7 = vmul.f32 %v930_v61, %v1237_v4  ;;  %v342_v8 = vmul.f32 %v933_v62, %v1237_v4  ;;  %v343_v10 = vmul.f32 %v934_v2, %v1237_v4  ;;  %v938_v11 = vunpack.c.h.bf16 %v985_v54 }
  0x23   : > { %v363_v9 = vadd.f32 %v1249_v14, %v340_v1  ;;  %v344_v12 = vmul.f32 %v937_v3, %v1237_v4  ;;  %v393_v13 = vmin.f32 %v377_v5, 6.0  ;;  %v394_v15 = vmin.f32 %v378_v6, 6.0 }
  0x24   : > { %1020 = vmatpush3.bf16.msra.mxu0 %v1102_v31  ;;  %1054 = vmatpush3.bf16.msra.mxu1 %v1102_v31  ;;  %v364_v16 = vadd.f32 %v1249_v14, %v341_v7  ;;  %v365_v17 = vadd.f32 %v1249_v14, %v342_v8  ;;  %v366_v19 = vadd.f32 %v1249_v14, %v343_v10  ;;  %v376_v22 = vmax.f32 %v1277_v48, 0.0 }
  0x25   : > { %1021 = vmatprep.subr.bf16.mxu0 %v1103_v46  ;;  %1047 = vmatprep.subr.bf16.mxu1 %v1103_v46  ;;  %v379_v18 = vmax.f32 %v363_v9, 0.0  ;;  %v345_v20 = vmul.f32 %v938_v11, %v1237_v4  ;;  %v367_v21 = vadd.f32 %v1249_v14, %v344_v12  ;;  %v405_v23 = vpack.c.bf16 %v394_v15, %v393_v13 }
  0x26   : > { %v380_v24 = vmax.f32 %v364_v16, 0.0  ;;  %v381_v25 = vmax.f32 %v365_v17, 0.0  ;;  %v402_v26 = vpack.c.bf16 %v388_v55, %v387_v51  ;;  %v382_v28 = vmax.f32 %v366_v19, 0.0 }
  0x27   : > { %v395_v27 = vmin.f32 %v379_v18, 6.0  ;;  %v368_v29 = vadd.f32 %v1249_v14, %v345_v20  ;;  %v403_v30 = vpack.c.bf16 %v390_v0, %v389_v56  ;;  %v383_v33 = vmax.f32 %v367_v21, 0.0  ;;  %1033 = vmatprep.mubr.bf16.mxu1 %v405_v23 }
  0x28   : > { %1022 = vmatpush3.bf16.msra.mxu0 %v1103_v46  ;;  %1055 = vmatpush3.bf16.msra.mxu1 %v1103_v46  ;;  %v396_v31 = vmin.f32 %v380_v24, 6.0  ;;  %v397_v32 = vmin.f32 %v381_v25, 6.0  ;;  %v398_v4 = vmin.f32 %v382_v28, 6.0  ;;  %v391_v36 = vmin.f32 %v375_v57, 6.0 }
  0x29   : > { %1023 = vmatprep.subr.bf16.mxu0 %v1104_v63  ;;  %1048 = vmatprep.subr.bf16.mxu1 %v1104_v63  ;;  %v384_v34 = vmax.f32 %v368_v29, 0.0  ;;  %v392_v37 = vmin.f32 %v376_v22, 6.0  ;;  %v399_v39 = vmin.f32 %v383_v33, 6.0 }
  0x2a   : > { %v406_v35 = vpack.c.bf16 %v396_v31, %v395_v27  ;;  %v407_v38 = vpack.c.bf16 %v398_v4, %v397_v32 }
  0x2b   : > { %v400_v40 = vmin.f32 %v384_v34, 6.0  ;;  %v404_v14 = vpack.c.bf16 %v392_v37, %v391_v36 }
  0x2c   : > { %1024 = vmatpush3.bf16.msra.mxu0 %v1104_v63  ;;  %1056 = vmatpush3.bf16.msra.mxu1 %v1104_v63 }
  0x2d   : > { %v408_v41 = vpack.c.bf16 %v400_v40, %v399_v39 }
  0x2f   : > { %1026 = vmatmul.mubr.bf16.vlgmr.msra.gmra.mxu0 %v402_v26  ;;  %1034 = vmatmul.mubr.bf16.vlgmr.msra.gmra.mxu1 %v406_v35 }
  0x30   : > { %1029 = vmatprep.mubr.bf16.mxu0 %v403_v30  ;;  %1037 = vmatprep.mubr.bf16.mxu1 %v407_v38 }
  0x37   : > { %1030 = vmatmul.mubr.bf16.gmra.mxu0 %v404_v14  ;;  %1038 = vmatmul.mubr.bf16.gmra.mxu1 %v408_v41 }
  0xef   : > { %v1027_v42 = vpop.f32.mrf.mxu0  ;;  %v1035_v43 = vpop.f32.mrf.mxu1 }
  0xf0   : > { %v674_v58 = vmul.f32 %v1027_v42, %v1027_v42  ;;  %v682_v31 = vmul.f32 %v1035_v43, %v1035_v43 }
  0xf1   : > { %v507_v44 = vpop.f32.mrf.mxu0  ;;  %v539_v45 = vpop.f32.mrf.mxu1 }
  0xf2   : > { %v672_v51 = vmul.f32 %v507_v44, %v507_v44  ;;  %v680_v25 = vmul.f32 %v539_v45, %v539_v45 }
  0xf3   : > { %v1028_v46 = vpop.f32.mrf.mxu0  ;;  %v1036_v48 = vpop.f32.mrf.mxu1 }
  0xf4   : > { %v947_v47 = vpack.c.bf16 %v1028_v46, %v1027_v42  ;;  %v967_v50 = vpack.c.bf16 %v1036_v48, %v1035_v43  ;;  %v675_v63 = vmul.f32 %v1028_v46, %v1028_v46  ;;  %v683_v4 = vmul.f32 %v1036_v48, %v1036_v48 }
  0xf5   : > { %v510_v49 = vpop.f32.mrf.mxu0  ;;  %v542_v55 = vpop.f32.mrf.mxu1 }
  0xf6   : > { %986 = vst [vmem:[%s1307_s15 + $0x8] sm:$0xff] %v947_v47   ;;  %v942_v52 = vpack.c.bf16 %v510_v49, %v507_v44  ;;  %v650_v53 = vadd.f32 %v510_v49, %v507_v44  ;;  %v673_v54 = vmul.f32 %v510_v49, %v510_v49  ;;  %990 = vst [vmem:[%s1307_s15 + $0x28] sm:$0xff] %v967_v50  }
  0xf7   : > { %v1031_v56 = vpop.f32.mrf.mxu0  ;;  %v962_v57 = vpack.c.bf16 %v542_v55, %v539_v45  ;;  %v1039_v61 = vpop.f32.mrf.mxu1  ;;  %v681_v29 = vmul.f32 %v542_v55, %v542_v55 }
  0xf8   : > { %943 = vst [vmem:[%s1307_s15] sm:$0xff] %v942_v52   ;;  %v651_v59 = vadd.f32 %v1027_v42, %v650_v53  ;;  %v688_v60 = vadd.f32 %v673_v54, %v672_v51  ;;  %v678_v19 = vmul.f32 %v1031_v56, %v1031_v56  ;;  %v686_v41 = vmul.f32 %v1039_v61, %v1039_v61 }
  0xf9   : > { %v523_v62 = vpop.f32.mrf.mxu0  ;;  %989 = vst [vmem:[%s1307_s15 + $0x20] sm:$0xff] %v962_v57   ;;  %v555_v2 = vpop.f32.mrf.mxu1 }
  0xfa   : > { %v689_v0 = vadd.f32 %v688_v60, %v674_v58  ;;  %v652_v1 = vadd.f32 %v1028_v46, %v651_v59  ;;  %v676_v6 = vmul.f32 %v523_v62, %v523_v62  ;;  %v684_v37 = vmul.f32 %v555_v2, %v555_v2 }
  0xfb   : > { %v1032_v3 = vpop.f32.mrf.mxu0  ;;  %v1040_v9 = vpop.f32.mrf.mxu1 }
  0xfc   : > { %v653_v5 = vadd.f32 %v652_v1, %v523_v62  ;;  %v690_v7 = vadd.f32 %v689_v0, %v675_v63  ;;  %v957_v8 = vpack.c.bf16 %v1032_v3, %v1031_v56  ;;  %v977_v11 = vpack.c.bf16 %v1040_v9, %v1039_v61 }
  0xfd   : > { %v526_v10 = vpop.f32.mrf.mxu0  ;;  %v558_v17 = vpop.f32.mrf.mxu1  ;;  %v679_v22 = vmul.f32 %v1032_v3, %v1032_v3 }
  0xfe   : > { %v691_v12 = vadd.f32 %v690_v7, %v676_v6  ;;  %988 = vst [vmem:[%s1307_s15 + $0x18] sm:$0xff] %v957_v8   ;;  %v952_v13 = vpack.c.bf16 %v526_v10, %v523_v62  ;;  %v654_v15 = vadd.f32 %v653_v5, %v526_v10  ;;  %v677_v16 = vmul.f32 %v526_v10, %v526_v10 }
  0xff   : > { %992 = vst [vmem:[%s1307_s15 + $0x38] sm:$0xff] %v977_v11   ;;  %v972_v18 = vpack.c.bf16 %v558_v17, %v555_v2  ;;  %v685_v14 = vmul.f32 %v558_v17, %v558_v17 }
 0x100   : > { %987 = vst [vmem:[%s1307_s15 + $0x10] sm:$0xff] %v952_v13   ;;  %v655_v20 = vadd.f32 %v1031_v56, %v654_v15  ;;  %v692_v21 = vadd.f32 %v691_v12, %v677_v16 }
 0x101   : > { %991 = vst [vmem:[%s1307_s15 + $0x30] sm:$0xff] %v972_v18  }
 0x102   : > { %v656_v23 = vadd.f32 %v1032_v3, %v655_v20  ;;  %v693_v24 = vadd.f32 %v692_v21, %v678_v19 }
 0x104   : > { %v694_v26 = vadd.f32 %v693_v24, %v679_v22  ;;  %v657_v27 = vadd.f32 %v656_v23, %v539_v45  ;;  %v687_v45 = vmul.f32 %v1040_v9, %v1040_v9 }
 0x106   : > { %v658_v28 = vadd.f32 %v657_v27, %v542_v55  ;;  %v695_v30 = vadd.f32 %v694_v26, %v680_v25 }
 0x108   : > { %v659_v32 = vadd.f32 %v1035_v43, %v658_v28  ;;  %v696_v33 = vadd.f32 %v695_v30, %v681_v29 }
 0x10a   : > { %v697_v34 = vadd.f32 %v696_v33, %v682_v31  ;;  %v660_v35 = vadd.f32 %v1036_v48, %v659_v32 }
 0x10c   : > { %v661_v36 = vadd.f32 %v660_v35, %v555_v2  ;;  %v698_v38 = vadd.f32 %v697_v34, %v683_v4 }
 0x10e   : > { %v699_v39 = vadd.f32 %v698_v38, %v684_v37  ;;  %v662_v40 = vadd.f32 %v661_v36, %v558_v17 }
 0x110   : > { %v663_v42 = vadd.f32 %v1039_v61, %v662_v40  ;;  %v700_v44 = vadd.f32 %v699_v39, %v685_v14 }
 0x112   : > { %v664_v46 = vadd.f32 %v1040_v9, %v663_v42  ;;  %v701_v47 = vadd.f32 %v700_v44, %v686_v41 }
 0x114   : > { %v665_v43 = vrot.slane %v664_v46, 4  ;;  %v702_v49 = vadd.f32 %v701_v47, %v687_v45 }
 0x116   : > { %v666_v50 = vadd.f32 %v665_v43, %v664_v46  ;;  %v703_v48 = vrot.slane %v702_v49, 4 }
 0x118   : > { %v667_v51 = vrot.slane %v666_v50, 2  ;;  %v704_v52 = vadd.f32 %v703_v48, %v702_v49 }
 0x11a   : > { %v668_v53 = vadd.f32 %v667_v51, %v666_v50  ;;  %v705_v54 = vrot.slane %v704_v52, 2 }
 0x11c   : > { %v669_v55 = vrot.slane %v668_v53, 1  ;;  %v706_v56 = vadd.f32 %v705_v54, %v704_v52 }
 0x11e   : > { %v670_v57 = vadd.f32 %v669_v55, %v668_v53  ;;  %v707_v58 = vrot.slane %v706_v56, 1 }
 0x120   : > { %671 = vst [vmem:[%s287_s17] sm:$0x1] %v670_v57  ;;  %v708_v59 = vadd.f32 %v707_v58, %v706_v56 }
 0x122   : > { %709 = vst [vmem:[%s287_s17 + $0x1] sm:$0x1] %v708_v59 }
 0x123 PF: > { %s16_s22 = sadd.s32 1, %s1143_s22   ;;  %s1343_s18 = smov %s1135_s20 }
 0x124   : > { %p13_p8 = scmp.ge.s32.totalorder %s16_s22, 6   ;;  %s1344_s19 = smov %s1139_s21 }
 0x125   : > { %s1345_s20 = smov %s1348_s23  ;;  %s1346_s21 = smov %s1352_s24 }
 0x126   :  { %15 = sbr.rel (!%p13_p8) target bundleno = 3 (0x3), region = 78 }

// kernel: mbconv_forward.4
= control target key start
LH: loop header
LB: loop body
LE: loop exit
PB: predicated region body
PF: predicated region fallthrough
CT: control target
= control target key end

     0   :  { %s1088_s18 = smov 0   ;;  %s1090_s19 = smov 0   ;;  %s1249_s0 = inlined_call_operand.vmem [shape: f32[2,16,16,128], index: 0, kind: input, shape index: {}]   ;;  %s1250_s1 = inlined_call_operand.vmem [shape: f32[1,128], index: 1, kind: input, shape index: {}]   ;;  %s1251_s2 = inlined_call_operand.vmem [shape: f32[1,128], index: 2, kind: input, shape index: {}]   ;;  %s1252_s3 = inlined_call_operand.vmem [shape: bf16[128,128], index: 3, kind: input, shape index: {}]   ;;  %s1253_s4 = inlined_call_operand.vmem [shape: bf16[2,16,16,128], index: 4, kind: output, shape index: {0}]   ;;  %s1254_s5 = inlined_call_operand.vmem [shape: f32[4,2,128], index: 5, kind: output, shape index: {1}]  }
   0x1   :  { %s1092_s20 = smov 0   ;;  %s1094_s21 = smov 0  }
   0x2   :  { %s1096_s22 = smov 0  }
   0x3 LB: > { %s25_s23 = sadd.s32 1, %s1048_s20  ;;  %s28_s24 = sadd.s32 1, %s1052_s21  ;;  %s1056_s22 = sphi %s1096_s22, %s16_s22   ;;  %s1052_s21 = sphi %s1094_s21, %s1258_s21   ;;  %s1048_s20 = sphi %s1092_s20, %s1257_s20   ;;  %s1044_s19 = sphi %s1090_s19, %s1256_s19   ;;  %s1040_s18 = sphi %s1088_s18, %s1255_s18  }
   0x4   : > { %p26_p0 = scmp.ge.s32.totalorder %s25_s23, 2  ;;  %p804_p1 = scmp.ge.s32.totalorder %s1056_s22, 1 }
   0x5   : > { %p216_p2 = scmp.lt.s32.totalorder %s1056_s22, 5 }
   0x6   : > { %s1260_s23 = smov (%p26_p0, %s25_s23), 0  ;;  %s1262_s24 = smov (!%p26_p0, %s28_s24), %s1052_s21 }
   0x7   : > { %p217_p3 = pnand %p804_p1, %p216_p2  ;;  %p30_p4 = scmp.ge.s32.totalorder %s1262_s24, 2 }
   0x8   : > { %s805_s27 = sshll.u32 (!%p217_p3), %s1040_s18, 3  ;;  %p261_p5 = scmp.lt.s32.totalorder (!%p217_p3), %s1044_s19, 1 }
   0x9   : > { %s1264_s24 = smov (%p30_p4, %s1262_s24), 0  ;;  %220 = sbr.rel (%p217_p3) target bundleno = 291 (0x123), region = 36 }
   0xa   : > { %p263_p6 = scmp.lt.s32.totalorder (!%p217_p3), %s805_s27, 15 }
   0xe   : > { %v1010_v0 = vld [vmem:[%s1252_s3 + $0x38] sm:$0xff]   ;;  %v1011_v1 = vld [vmem:[%s1252_s3 + $0x30] sm:$0xff]   ;;  %s262_s30 = scalar_select %p261_p5, %s1044_s19, 1  ;;  %v1012_v2 = vld [vmem:[%s1252_s3 + $0x28] sm:$0xff]  }
   0xf   : > { %922 = vmatprep.subr.bf16.mxu0 %v1010_v0  ;;  %954 = vmatprep.subr.bf16.mxu1 %v1010_v0  ;;  %s1266_s27 = smov (!%p263_p6, %s805_s27), 15  ;;  %v1013_v3 = vld [vmem:[%s1252_s3 + $0x20] sm:$0xff]   ;;  %v1014_v10 = vld [vmem:[%s1252_s3 + $0x18] sm:$0xff]   ;;  %v1015_v17 = vld [vmem:[%s1252_s3 + $0x10] sm:$0xff]  }
  0x10   : > { %923 = vmatpush3.bf16.msra.mxu0 %v1010_v0  ;;  %962 = vmatpush3.bf16.msra.mxu1 %v1010_v0  ;;  %s807_s8 = sshll.u32 %s262_s30, 5  ;;  %s806_s9 = sshll.u32 %s1266_s27, 1  ;;  %v1143_v4 = vld [vmem:[%s1250_s1] ss:$0 sm:$0xff]  ;;  %v1016_v20 = vld [vmem:[%s1252_s3 + $0x8] sm:$0xff]  }
  0x11   : > { %924 = vmatprep.subr.bf16.mxu0 %v1011_v1  ;;  %955 = vmatprep.subr.bf16.mxu1 %v1011_v1  ;;  %s1134_s10 = sadd.s32 %s807_s8, %s806_s9  ;;  %v1155_v7 = vld [vmem:[%s1251_s2] ss:$0 sm:$0xff] }
  0x12   : > { %s808_s13 = sshll.u32 %s1134_s10, 3  ;;  %v1017_v39 = vld [vmem:[%s1252_s3] sm:$0xff]   ;;  %s812_s12 = sshll.u32 %s1134_s10, 2 }
  0x13   : > { %s1148_s25 = scalar_lea.vmem %s1249_s0, %s808_s13  ;;  %s1219_s15 = scalar_lea.vmem %s1253_s4, %s812_s12 }
  0x14   : > { %925 = vmatpush3.bf16.msra.mxu0 %v1011_v1  ;;  %963 = vmatpush3.bf16.msra.mxu1 %v1011_v1  ;;  %v291_v5 = vld [vmem:[%s1148_s25] sm:$0xff]  ;;  %v292_v6 = vld [vmem:[%s1148_s25 + $0x8] sm:$0xff]  ;;  %v293_v21 = vld [vmem:[%s1148_s25 + $0x10] sm:$0xff]  ;;  %s813_s10 = sshll.u32 %s1044_s19, 1 }
  0x15   : > { %926 = vmatprep.subr.bf16.mxu0 %v1012_v2  ;;  %956 = vmatprep.subr.bf16.mxu1 %v1012_v2  ;;  %v314_v8 = vmul.f32 %v1143_v4, %v291_v5  ;;  %v315_v9 = vmul.f32 %v1143_v4, %v292_v6  ;;  %v299_v11 = vld [vmem:[%s1148_s25 + $0x40] sm:$0xff]  ;;  %v300_v14 = vld [vmem:[%s1148_s25 + $0x48] sm:$0xff]  ;;  %v294_v22 = vld [vmem:[%s1148_s25 + $0x18] sm:$0xff]  ;;  %v316_v30 = vmul.f32 %v1143_v4, %v293_v21  ;;  %s283_s16 = sadd.s32 %s1040_s18, %s813_s10 }
  0x16   : > { %v322_v16 = vmul.f32 %v1143_v4, %v299_v11  ;;  %v323_v18 = vmul.f32 %v1143_v4, %v300_v14  ;;  %v295_v23 = vld [vmem:[%s1148_s25 + $0x20] sm:$0xff]  ;;  %v301_v25 = vld [vmem:[%s1148_s25 + $0x50] sm:$0xff]  ;;  %v302_v26 = vld [vmem:[%s1148_s25 + $0x58] sm:$0xff]  ;;  %v317_v32 = vmul.f32 %v1143_v4, %v294_v22  ;;  %p284_p7 = scmp.lt.s32.totalorder %s283_s16, 3 }
  0x17   : > { %v337_v12 = vadd.f32 %v1155_v7, %v314_v8  ;;  %v338_v13 = vadd.f32 %v1155_v7, %v315_v9  ;;  %v296_v27 = vld [vmem:[%s1148_s25 + $0x28] sm:$0xff]  ;;  %v303_v28 = vld [vmem:[%s1148_s25 + $0x60] sm:$0xff]  ;;  %v318_v33 = vmul.f32 %v1143_v4, %v295_v23  ;;  %v324_v34 = vmul.f32 %v1143_v4, %v301_v25  ;;  %v297_v43 = vld [vmem:[%s1148_s25 + $0x30] sm:$0xff] }
  0x18   : > { %927 = vmatpush3.bf16.msra.mxu0 %v1012_v2  ;;  %964 = vmatpush3.bf16.msra.mxu1 %v1012_v2  ;;  %v345_v19 = vadd.f32 %v1155_v7, %v322_v16  ;;  %v346_v24 = vadd.f32 %v1155_v7, %v323_v18  ;;  %v304_v29 = vld [vmem:[%s1148_s25 + $0x68] sm:$0xff]  ;;  %v325_v35 = vmul.f32 %v1143_v4, %v302_v26  ;;  %v298_v44 = vld [vmem:[%s1148_s25 + $0x38] sm:$0xff]  ;;  %v305_v50 = vld [vmem:[%s1148_s25 + $0x70] sm:$0xff]  ;;  %s1268_s16 = smov (!%p284_p7, %s283_s16), 3 }
  0x19   : > { %928 = vmatprep.subr.bf16.mxu0 %v1013_v3  ;;  %957 = vmatprep.subr.bf16.mxu1 %v1013_v3  ;;  %v353_v15 = vpack.c.bf16 %v338_v13, %v337_v12  ;;  %v319_v36 = vmul.f32 %v1143_v4, %v296_v27  ;;  %v326_v37 = vmul.f32 %v1143_v4, %v303_v28  ;;  %v306_v51 = vld [vmem:[%s1148_s25 + $0x78] sm:$0xff]  ;;  %s814_s17 = sshll.u32 %s1268_s16, 1 }
  0x1a   : > { %v357_v31 = vpack.c.bf16 %v346_v24, %v345_v19  ;;  %v327_v38 = vmul.f32 %v1143_v4, %v304_v29  ;;  %v339_v40 = vadd.f32 %v1155_v7, %v316_v30  ;;  %v340_v41 = vadd.f32 %v1155_v7, %v317_v32  ;;  %s287_s25 = scalar_lea.vmem %s1254_s5, %s814_s17 }
  0x1b   : > { %938 = vmatprep.mubr.bf16.mxu0 %v353_v15  ;;  %v341_v42 = vadd.f32 %v1155_v7, %v318_v33  ;;  %v347_v45 = vadd.f32 %v1155_v7, %v324_v34  ;;  %v348_v46 = vadd.f32 %v1155_v7, %v325_v35  ;;  %v342_v47 = vadd.f32 %v1155_v7, %v319_v36 }
  0x1c   : > { %929 = vmatpush3.bf16.msra.mxu0 %v1013_v3  ;;  %965 = vmatpush3.bf16.msra.mxu1 %v1013_v3  ;;  %v349_v48 = vadd.f32 %v1155_v7, %v326_v37  ;;  %v350_v49 = vadd.f32 %v1155_v7, %v327_v38  ;;  %v320_v52 = vmul.f32 %v1143_v4, %v297_v43 }
  0x1d   : > { %930 = vmatprep.subr.bf16.mxu0 %v1014_v10  ;;  %958 = vmatprep.subr.bf16.mxu1 %v1014_v10  ;;  %v321_v53 = vmul.f32 %v1143_v4, %v298_v44  ;;  %v354_v54 = vpack.c.bf16 %v340_v41, %v339_v40  ;;  %v358_v55 = vpack.c.bf16 %v348_v46, %v347_v45 }
  0x1e   : > { %946 = vmatprep.mubr.bf16.mxu1 %v357_v31  ;;  %v328_v56 = vmul.f32 %v1143_v4, %v305_v50  ;;  %v329_v57 = vmul.f32 %v1143_v4, %v306_v51  ;;  %v355_v58 = vpack.c.bf16 %v342_v47, %v341_v42  ;;  %v359_v59 = vpack.c.bf16 %v350_v49, %v349_v48 }
  0x1f   : > { %v343_v60 = vadd.f32 %v1155_v7, %v320_v52  ;;  %v344_v61 = vadd.f32 %v1155_v7, %v321_v53 }
  0x20   : > { %931 = vmatpush3.bf16.msra.mxu0 %v1014_v10  ;;  %966 = vmatpush3.bf16.msra.mxu1 %v1014_v10  ;;  %v351_v62 = vadd.f32 %v1155_v7, %v328_v56  ;;  %v352_v63 = vadd.f32 %v1155_v7, %v329_v57 }
  0x21   : > { %932 = vmatprep.subr.bf16.mxu0 %v1015_v17  ;;  %959 = vmatprep.subr.bf16.mxu1 %v1015_v17  ;;  %v356_v0 = vpack.c.bf16 %v344_v61, %v343_v60 }
  0x22   : > { %v360_v1 = vpack.c.bf16 %v352_v63, %v351_v62 }
  0x24   : > { %933 = vmatpush3.bf16.msra.mxu0 %v1015_v17  ;;  %967 = vmatpush3.bf16.msra.mxu1 %v1015_v17 }
  0x25   : > { %934 = vmatprep.subr.bf16.mxu0 %v1016_v20  ;;  %960 = vmatprep.subr.bf16.mxu1 %v1016_v20 }
  0x28   : > { %935 = vmatpush3.bf16.msra.mxu0 %v1016_v20  ;;  %968 = vmatpush3.bf16.msra.mxu1 %v1016_v20 }
  0x29   : > { %936 = vmatprep.subr.bf16.mxu0 %v1017_v39  ;;  %961 = vmatprep.subr.bf16.mxu1 %v1017_v39 }
  0x2c   : > { %937 = vmatpush3.bf16.msra.mxu0 %v1017_v39  ;;  %969 = vmatpush3.bf16.msra.mxu1 %v1017_v39 }
  0x2f   : > { %939 = vmatmul.mubr.bf16.vlgmr.msra.gmra.mxu0 %v354_v54  ;;  %947 = vmatmul.mubr.bf16.vlgmr.msra.gmra.mxu1 %v358_v55 }
  0x30   : > { %942 = vmatprep.mubr.bf16.mxu0 %v355_v58  ;;  %950 = vmatprep.mubr.bf16.mxu1 %v359_v59 }
  0x37   : > { %943 = vmatmul.mubr.bf16.gmra.mxu0 %v356_v0  ;;  %951 = vmatmul.mubr.bf16.gmra.mxu1 %v360_v1 }
  0xef   : > { %v940_v2 = vpop.f32.mrf.mxu0  ;;  %v948_v3 = vpop.f32.mrf.mxu1 }
  0xf0   : > { %v626_v19 = vmul.f32 %v940_v2, %v940_v2  ;;  %v634_v53 = vmul.f32 %v948_v3, %v948_v3 }
  0xf1   : > { %v459_v4 = vpop.f32.mrf.mxu0  ;;  %v491_v5 = vpop.f32.mrf.mxu1 }
  0xf2   : > { %v624_v10 = vmul.f32 %v459_v4, %v459_v4  ;;  %v632_v47 = vmul.f32 %v491_v5, %v491_v5 }
  0xf3   : > { %v941_v6 = vpop.f32.mrf.mxu0  ;;  %v949_v7 = vpop.f32.mrf.mxu1 }
  0xf4   : > { %v867_v8 = vpack.c.bf16 %v941_v6, %v940_v2  ;;  %v887_v9 = vpack.c.bf16 %v949_v7, %v948_v3  ;;  %v627_v24 = vmul.f32 %v941_v6, %v941_v6  ;;  %v635_v56 = vmul.f32 %v949_v7, %v949_v7 }
  0xf5   : > { %v462_v11 = vpop.f32.mrf.mxu0  ;;  %v494_v12 = vpop.f32.mrf.mxu1 }
  0xf6   : > { %899 = vst [vmem:[%s1219_s15 + $0x8] sm:$0xff] %v867_v8   ;;  %v862_v13 = vpack.c.bf16 %v462_v11, %v459_v4  ;;  %v602_v14 = vadd.f32 %v462_v11, %v459_v4  ;;  %v625_v15 = vmul.f32 %v462_v11, %v462_v11  ;;  %903 = vst [vmem:[%s1219_s15 + $0x28] sm:$0xff] %v887_v9  }
  0xf7   : > { %v882_v16 = vpack.c.bf16 %v494_v12, %v491_v5  ;;  %v944_v17 = vpop.f32.mrf.mxu0  ;;  %v952_v18 = vpop.f32.mrf.mxu1  ;;  %v633_v51 = vmul.f32 %v494_v12, %v494_v12 }
  0xf8   : > { %863 = vst [vmem:[%s1219_s15] sm:$0xff] %v862_v13   ;;  %v603_v20 = vadd.f32 %v940_v2, %v602_v14  ;;  %v640_v21 = vadd.f32 %v625_v15, %v624_v10  ;;  %v630_v41 = vmul.f32 %v944_v17, %v944_v17  ;;  %v638_v1 = vmul.f32 %v952_v18, %v952_v18 }
  0xf9   : > { %902 = vst [vmem:[%s1219_s15 + $0x20] sm:$0xff] %v882_v16   ;;  %v475_v22 = vpop.f32.mrf.mxu0  ;;  %v507_v23 = vpop.f32.mrf.mxu1 }
  0xfa   : > { %v641_v25 = vadd.f32 %v640_v21, %v626_v19  ;;  %v604_v26 = vadd.f32 %v941_v6, %v603_v20  ;;  %v628_v30 = vmul.f32 %v475_v22, %v475_v22  ;;  %v636_v60 = vmul.f32 %v507_v23, %v507_v23 }
  0xfb   : > { %v945_v27 = vpop.f32.mrf.mxu0  ;;  %v953_v28 = vpop.f32.mrf.mxu1 }
  0xfc   : > { %v605_v29 = vadd.f32 %v604_v26, %v475_v22  ;;  %v642_v31 = vadd.f32 %v641_v25, %v627_v24  ;;  %v877_v32 = vpack.c.bf16 %v945_v27, %v944_v17  ;;  %v897_v34 = vpack.c.bf16 %v953_v28, %v952_v18 }
  0xfd   : > { %v478_v33 = vpop.f32.mrf.mxu0  ;;  %v510_v35 = vpop.f32.mrf.mxu1  ;;  %v631_v44 = vmul.f32 %v945_v27, %v945_v27 }
  0xfe   : > { %v643_v36 = vadd.f32 %v642_v31, %v628_v30  ;;  %901 = vst [vmem:[%s1219_s15 + $0x18] sm:$0xff] %v877_v32   ;;  %v872_v37 = vpack.c.bf16 %v478_v33, %v475_v22  ;;  %v606_v38 = vadd.f32 %v605_v29, %v478_v33  ;;  %v629_v39 = vmul.f32 %v478_v33, %v478_v33 }
  0xff   : > { %905 = vst [vmem:[%s1219_s15 + $0x38] sm:$0xff] %v897_v34   ;;  %v892_v40 = vpack.c.bf16 %v510_v35, %v507_v23  ;;  %v637_v0 = vmul.f32 %v510_v35, %v510_v35 }
 0x100   : > { %900 = vst [vmem:[%s1219_s15 + $0x10] sm:$0xff] %v872_v37   ;;  %v607_v42 = vadd.f32 %v944_v17, %v606_v38  ;;  %v644_v43 = vadd.f32 %v643_v36, %v629_v39 }
 0x101   : > { %904 = vst [vmem:[%s1219_s15 + $0x30] sm:$0xff] %v892_v40  }
 0x102   : > { %v608_v45 = vadd.f32 %v945_v27, %v607_v42  ;;  %v645_v46 = vadd.f32 %v644_v43, %v630_v41 }
 0x104   : > { %v646_v48 = vadd.f32 %v645_v46, %v631_v44  ;;  %v609_v49 = vadd.f32 %v608_v45, %v491_v5  ;;  %v639_v5 = vmul.f32 %v953_v28, %v953_v28 }
 0x106   : > { %v610_v50 = vadd.f32 %v609_v49, %v494_v12  ;;  %v647_v52 = vadd.f32 %v646_v48, %v632_v47 }
 0x108   : > { %v611_v54 = vadd.f32 %v948_v3, %v610_v50  ;;  %v648_v55 = vadd.f32 %v647_v52, %v633_v51 }
 0x10a   : > { %v649_v57 = vadd.f32 %v648_v55, %v634_v53  ;;  %v612_v58 = vadd.f32 %v949_v7, %v611_v54 }
 0x10c   : > { %v613_v59 = vadd.f32 %v612_v58, %v507_v23  ;;  %v650_v61 = vadd.f32 %v649_v57, %v635_v56 }
 0x10e   : > { %v651_v62 = vadd.f32 %v650_v61, %v636_v60  ;;  %v614_v63 = vadd.f32 %v613_v59, %v510_v35 }
 0x110   : > { %v615_v2 = vadd.f32 %v952_v18, %v614_v63  ;;  %v652_v4 = vadd.f32 %v651_v62, %v637_v0 }
 0x112   : > { %v616_v6 = vadd.f32 %v953_v28, %v615_v2  ;;  %v653_v8 = vadd.f32 %v652_v4, %v638_v1 }
 0x114   : > { %v617_v3 = vrot.slane %v616_v6, 4  ;;  %v654_v9 = vadd.f32 %v653_v8, %v639_v5 }
 0x116   : > { %v618_v10 = vadd.f32 %v617_v3, %v616_v6  ;;  %v655_v7 = vrot.slane %v654_v9, 4 }
 0x118   : > { %v619_v11 = vrot.slane %v618_v10, 2  ;;  %v656_v12 = vadd.f32 %v655_v7, %v654_v9 }
 0x11a   : > { %v620_v13 = vadd.f32 %v619_v11, %v618_v10  ;;  %v657_v14 = vrot.slane %v656_v12, 2 }
 0x11c   : > { %v621_v15 = vrot.slane %v620_v13, 1  ;;  %v658_v16 = vadd.f32 %v657_v14, %v656_v12 }
 0x11e   : > { %v622_v17 = vadd.f32 %v621_v15, %v620_v13  ;;  %v659_v18 = vrot.slane %v658_v16, 1 }
 0x120   : > { %623 = vst [vmem:[%s287_s25] sm:$0x1] %v622_v17  ;;  %v660_v19 = vadd.f32 %v659_v18, %v658_v16 }
 0x122   : > { %661 = vst [vmem:[%s287_s25 + $0x1] sm:$0x1] %v660_v19 }
 0x123 PF: > { %s16_s22 = sadd.s32 1, %s1056_s22   ;;  %s1255_s18 = smov %s1048_s20 }
 0x124   : > { %p13_p8 = scmp.ge.s32.totalorder %s16_s22, 6   ;;  %s1256_s19 = smov %s1052_s21 }
 0x125   : > { %s1257_s20 = smov %s1260_s23  ;;  %s1258_s21 = smov %s1264_s24 }
 0x126   :  { %15 = sbr.rel (!%p13_p8) target bundleno = 3 (0x3), region = 78 }

// kernel: mbconv_forward.5
= control target key start
LH: loop header
LB: loop body
LE: loop exit
PB: predicated region body
PF: predicated region fallthrough
CT: control target
= control target key end

     0   :  { %s2733_s18 = smov 0   ;;  %s3632_s0 = inlined_call_operand.vmem [shape: bf16[2,16,16,128], index: 0, kind: input, shape index: {}]   ;;  %s3633_s1 = inlined_call_operand.vmem [shape: f32[1,128], index: 1, kind: input, shape index: {}]   ;;  %s3634_s2 = inlined_call_operand.vmem [shape: f32[1,128], index: 2, kind: input, shape index: {}]   ;;  %s3635_s3 = inlined_call_operand.vmem [shape: f32[9,128], index: 3, kind: input, shape index: {}]   ;;  %s3636_s4 = inlined_call_operand.vmem [shape: bf16[2,16,16,128], index: 4, kind: output, shape index: {0}]   ;;  %s3637_s5 = inlined_call_operand.vmem [shape: f32[2,2,128], index: 5, kind: output, shape index: {1}]  }
   0x1 LB: > { %s2426_s19 = sadd.s32 4294967295, %s2700_s18   ;;  %p2430_p0 = scmp.ge.s32.totalorder %s2700_s18, 1  ;;  %s2700_s18 = sphi %s2733_s18, %s16_s18  }
   0x2   : > { %p190_p1 = scmp.lt.s32.totalorder %s2700_s18, 3 }
   0x4   : > { %p191_p2 = pnand %p2430_p0, %p190_p1 }
   0x5   : > { %p2743_p3 = scmp.lt.s32.totalorder (!%p191_p2), %s2426_s19, 1 }
   0x6   : > { %194 = sbr.rel (%p191_p2) target bundleno = 249 (0xf9), region = 36 }
   0xb   : > { %v627_v0 = vlaneseq  ;;  %v2702_v1 = vmov 0.0   ;;  %s3640_s19 = smov (!%p2743_p3, %s2426_s19), 1  ;;  %v2758_v3 = vld [vmem:[%s3635_s3] sm:$0xff] }
   0xc   : > { %442 = vst [vmem:[#allocation2] sm:$0xff] %v2702_v1  ;;  %443 = vst [vmem:[#allocation2 + $0x8] sm:$0xff] %v2702_v1  ;;  %s2473_s23 = sshll.u32 %s3640_s19, 7  ;;  %v2775_v8 = vld [vmem:[%s3633_s1] ss:$0 sm:$0xff]  ;;  %s2435_s17 = sshll.u32 %s3640_s19, 1 }
   0xd   : > { %444 = vst [vmem:[#allocation2 + $0x10] sm:$0x3] %v2702_v1  ;;  %445 = vst [vmem:[#allocation2 + $0x18] sm:$0xff] %v2702_v1  ;;  %v2753_v2 = vshrl.u32 %v627_v0, 7  ;;  %s2770_s26 = scalar_lea.vmem %s3632_s0, %s2473_s23  ;;  %v2800_v25 = vld [vmem:[%s3634_s2] ss:$0 sm:$0xff]  ;;  %s2985_s10 = scalar_lea.vmem %s3636_s4, %s2473_s23 }
   0xe   : > { %446 = vst [vmem:[#allocation2 + $0x20] sm:$0xff] %v2702_v1  ;;  %447 = vst [vmem:[#allocation2 + $0x28] sm:$0x3] %v2702_v1  ;;  %v2508_v13 = vld [vmem:[%s2770_s26] sm:$0xff]   ;;  %v2651_v14 = vld [vmem:[%s2770_s26 + $0x8] sm:$0xff]   ;;  %s235_s22 = scalar_lea.vmem %s3637_s5, %s2435_s17 }
   0xf   : > { %448 = vst [vmem:[#allocation2 + $0x30] sm:$0xff] %v2702_v1  ;;  %449 = vst [vmem:[#allocation2 + $0x38] sm:$0xff] %v2702_v1  ;;  %v629_v4 = vsub.s32 0, %v2753_v2  ;;  %v793_v5 = vsub.s32 1, %v2753_v2  ;;  %v957_v6 = vsub.s32 2, %v2753_v2  ;;  %v1121_v7 = vsub.s32 3, %v2753_v2 }
  0x10   : > { %450 = vst [vmem:[#allocation2 + $0x40] sm:$0x3] %v2702_v1  ;;  %451 = vst [vmem:[#allocation2 + $0x48] sm:$0xff] %v2702_v1  ;;  %v1285_v9 = vsub.s32 4, %v2753_v2  ;;  %v1449_v10 = vsub.s32 5, %v2753_v2  ;;  %v1614_v11 = vsub.s32 6, %v2753_v2  ;;  %v2509_v20 = vunpack.c.l.bf16 %v2508_v13 }
  0x11   : > { %452 = vst [vmem:[#allocation2 + $0x50] sm:$0xff] %v2702_v1  ;;  %453 = vst [vmem:[#allocation2 + $0x58] sm:$0x3] %v2702_v1  ;;  %v1778_v12 = vsub.s32 7, %v2753_v2  ;;  %v2652_v15 = vld [vmem:[%s2770_s26 + $0x10] sm:$0xff]   ;;  %v2785_v16 = vrot.slane %v2758_v3, %v629_v4  ;;  %v2788_v17 = vrot.slane %v2758_v3, %v793_v5  ;;  %v2791_v18 = vrot.slane %v2758_v3, %v957_v6  ;;  %v2653_v24 = vld [vmem:[%s2770_s26 + $0x18] sm:$0xff]  }
  0x12   : > { %454 = vst [vmem:[#allocation2 + $0x60] sm:$0xff] %v2702_v1  ;;  %455 = vst [vmem:[#allocation2 + $0x68] sm:$0xff] %v2702_v1  ;;  %v2794_v19 = vrot.slane %v2758_v3, %v1121_v7  ;;  %v2510_v21 = vunpack.c.h.bf16 %v2508_v13  ;;  %v2513_v22 = vunpack.c.l.bf16 %v2651_v14  ;;  %v2514_v23 = vunpack.c.h.bf16 %v2651_v14  ;;  %v2654_v54 = vld [vmem:[%s2770_s26 + $0x20] sm:$0xff]   ;;  %v2655_v55 = vld [vmem:[%s2770_s26 + $0x28] sm:$0xff]  }
  0x13   : > { %456 = vst [vmem:[#allocation2 + $0x70] sm:$0x3] %v2702_v1  ;;  %457 = vst [vmem:[#allocation2 + $0x78] sm:$0xff] %v2702_v1  ;;  %v2517_v26 = vunpack.c.l.bf16 %v2652_v15  ;;  %v2518_v27 = vunpack.c.h.bf16 %v2652_v15  ;;  %v2521_v28 = vunpack.c.l.bf16 %v2653_v24  ;;  %v2522_v29 = vunpack.c.h.bf16 %v2653_v24  ;;  %v2656_v60 = vld [vmem:[%s2770_s26 + $0x30] sm:$0xff]   ;;  %v2657_v61 = vld [vmem:[%s2770_s26 + $0x38] sm:$0xff]  }
  0x14   : > { %458 = vst [vmem:[#allocation2 + $0x80] sm:$0xff] %v2702_v1  ;;  %459 = vst [vmem:[#allocation2 + $0x88] sm:$0x3] %v2702_v1  ;;  %v307_v30 = vmul.f32 %v2509_v20, %v2775_v8  ;;  %v308_v31 = vmul.f32 %v2510_v21, %v2775_v8  ;;  %v309_v32 = vmul.f32 %v2513_v22, %v2775_v8  ;;  %v2525_v4 = vunpack.c.l.bf16 %v2654_v54 }
  0x15   : > { %460 = vst [vmem:[#allocation2 + $0x90] sm:$0xff] %v2702_v1  ;;  %461 = vst [vmem:[#allocation2 + $0x98] sm:$0xff] %v2702_v1  ;;  %v310_v33 = vmul.f32 %v2514_v23, %v2775_v8  ;;  %v311_v34 = vmul.f32 %v2517_v26, %v2775_v8  ;;  %v312_v35 = vmul.f32 %v2518_v27, %v2775_v8  ;;  %v2526_v5 = vunpack.c.h.bf16 %v2654_v54 }
  0x16   : > { %462 = vst [vmem:[#allocation2 + $0xa0] sm:$0x3] %v2702_v1  ;;  %463 = vst [vmem:[#allocation2 + $0xa8] sm:$0xff] %v2702_v1  ;;  %v313_v36 = vmul.f32 %v2521_v28, %v2775_v8  ;;  %v314_v37 = vmul.f32 %v2522_v29, %v2775_v8  ;;  %v346_v38 = vadd.f32 %v2800_v25, %v307_v30  ;;  %v2529_v6 = vunpack.c.l.bf16 %v2655_v55 }
  0x17   : > { %464 = vst [vmem:[#allocation2 + $0xb0] sm:$0xff] %v2702_v1  ;;  %465 = vst [vmem:[#allocation2 + $0xb8] sm:$0x3] %v2702_v1  ;;  %v347_v39 = vadd.f32 %v2800_v25, %v308_v31  ;;  %v348_v40 = vadd.f32 %v2800_v25, %v309_v32  ;;  %v349_v41 = vadd.f32 %v2800_v25, %v310_v33  ;;  %v2530_v7 = vunpack.c.h.bf16 %v2655_v55 }
  0x18   : > { %466 = vst [vmem:[#allocation2 + $0xc0] sm:$0xff] %v2702_v1  ;;  %467 = vst [vmem:[#allocation2 + $0xc8] sm:$0xff] %v2702_v1  ;;  %v350_v42 = vadd.f32 %v2800_v25, %v311_v34  ;;  %v351_v43 = vadd.f32 %v2800_v25, %v312_v35  ;;  %v352_v44 = vadd.f32 %v2800_v25, %v313_v36  ;;  %v378_v46 = vmax.f32 %v346_v38, 0.0 }
  0x19   : > { %468 = vst [vmem:[#allocation2 + $0xd0] sm:$0x3] %v2702_v1  ;;  %469 = vst [vmem:[#allocation2 + $0xd8] sm:$0xff] %v2702_v1  ;;  %v353_v45 = vadd.f32 %v2800_v25, %v314_v37  ;;  %v379_v47 = vmax.f32 %v347_v39, 0.0  ;;  %v380_v48 = vmax.f32 %v348_v40, 0.0  ;;  %v381_v49 = vmax.f32 %v349_v41, 0.0 }
  0x1a   : > { %470 = vst [vmem:[#allocation2 + $0xe0] sm:$0xff] %v2702_v1  ;;  %471 = vst [vmem:[#allocation2 + $0xe8] sm:$0x3] %v2702_v1  ;;  %v382_v50 = vmax.f32 %v350_v42, 0.0  ;;  %v383_v51 = vmax.f32 %v351_v43, 0.0  ;;  %v384_v52 = vmax.f32 %v352_v44, 0.0  ;;  %v2533_v13 = vunpack.c.l.bf16 %v2656_v60 }
  0x1b   : > { %472 = vst [vmem:[#allocation2 + $0xf0] sm:$0xff] %v2702_v1  ;;  %473 = vst [vmem:[#allocation2 + $0xf8] sm:$0xff] %v2702_v1  ;;  %v385_v53 = vmax.f32 %v353_v45, 0.0  ;;  %v2820_v56 = vmin.f32 %v378_v46, 6.0  ;;  %v2822_v57 = vmin.f32 %v379_v47, 6.0  ;;  %v2824_v58 = vmin.f32 %v380_v48, 6.0 }
  0x1c   : > { %474 = vst [vmem:[#allocation2 + $0x100] sm:$0x3] %v2702_v1  ;;  %475 = vst [vmem:[#allocation2 + $0x108] sm:$0xff] %v2702_v1  ;;  %v2826_v59 = vmin.f32 %v381_v49, 6.0  ;;  %v2830_v62 = vmin.f32 %v382_v50, 6.0  ;;  %v2832_v63 = vmin.f32 %v383_v51, 6.0  ;;  %v2534_v14 = vunpack.c.h.bf16 %v2656_v60 }
  0x1d   : > { %476 = vst [vmem:[#allocation2 + $0x110] sm:$0xff] %v2702_v1  ;;  %477 = vst [vmem:[#allocation2 + $0x118] sm:$0x3] %v2702_v1  ;;  %v2834_v0 = vmin.f32 %v384_v52, 6.0  ;;  %v2537_v15 = vunpack.c.l.bf16 %v2657_v61  ;;  %v2538_v20 = vunpack.c.h.bf16 %v2657_v61  ;;  %v315_v21 = vmul.f32 %v2525_v4, %v2775_v8  ;;  %v727_v42 = vld [vmem:[#allocation2 + $0x1] sm:$0xff]  ;;  %v728_v43 = vld [vmem:[#allocation2 + $0x9] sm:$0xff] }
  0x1e   : > { %478 = vst [vmem:[#allocation2 + $0x120] sm:$0xff] %v2702_v1  ;;  %479 = vst [vmem:[#allocation2 + $0x128] sm:$0xff] %v2702_v1  ;;  %v316_v22 = vmul.f32 %v2526_v5, %v2775_v8  ;;  %v317_v23 = vmul.f32 %v2529_v6, %v2775_v8  ;;  %v318_v24 = vmul.f32 %v2530_v7, %v2775_v8  ;;  %v891_v48 = vld [vmem:[#allocation2 + $0x2] sm:$0xff]  ;;  %v892_v49 = vld [vmem:[#allocation2 + $0xa] sm:$0xff]  ;;  %v631_v7 = vmul.f32 0.0, %v2785_v16 }
  0x1f   : > { %480 = vst [vmem:[#allocation2 + $0x130] sm:$0x3] %v2702_v1  ;;  %481 = vst [vmem:[#allocation2 + $0x138] sm:$0xff] %v2702_v1  ;;  %v319_v26 = vmul.f32 %v2533_v13, %v2775_v8  ;;  %v320_v27 = vmul.f32 %v2534_v14, %v2775_v8  ;;  %v321_v28 = vmul.f32 %v2537_v15, %v2775_v8  ;;  %v2885_v6 = vld [vmem:[%s3635_s3 + $0x8] ss:$0 sm:$0xff] }
  0x20   : > { %482 = vst [vmem:[#allocation2 + $0x140] sm:$0xff] %v2702_v1  ;;  %483 = vst [vmem:[#allocation2 + $0x148] sm:$0x3] %v2702_v1  ;;  %v322_v29 = vmul.f32 %v2538_v20, %v2775_v8  ;;  %v354_v30 = vadd.f32 %v2800_v25, %v315_v21  ;;  %v355_v31 = vadd.f32 %v2800_v25, %v316_v22 }
  0x21   : > { %484 = vst [vmem:[#allocation2 + $0x150] sm:$0xff] %v2702_v1  ;;  %485 = vst [vmem:[#allocation2 + $0x158] sm:$0xff] %v2702_v1  ;;  %v356_v32 = vadd.f32 %v2800_v25, %v317_v23  ;;  %v357_v33 = vadd.f32 %v2800_v25, %v318_v24  ;;  %v358_v34 = vadd.f32 %v2800_v25, %v319_v26 }
  0x22   : > { %486 = vst [vmem:[#allocation2 + $0x160] sm:$0x3] %v2702_v1  ;;  %487 = vst [vmem:[#allocation2 + $0x168] sm:$0xff] %v2702_v1  ;;  %v359_v35 = vadd.f32 %v2800_v25, %v320_v27  ;;  %v360_v36 = vadd.f32 %v2800_v25, %v321_v28  ;;  %v361_v37 = vadd.f32 %v2800_v25, %v322_v29  ;;  %v386_v38 = vmax.f32 %v354_v30, 0.0 }
  0x23   : > { %488 = vst [vmem:[#allocation2 + $0x170] sm:$0xff] %v2702_v1  ;;  %489 = vst [vmem:[#allocation2 + $0x178] sm:$0x3] %v2702_v1  ;;  %v387_v39 = vmax.f32 %v355_v31, 0.0  ;;  %v388_v40 = vmax.f32 %v356_v32, 0.0  ;;  %v389_v41 = vmax.f32 %v357_v33, 0.0  ;;  %v795_v13 = vmul.f32 %v2788_v17, %v727_v42 }
  0x24   : > { %490 = vst [vmem:[#allocation2 + $0x180] sm:$0xff] %v2702_v1  ;;  %491 = vst [vmem:[#allocation2 + $0x188] sm:$0xff] %v2702_v1  ;;  %v390_v44 = vmax.f32 %v358_v34, 0.0  ;;  %v391_v45 = vmax.f32 %v359_v35, 0.0  ;;  %v392_v46 = vmax.f32 %v360_v36, 0.0  ;;  %v393_v47 = vmax.f32 %v361_v37, 0.0 }
  0x25   : > { %492 = vst [vmem:[#allocation2 + $0x190] sm:$0x3] %v2702_v1  ;;  %493 = vst [vmem:[#allocation2 + $0x198] sm:$0xff] %v2702_v1  ;;  %v2862_v50 = vmin.f32 %v386_v38, 6.0  ;;  %v2864_v51 = vmin.f32 %v387_v39, 6.0  ;;  %v2866_v52 = vmin.f32 %v388_v40, 6.0  ;;  %v796_v14 = vmul.f32 %v2788_v17, %v728_v43 }
  0x26   : > { %494 = vst [vmem:[#allocation2 + $0x1a0] sm:$0xff] %v2702_v1  ;;  %495 = vst [vmem:[#allocation2 + $0x1a8] sm:$0x3] %v2702_v1  ;;  %v2836_v1 = vmin.f32 %v385_v53, 6.0  ;;  %v2868_v53 = vmin.f32 %v389_v41, 6.0  ;;  %v2870_v60 = vmin.f32 %v390_v44, 6.0  ;;  %v959_v15 = vmul.f32 %v2791_v18, %v891_v48 }
  0x27   : > { %497 = vst [vmem:[#allocation2 + $0x19] sm:$0xff] %v2820_v56  ;;  %498 = vst [vmem:[#allocation2 + $0x21] sm:$0xff] %v2822_v57  ;;  %v2872_v61 = vmin.f32 %v391_v45, 6.0  ;;  %v2874_v4 = vmin.f32 %v392_v46, 6.0  ;;  %v2876_v5 = vmin.f32 %v393_v47, 6.0  ;;  %v960_v20 = vmul.f32 %v2791_v18, %v892_v49  ;;  %v2658_v34 = vld [vmem:[%s2770_s26 + $0x40] sm:$0xff]  }
  0x28   : > { %499 = vst [vmem:[#allocation2 + $0x31] sm:$0xff] %v2824_v58  ;;  %500 = vst [vmem:[#allocation2 + $0x39] sm:$0xff] %v2826_v59  ;;  %v2901_v23 = vrot.slane %v2758_v3, %v1285_v9  ;;  %v827_v27 = vadd.f32 %v795_v13, %v631_v7  ;;  %v828_v28 = vadd.f32 %v796_v14, %v631_v7  ;;  %v2541_v45 = vunpack.c.l.bf16 %v2658_v34 }
  0x29   : > { %501 = vst [vmem:[#allocation2 + $0x49] sm:$0xff] %v2830_v62  ;;  %502 = vst [vmem:[#allocation2 + $0x51] sm:$0xff] %v2832_v63  ;;  %v2906_v29 = vrot.slane %v2758_v3, %v1449_v10  ;;  %v2911_v30 = vrot.slane %v2758_v3, %v1614_v11  ;;  %v2922_v33 = vrot.slane %v2758_v3, %v1778_v12  ;;  %v2542_v46 = vunpack.c.h.bf16 %v2658_v34 }
  0x2a   : > { %503 = vst [vmem:[#allocation2 + $0x61] sm:$0xff] %v2834_v0  ;;  %504 = vst [vmem:[#allocation2 + $0x69] sm:$0xff] %v2836_v1  ;;  %v1287_v9 = vmul.f32 %v2901_v23, %v2820_v56  ;;  %v1288_v32 = vmul.f32 %v2901_v23, %v2822_v57  ;;  %v991_v35 = vadd.f32 %v959_v15, %v827_v27 }
  0x2b   : > { %505 = vst [vmem:[#allocation2 + $0x79] sm:$0xff] %v2862_v50  ;;  %506 = vst [vmem:[#allocation2 + $0x81] sm:$0xff] %v2864_v51  ;;  %v992_v11 = vadd.f32 %v960_v20, %v828_v28  ;;  %v1780_v12 = vmul.f32 %v2922_v33, %v2824_v58  ;;  %v1781_v40 = vmul.f32 %v2922_v33, %v2826_v59 }
  0x2c   : > { %507 = vst [vmem:[#allocation2 + $0x91] sm:$0xff] %v2866_v52  ;;  %508 = vst [vmem:[#allocation2 + $0x99] sm:$0xff] %v2868_v53  ;;  %v797_v49 = vmul.f32 %v2788_v17, %v2820_v56  ;;  %v323_v14 = vmul.f32 %v2541_v45, %v2775_v8  ;;  %v798_v15 = vmul.f32 %v2788_v17, %v2822_v57 }
  0x2d   : > { %509 = vst [vmem:[#allocation2 + $0xa9] sm:$0xff] %v2870_v60  ;;  %510 = vst [vmem:[#allocation2 + $0xb1] sm:$0xff] %v2872_v61  ;;  %v324_v20 = vmul.f32 %v2542_v46, %v2775_v8 }
  0x2e   : > { %v1055_v54 = vld [vmem:[#allocation2 + $0x18] sm:$0xff]  ;;  %v1056_v55 = vld [vmem:[#allocation2 + $0x20] sm:$0xff]  ;;  %511 = vst [vmem:[#allocation2 + $0xc1] sm:$0xff] %v2874_v4  ;;  %512 = vst [vmem:[#allocation2 + $0xc9] sm:$0xff] %v2876_v5 }
  0x2f   : > { %v1123_v21 = vmul.f32 %v2794_v19, %v1055_v54  ;;  %v1124_v22 = vmul.f32 %v2794_v19, %v1056_v55  ;;  %v1383_v24 = vld [vmem:[#allocation2 + $0x1a] sm:$0xff]  ;;  %v1384_v26 = vld [vmem:[#allocation2 + $0x22] sm:$0xff]  ;;  %v2913_v31 = vld [vmem:[#allocation2 + $0x32] sm:$0xff]  ;;  %v633_v47 = vmul.f32 %v1055_v54, %v2785_v16  ;;  %v634_v48 = vmul.f32 %v1056_v55, %v2785_v16 }
  0x30   : > { %v1944_v10 = vmul.f32 %v2885_v6, %v2913_v31  ;;  %v1451_v36 = vmul.f32 %v2906_v29, %v1383_v24  ;;  %v1452_v37 = vmul.f32 %v2906_v29, %v1384_v26  ;;  %v2929_v38 = vld [vmem:[#allocation2 + $0x30] sm:$0xff]  ;;  %v2931_v39 = vld [vmem:[#allocation2 + $0x38] sm:$0xff]  ;;  %v962_v27 = vmul.f32 %v1384_v26, %v2791_v18 }
  0x31   : > { %v1616_v2 = vmul.f32 %v2911_v30, %v2929_v38  ;;  %v1617_v3 = vmul.f32 %v2911_v30, %v2931_v39  ;;  %v2941_v41 = vld [vmem:[#allocation2 + $0x3a] sm:$0xff]  ;;  %v1155_v42 = vadd.f32 %v1123_v21, %v991_v35  ;;  %v1156_v43 = vadd.f32 %v1124_v22, %v992_v11 }
  0x32   : > { %v1945_v44 = vmul.f32 %v2885_v6, %v2941_v41  ;;  %v829_v21 = vadd.f32 %v797_v49, %v633_v47  ;;  %v961_v22 = vmul.f32 %v1383_v24, %v2791_v18  ;;  %v362_v55 = vadd.f32 %v2800_v25, %v323_v14 }
  0x33   : > { %v1319_v7 = vadd.f32 %v1287_v9, %v1155_v42  ;;  %v1320_v13 = vadd.f32 %v1288_v32, %v1156_v43  ;;  %v830_v34 = vadd.f32 %v798_v15, %v634_v48  ;;  %v363_v56 = vadd.f32 %v2800_v25, %v324_v20 }
  0x34   : > { %v993_v9 = vadd.f32 %v961_v22, %v829_v21  ;;  %v1125_v32 = vmul.f32 %v2929_v38, %v2794_v19  ;;  %v1126_v57 = vmul.f32 %v2931_v39, %v2794_v19  ;;  %v394_v42 = vmax.f32 %v362_v55, 0.0 }
  0x35   : > { %v1483_v54 = vadd.f32 %v1451_v36, %v1319_v7  ;;  %v1484_v28 = vadd.f32 %v1452_v37, %v1320_v13  ;;  %v994_v24 = vadd.f32 %v962_v27, %v830_v34  ;;  %v395_v43 = vmax.f32 %v363_v56, 0.0  ;;  %v2973_v13 = vld [vmem:[#allocation2 + $0x48] sm:$0xff]  ;;  %v2996_v56 = vld [vmem:[#allocation2 + $0x52] sm:$0xff] }
  0x36   : > { %v1157_v26 = vadd.f32 %v1125_v32, %v993_v9  ;;  %v1289_v36 = vmul.f32 %v2901_v23, %v2824_v58  ;;  %v1290_v37 = vmul.f32 %v2901_v23, %v2826_v59  ;;  %v2965_v47 = vmin.f32 %v394_v42, 6.0  ;;  %v2994_v34 = vld [vmem:[#allocation2 + $0x4a] sm:$0xff] }
  0x37   : > { %v1648_v35 = vadd.f32 %v1616_v2, %v1483_v54  ;;  %v1649_v11 = vadd.f32 %v1617_v3, %v1484_v28  ;;  %v1158_v48 = vadd.f32 %v1126_v57, %v994_v24  ;;  %v2967_v49 = vmin.f32 %v395_v43, 6.0 }
  0x38   : > { %v1321_v2 = vadd.f32 %v1289_v36, %v1157_v26  ;;  %v1453_v3 = vmul.f32 %v2913_v31, %v2906_v29  ;;  %v1454_v7 = vmul.f32 %v2941_v41, %v2906_v29  ;;  %513 = vst [vmem:[#allocation2 + $0xd9] sm:$0xff] %v2965_v47  ;;  %v1618_v20 = vmul.f32 %v2911_v30, %v2973_v13 }
  0x39   : > { %v1812_v45 = vadd.f32 %v1780_v12, %v1648_v35  ;;  %v1813_v46 = vadd.f32 %v1781_v40, %v1649_v11  ;;  %v1322_v12 = vadd.f32 %v1290_v37, %v1158_v48  ;;  %v2976_v40 = vld [vmem:[#allocation2 + $0x50] sm:$0xff]  ;;  %514 = vst [vmem:[#allocation2 + $0xe1] sm:$0xff] %v2967_v49  ;;  %v1783_v22 = vmul.f32 %v2922_v33, %v2832_v63 }
  0x3a   : > { %v1485_v21 = vadd.f32 %v1453_v3, %v1321_v2  ;;  %v1946_v57 = vmul.f32 %v2885_v6, %v2994_v34  ;;  %v1947_v35 = vmul.f32 %v2885_v6, %v2996_v56  ;;  %v635_v42 = vmul.f32 %v2929_v38, %v2785_v16 }
  0x3b   : > { %v1976_v14 = vadd.f32 %v1944_v10, %v1812_v45  ;;  %v1977_v15 = vadd.f32 %v1945_v44, %v1813_v46  ;;  %v1619_v10 = vmul.f32 %v2911_v30, %v2976_v40  ;;  %v1782_v44 = vmul.f32 %v2922_v33, %v2830_v62 }
  0x3c   : > { %v1486_v9 = vadd.f32 %v1454_v7, %v1322_v12  ;;  %v1650_v32 = vadd.f32 %v1618_v20, %v1485_v21  ;;  %v636_v24 = vmul.f32 %v2931_v39, %v2785_v16  ;;  %v799_v43 = vmul.f32 %v2788_v17, %v2824_v58 }
  0x3d   : > { %v2574_v27 = vpack.c.bf16 %v1977_v15, %v1976_v14  ;;  %v2232_v54 = vadd.f32 %v1977_v15, %v1976_v14  ;;  %v2270_v28 = vmul.f32 %v1976_v14, %v1976_v14  ;;  %v2271_v55 = vmul.f32 %v1977_v15, %v1977_v15 }
  0x3e   : > { %v1651_v26 = vadd.f32 %v1619_v10, %v1486_v9  ;;  %v1814_v36 = vadd.f32 %v1782_v44, %v1650_v32  ;;  %v800_v37 = vmul.f32 %v2788_v17, %v2826_v59  ;;  %v963_v45 = vmul.f32 %v2913_v31, %v2791_v18  ;;  %v3027_v10 = vld [vmem:[#allocation2 + $0x60] sm:$0xff]  ;;  %v3029_v44 = vld [vmem:[#allocation2 + $0x68] sm:$0xff] }
  0x3f   : > { %2575 = vst [vmem:[%s2985_s10] sm:$0xff] %v2574_v27   ;;  %v2302_v11 = vadd.f32 %v2271_v55, %v2270_v28  ;;  %v831_v46 = vadd.f32 %v799_v43, %v635_v42  ;;  %v964_v48 = vmul.f32 %v2941_v41, %v2791_v18  ;;  %v1127_v38 = vmul.f32 %v2973_v13, %v2794_v19  ;;  %v2659_v9 = vld [vmem:[%s2770_s26 + $0x48] sm:$0xff]  }
  0x40   : > { %v1128_v39 = vmul.f32 %v2976_v40, %v2794_v19  ;;  %v1815_v2 = vadd.f32 %v1783_v22, %v1651_v26  ;;  %v1978_v58 = vadd.f32 %v1946_v57, %v1814_v36  ;;  %v832_v3 = vadd.f32 %v800_v37, %v636_v24  ;;  %v3038_v42 = vld [vmem:[#allocation2 + $0x62] sm:$0xff]  ;;  %v3042_v36 = vld [vmem:[#allocation2 + $0x6a] sm:$0xff] }
  0x41   : > { %v1291_v59 = vmul.f32 %v2901_v23, %v2830_v62  ;;  %v995_v7 = vadd.f32 %v963_v45, %v831_v46  ;;  %v1292_v31 = vmul.f32 %v2901_v23, %v2832_v63  ;;  %v1455_v41 = vmul.f32 %v2994_v34, %v2906_v29 }
  0x42   : > { %v1456_v14 = vmul.f32 %v2996_v56, %v2906_v29  ;;  %v1979_v15 = vadd.f32 %v1947_v35, %v1815_v2  ;;  %v2233_v12 = vadd.f32 %v2232_v54, %v1978_v58  ;;  %v2272_v20 = vmul.f32 %v1978_v58, %v1978_v58 }
  0x43   : > { %v996_v21 = vadd.f32 %v964_v48, %v832_v3  ;;  %v1159_v22 = vadd.f32 %v1127_v38, %v995_v7  ;;  %v1620_v27 = vmul.f32 %v2911_v30, %v3027_v10  ;;  %v1621_v28 = vmul.f32 %v2911_v30, %v3029_v44 }
  0x44   : > { %v1784_v55 = vmul.f32 %v2922_v33, %v2834_v0  ;;  %v2579_v32 = vpack.c.bf16 %v1979_v15, %v1978_v58  ;;  %v2234_v54 = vadd.f32 %v2233_v12, %v1979_v15  ;;  %v2273_v57 = vmul.f32 %v1979_v15, %v1979_v15 }
  0x45   : > { %v2303_v35 = vadd.f32 %v2302_v11, %v2272_v20  ;;  %v1160_v24 = vadd.f32 %v1128_v39, %v996_v21  ;;  %v1323_v43 = vadd.f32 %v1291_v59, %v1159_v22  ;;  %v1785_v26 = vmul.f32 %v2922_v33, %v2836_v1 }
  0x46   : > { %v1948_v37 = vmul.f32 %v2885_v6, %v3038_v42  ;;  %2666 = vst [vmem:[%s2985_s10 + $0x8] sm:$0xff] %v2579_v32   ;;  %v1949_v46 = vmul.f32 %v2885_v6, %v3042_v36  ;;  %v2545_v48 = vunpack.c.l.bf16 %v2659_v9  ;;  %v2546_v38 = vunpack.c.h.bf16 %v2659_v9 }
  0x47   : > { %v2304_v45 = vadd.f32 %v2303_v35, %v2273_v57  ;;  %v1324_v11 = vadd.f32 %v1292_v31, %v1160_v24  ;;  %v1487_v2 = vadd.f32 %v1455_v41, %v1323_v43  ;;  %v637_v39 = vmul.f32 %v2973_v13, %v2785_v16 }
  0x48   : > { %v638_v58 = vmul.f32 %v2976_v40, %v2785_v16  ;;  %v325_v3 = vmul.f32 %v2545_v48, %v2775_v8  ;;  %v326_v59 = vmul.f32 %v2546_v38, %v2775_v8  ;;  %v801_v7 = vmul.f32 %v2788_v17, %v2830_v62 }
  0x49   : > { %v802_v15 = vmul.f32 %v2788_v17, %v2832_v63  ;;  %v1488_v12 = vadd.f32 %v1456_v14, %v1324_v11  ;;  %v1652_v20 = vadd.f32 %v1620_v27, %v1487_v2  ;;  %v965_v31 = vmul.f32 %v2994_v34, %v2791_v18 }
  0x4a   : > { %v966_v13 = vmul.f32 %v2996_v56, %v2791_v18  ;;  %v364_v40 = vadd.f32 %v2800_v25, %v325_v3  ;;  %v365_v41 = vadd.f32 %v2800_v25, %v326_v59  ;;  %v833_v21 = vadd.f32 %v801_v7, %v637_v39 }
  0x4b   : > { %v834_v22 = vadd.f32 %v802_v15, %v638_v58  ;;  %v1653_v9 = vadd.f32 %v1621_v28, %v1488_v12  ;;  %v1816_v32 = vadd.f32 %v1784_v55, %v1652_v20  ;;  %v1129_v62 = vmul.f32 %v3027_v10, %v2794_v19  ;;  %v3087_v20 = vld [vmem:[#allocation2 + $0x80] sm:$0xff] }
  0x4c   : > { %v1130_v63 = vmul.f32 %v3029_v44, %v2794_v19  ;;  %v396_v14 = vmax.f32 %v364_v40, 0.0  ;;  %v397_v27 = vmax.f32 %v365_v41, 0.0  ;;  %v997_v34 = vadd.f32 %v965_v31, %v833_v21  ;;  %v2660_v31 = vld [vmem:[%s2770_s26 + $0x50] sm:$0xff]  }
  0x4d   : > { %v998_v57 = vadd.f32 %v966_v13, %v834_v22  ;;  %v1817_v35 = vadd.f32 %v1785_v26, %v1653_v9  ;;  %v1980_v56 = vadd.f32 %v1948_v37, %v1816_v32  ;;  %v1293_v24 = vmul.f32 %v2901_v23, %v2834_v0  ;;  %v3079_v37 = vld [vmem:[#allocation2 + $0x78] sm:$0xff]  ;;  %v3096_v9 = vld [vmem:[#allocation2 + $0x82] sm:$0xff] }
  0x4e   : > { %v1294_v43 = vmul.f32 %v2901_v23, %v2836_v1  ;;  %v3073_v28 = vmin.f32 %v396_v14, 6.0  ;;  %v3075_v55 = vmin.f32 %v397_v27, 6.0  ;;  %v1161_v48 = vadd.f32 %v1129_v62, %v997_v34  ;;  %v3094_v22 = vld [vmem:[#allocation2 + $0x7a] sm:$0xff] }
  0x4f   : > { %v1162_v38 = vadd.f32 %v1130_v63, %v998_v57  ;;  %v1981_v11 = vadd.f32 %v1949_v46, %v1817_v35  ;;  %v2235_v2 = vadd.f32 %v2234_v54, %v1980_v56  ;;  %v2274_v39 = vmul.f32 %v1980_v56, %v1980_v56 }
  0x50   : > { %v1457_v26 = vmul.f32 %v3038_v42, %v2906_v29  ;;  %515 = vst [vmem:[#allocation2 + $0xf1] sm:$0xff] %v3073_v28  ;;  %516 = vst [vmem:[#allocation2 + $0xf9] sm:$0xff] %v3075_v55  ;;  %v1325_v58 = vadd.f32 %v1293_v24, %v1161_v48  ;;  %v1458_v59 = vmul.f32 %v3042_v36, %v2906_v29  ;;  %v2549_v34 = vunpack.c.l.bf16 %v2660_v31 }
  0x51   : > { %v1326_v3 = vadd.f32 %v1294_v43, %v1162_v38  ;;  %v1622_v46 = vmul.f32 %v2911_v30, %v3079_v37  ;;  %v2584_v54 = vpack.c.bf16 %v1981_v11, %v1980_v56  ;;  %v2236_v7 = vadd.f32 %v2235_v2, %v1981_v11 }
  0x52   : > { %v2275_v15 = vmul.f32 %v1981_v11, %v1981_v11  ;;  %v2305_v12 = vadd.f32 %v2304_v45, %v2274_v39  ;;  %v1489_v13 = vadd.f32 %v1457_v26, %v1325_v58  ;;  %v1623_v41 = vmul.f32 %v2911_v30, %v3087_v20 }
  0x53   : > { %v1490_v40 = vadd.f32 %v1458_v59, %v1326_v3  ;;  %v1786_v21 = vmul.f32 %v2922_v33, %v2862_v50  ;;  %2667 = vst [vmem:[%s2985_s10 + $0x10] sm:$0xff] %v2584_v54   ;;  %v1787_v45 = vmul.f32 %v2922_v33, %v2864_v51  ;;  %v1950_v62 = vmul.f32 %v2885_v6, %v3094_v22 }
  0x54   : > { %v2306_v32 = vadd.f32 %v2305_v12, %v2275_v15  ;;  %v1951_v63 = vmul.f32 %v2885_v6, %v3096_v9  ;;  %v1654_v14 = vadd.f32 %v1622_v46, %v1489_v13  ;;  %v2550_v57 = vunpack.c.h.bf16 %v2660_v31 }
  0x55   : > { %v1655_v27 = vadd.f32 %v1623_v41, %v1490_v40  ;;  %v639_v35 = vmul.f32 %v3027_v10, %v2785_v16  ;;  %v640_v56 = vmul.f32 %v3029_v44, %v2785_v16  ;;  %v803_v24 = vmul.f32 %v2788_v17, %v2834_v0 }
  0x56   : > { %v804_v43 = vmul.f32 %v2788_v17, %v2836_v1  ;;  %v1818_v48 = vadd.f32 %v1786_v21, %v1654_v14  ;;  %v327_v11 = vmul.f32 %v2549_v34, %v2775_v8  ;;  %v328_v2 = vmul.f32 %v2550_v57, %v2775_v8 }
  0x57   : > { %v1819_v38 = vadd.f32 %v1787_v45, %v1655_v27  ;;  %v835_v39 = vadd.f32 %v803_v24, %v639_v35  ;;  %v967_v10 = vmul.f32 %v3038_v42, %v2791_v18  ;;  %v968_v44 = vmul.f32 %v3042_v36, %v2791_v18  ;;  %v3138_v35 = vld [vmem:[#allocation2 + $0x90] sm:$0xff] }
  0x58   : > { %v836_v26 = vadd.f32 %v804_v43, %v640_v56  ;;  %v1982_v58 = vadd.f32 %v1950_v62, %v1818_v48  ;;  %v366_v3 = vadd.f32 %v2800_v25, %v327_v11  ;;  %v367_v1 = vadd.f32 %v2800_v25, %v328_v2  ;;  %v2661_v56 = vld [vmem:[%s2770_s26 + $0x58] sm:$0xff]  }
  0x59   : > { %v1983_v0 = vadd.f32 %v1951_v63, %v1819_v38  ;;  %v999_v59 = vadd.f32 %v967_v10, %v835_v39  ;;  %v1131_v54 = vmul.f32 %v3079_v37, %v2794_v19  ;;  %v1132_v15 = vmul.f32 %v3087_v20, %v2794_v19  ;;  %v3141_v48 = vld [vmem:[#allocation2 + $0x98] sm:$0xff] }
  0x5a   : > { %v1000_v46 = vadd.f32 %v968_v44, %v836_v26  ;;  %v2237_v42 = vadd.f32 %v2236_v7, %v1982_v58  ;;  %v2276_v31 = vmul.f32 %v1982_v58, %v1982_v58  ;;  %v398_v13 = vmax.f32 %v366_v3, 0.0  ;;  %v3145_v11 = vld [vmem:[#allocation2 + $0x92] sm:$0xff]  ;;  %v3155_v10 = vld [vmem:[#allocation2 + $0x9a] sm:$0xff] }
  0x5b   : > { %v2589_v12 = vpack.c.bf16 %v1983_v0, %v1982_v58  ;;  %v2277_v36 = vmul.f32 %v1983_v0, %v1983_v0  ;;  %v399_v40 = vmax.f32 %v367_v1, 0.0  ;;  %v1163_v41 = vadd.f32 %v1131_v54, %v999_v59 }
  0x5c   : > { %v1164_v21 = vadd.f32 %v1132_v15, %v1000_v46  ;;  %v2238_v45 = vadd.f32 %v2237_v42, %v1983_v0  ;;  %v2307_v62 = vadd.f32 %v2306_v32, %v2276_v31  ;;  %v1295_v63 = vmul.f32 %v2901_v23, %v2862_v50 }
  0x5d   : > { %2668 = vst [vmem:[%s2985_s10 + $0x18] sm:$0xff] %v2589_v12   ;;  %v1296_v14 = vmul.f32 %v2901_v23, %v2864_v51  ;;  %v3130_v27 = vmin.f32 %v398_v13, 6.0  ;;  %v3132_v34 = vmin.f32 %v399_v40, 6.0  ;;  %v1459_v7 = vmul.f32 %v3094_v22, %v2906_v29 }
  0x5e   : > { %v1460_v57 = vmul.f32 %v3096_v9, %v2906_v29  ;;  %v2308_v32 = vadd.f32 %v2307_v62, %v2277_v36  ;;  %v1327_v24 = vadd.f32 %v1295_v63, %v1163_v41  ;;  %v1624_v38 = vmul.f32 %v2911_v30, %v3138_v35 }
  0x5f   : > { %v1328_v43 = vadd.f32 %v1296_v14, %v1164_v21  ;;  %517 = vst [vmem:[#allocation2 + $0x109] sm:$0xff] %v3130_v27  ;;  %518 = vst [vmem:[#allocation2 + $0x111] sm:$0xff] %v3132_v34  ;;  %v1625_v2 = vmul.f32 %v2911_v30, %v3141_v48  ;;  %v1788_v39 = vmul.f32 %v2922_v33, %v2866_v52  ;;  %v2553_v1 = vunpack.c.l.bf16 %v2661_v56 }
  0x60   : > { %v1789_v26 = vmul.f32 %v2922_v33, %v2868_v53  ;;  %v1952_v44 = vmul.f32 %v2885_v6, %v3145_v11  ;;  %v1491_v58 = vadd.f32 %v1459_v7, %v1327_v24  ;;  %v1953_v3 = vmul.f32 %v2885_v6, %v3155_v10 }
  0x61   : > { %v1492_v0 = vadd.f32 %v1460_v57, %v1328_v43  ;;  %v2554_v59 = vunpack.c.h.bf16 %v2661_v56  ;;  %v641_v46 = vmul.f32 %v3079_v37, %v2785_v16  ;;  %v642_v54 = vmul.f32 %v3087_v20, %v2785_v16 }
  0x62   : > { %v805_v15 = vmul.f32 %v2788_v17, %v2862_v50  ;;  %v1656_v12 = vadd.f32 %v1624_v38, %v1491_v58  ;;  %v329_v31 = vmul.f32 %v2553_v1, %v2775_v8  ;;  %v806_v36 = vmul.f32 %v2788_v17, %v2864_v51 }
  0x63   : > { %v1657_v42 = vadd.f32 %v1625_v2, %v1492_v0  ;;  %v330_v13 = vmul.f32 %v2554_v59, %v2775_v8  ;;  %v969_v41 = vmul.f32 %v3094_v22, %v2791_v18  ;;  %v970_v37 = vmul.f32 %v3096_v9, %v2791_v18 }
  0x64   : > { %v837_v40 = vadd.f32 %v805_v15, %v641_v46  ;;  %v1820_v20 = vadd.f32 %v1788_v39, %v1656_v12  ;;  %v368_v50 = vadd.f32 %v2800_v25, %v329_v31  ;;  %v838_v62 = vadd.f32 %v806_v36, %v642_v54  ;;  %v2662_v31 = vld [vmem:[%s2770_s26 + $0x60] sm:$0xff]  }
  0x65   : > { %v1821_v21 = vadd.f32 %v1789_v26, %v1657_v42  ;;  %v369_v63 = vadd.f32 %v2800_v25, %v330_v13  ;;  %v1133_v51 = vmul.f32 %v3138_v35, %v2794_v19  ;;  %v1134_v7 = vmul.f32 %v3141_v48, %v2794_v19  ;;  %v3194_v42 = vld [vmem:[#allocation2 + $0xa8] sm:$0xff] }
  0x66   : > { %v1001_v14 = vadd.f32 %v969_v41, %v837_v40  ;;  %v1984_v57 = vadd.f32 %v1952_v44, %v1820_v20  ;;  %v400_v56 = vmax.f32 %v368_v50, 0.0  ;;  %v1002_v24 = vadd.f32 %v970_v37, %v838_v62  ;;  %v3207_v41 = vld [vmem:[#allocation2 + $0xaa] sm:$0xff]  ;;  %v3211_v50 = vld [vmem:[#allocation2 + $0xb2] sm:$0xff] }
  0x67   : > { %v1985_v22 = vadd.f32 %v1953_v3, %v1821_v21  ;;  %v401_v9 = vmax.f32 %v369_v63, 0.0  ;;  %v1297_v38 = vmul.f32 %v2901_v23, %v2866_v52  ;;  %v1298_v2 = vmul.f32 %v2901_v23, %v2868_v53 }
  0x68   : > { %v1165_v43 = vadd.f32 %v1133_v51, %v1001_v14  ;;  %v2239_v26 = vadd.f32 %v2238_v45, %v1984_v57  ;;  %v2278_v58 = vmul.f32 %v1984_v57, %v1984_v57  ;;  %v3185_v1 = vmin.f32 %v400_v56, 6.0  ;;  %v3196_v45 = vld [vmem:[#allocation2 + $0xb0] sm:$0xff] }
  0x69   : > { %v2594_v39 = vpack.c.bf16 %v1985_v22, %v1984_v57  ;;  %v2279_v0 = vmul.f32 %v1985_v22, %v1985_v22  ;;  %v3187_v44 = vmin.f32 %v401_v9, 6.0  ;;  %v1166_v3 = vadd.f32 %v1134_v7, %v1002_v24 }
  0x6a   : > { %v1329_v59 = vadd.f32 %v1297_v38, %v1165_v43  ;;  %v2240_v46 = vadd.f32 %v2239_v26, %v1985_v22  ;;  %v2309_v54 = vadd.f32 %v2308_v32, %v2278_v58  ;;  %v1461_v15 = vmul.f32 %v3145_v11, %v2906_v29  ;;  %519 = vst [vmem:[#allocation2 + $0x121] sm:$0xff] %v3185_v1 }
  0x6b   : > { %2669 = vst [vmem:[%s2985_s10 + $0x20] sm:$0xff] %v2594_v39   ;;  %v1462_v12 = vmul.f32 %v3155_v10, %v2906_v29  ;;  %520 = vst [vmem:[#allocation2 + $0x129] sm:$0xff] %v3187_v44  ;;  %v1330_v36 = vadd.f32 %v1298_v2, %v1166_v3  ;;  %v1626_v13 = vmul.f32 %v2911_v30, %v3194_v42  ;;  %v2557_v51 = vunpack.c.l.bf16 %v2662_v31 }
  0x6c   : > { %v1627_v32 = vmul.f32 %v2911_v30, %v3196_v45  ;;  %v1790_v40 = vmul.f32 %v2922_v33, %v2870_v60  ;;  %v2310_v37 = vadd.f32 %v2309_v54, %v2279_v0  ;;  %v1493_v20 = vadd.f32 %v1461_v15, %v1329_v59 }
  0x6d   : > { %v1791_v21 = vmul.f32 %v2922_v33, %v2872_v61  ;;  %v1954_v62 = vmul.f32 %v2885_v6, %v3207_v41  ;;  %v1494_v63 = vadd.f32 %v1462_v12, %v1330_v36  ;;  %v1955_v14 = vmul.f32 %v2885_v6, %v3211_v50 }
  0x6e   : > { %v2558_v7 = vunpack.c.h.bf16 %v2662_v31  ;;  %v1658_v57 = vadd.f32 %v1626_v13, %v1493_v20  ;;  %v643_v22 = vmul.f32 %v3138_v35, %v2785_v16  ;;  %v644_v56 = vmul.f32 %v3141_v48, %v2785_v16 }
  0x6f   : > { %v807_v24 = vmul.f32 %v2788_v17, %v2866_v52  ;;  %v1659_v9 = vadd.f32 %v1627_v32, %v1494_v63  ;;  %v331_v43 = vmul.f32 %v2557_v51, %v2775_v8  ;;  %v808_v2 = vmul.f32 %v2788_v17, %v2868_v53 }
  0x70   : > { %v332_v38 = vmul.f32 %v2558_v7, %v2775_v8  ;;  %v1822_v39 = vadd.f32 %v1790_v40, %v1658_v57  ;;  %v971_v58 = vmul.f32 %v3145_v11, %v2791_v18  ;;  %v972_v35 = vmul.f32 %v3155_v10, %v2791_v18 }
  0x71   : > { %v839_v26 = vadd.f32 %v807_v24, %v643_v22  ;;  %v1823_v48 = vadd.f32 %v1791_v21, %v1659_v9  ;;  %v370_v0 = vadd.f32 %v2800_v25, %v331_v43  ;;  %v840_v3 = vadd.f32 %v808_v2, %v644_v56  ;;  %v3245_v22 = vld [vmem:[#allocation2 + $0xc0] sm:$0xff]  ;;  %v3254_v24 = vld [vmem:[#allocation2 + $0xc8] sm:$0xff] }
  0x72   : > { %v371_v52 = vadd.f32 %v2800_v25, %v332_v38  ;;  %v1986_v59 = vadd.f32 %v1954_v62, %v1822_v39  ;;  %v1135_v15 = vmul.f32 %v3194_v42, %v2794_v19  ;;  %v1136_v53 = vmul.f32 %v3196_v45, %v2794_v19  ;;  %v2663_v9 = vld [vmem:[%s2770_s26 + $0x68] sm:$0xff]  }
  0x73   : > { %v1003_v54 = vadd.f32 %v971_v58, %v839_v26  ;;  %v1987_v12 = vadd.f32 %v1955_v14, %v1823_v48  ;;  %v402_v31 = vmax.f32 %v370_v0, 0.0  ;;  %v1004_v36 = vadd.f32 %v972_v35, %v840_v3  ;;  %v3265_v26 = vld [vmem:[#allocation2 + $0xca] sm:$0xff] }
  0x74   : > { %v403_v11 = vmax.f32 %v371_v52, 0.0  ;;  %v2241_v10 = vadd.f32 %v2240_v46, %v1986_v59  ;;  %v2280_v13 = vmul.f32 %v1986_v59, %v1986_v59  ;;  %v1299_v40 = vmul.f32 %v2901_v23, %v2870_v60  ;;  %v741_v58 = vld [vmem:[#allocation2 + $0xa9] sm:$0xff]  ;;  %v742_v35 = vld [vmem:[#allocation2 + $0xb1] sm:$0xff] }
  0x75   : > { %v1167_v32 = vadd.f32 %v1135_v15, %v1003_v54  ;;  %v2599_v20 = vpack.c.bf16 %v1987_v12, %v1986_v59  ;;  %v2281_v21 = vmul.f32 %v1987_v12, %v1987_v12  ;;  %v3239_v62 = vmin.f32 %v402_v31, 6.0 }
  0x76   : > { %v3241_v63 = vmin.f32 %v403_v11, 6.0  ;;  %v2242_v51 = vadd.f32 %v2241_v10, %v1987_v12  ;;  %v2311_v7 = vadd.f32 %v2310_v37, %v2280_v13  ;;  %v1168_v14 = vadd.f32 %v1136_v53, %v1004_v36 }
  0x77   : > { %v1300_v57 = vmul.f32 %v2901_v23, %v2872_v61  ;;  %2670 = vst [vmem:[%s2985_s10 + $0x28] sm:$0xff] %v2599_v20   ;;  %521 = vst [vmem:[#allocation2 + $0x139] sm:$0xff] %v3239_v62  ;;  %v1331_v60 = vadd.f32 %v1299_v40, %v1167_v32  ;;  %v1463_v46 = vmul.f32 %v3207_v41, %v2906_v29  ;;  %v3258_v61 = vld [vmem:[#allocation2 + $0xc2] sm:$0xff]  ;;  %v2561_v54 = vunpack.c.l.bf16 %v2663_v9 }
  0x78   : > { %522 = vst [vmem:[#allocation2 + $0x141] sm:$0xff] %v3241_v63  ;;  %v1464_v56 = vmul.f32 %v3211_v50, %v2906_v29  ;;  %v1628_v37 = vmul.f32 %v2911_v30, %v3245_v22  ;;  %v2312_v43 = vadd.f32 %v2311_v7, %v2281_v21  ;;  %v1629_v2 = vmul.f32 %v2911_v30, %v3254_v24 }
  0x79   : > { %v1332_v38 = vadd.f32 %v1300_v57, %v1168_v14  ;;  %v1792_v39 = vmul.f32 %v2922_v33, %v2874_v4  ;;  %v1495_v48 = vadd.f32 %v1463_v46, %v1331_v60  ;;  %v1793_v0 = vmul.f32 %v2922_v33, %v2876_v5  ;;  %v1233_v46 = vld [vmem:[#allocation2 + $0xc1] sm:$0xff] }
  0x7a   : > { %v1956_v52 = vmul.f32 %v2885_v6, %v3258_v61  ;;  %v1957_v3 = vmul.f32 %v2885_v6, %v3265_v26  ;;  %v2562_v15 = vunpack.c.h.bf16 %v2663_v9  ;;  %v645_v4 = vmul.f32 %v3194_v42, %v2785_v16 }
  0x7b   : > { %v1496_v59 = vadd.f32 %v1464_v56, %v1332_v38  ;;  %v1660_v53 = vadd.f32 %v1628_v37, %v1495_v48  ;;  %v646_v12 = vmul.f32 %v3196_v45, %v2785_v16  ;;  %v809_v31 = vmul.f32 %v2788_v17, %v741_v58 }
  0x7c   : > { %v810_v5 = vmul.f32 %v2788_v17, %v742_v35  ;;  %v333_v36 = vmul.f32 %v2561_v54, %v2775_v8  ;;  %v334_v10 = vmul.f32 %v2562_v15, %v2775_v8  ;;  %v973_v13 = vmul.f32 %v3207_v41, %v2791_v18 }
  0x7d   : > { %v1661_v11 = vadd.f32 %v1629_v2, %v1496_v59  ;;  %v1824_v32 = vadd.f32 %v1792_v39, %v1660_v53  ;;  %v841_v40 = vadd.f32 %v809_v31, %v645_v4  ;;  %v974_v42 = vmul.f32 %v3211_v50, %v2791_v18  ;;  %v3297_v4 = vld [vmem:[#allocation2 + $0xd8] sm:$0xff]  ;;  %v3299_v53 = vld [vmem:[#allocation2 + $0xe0] sm:$0xff] }
  0x7e   : > { %v842_v20 = vadd.f32 %v810_v5, %v646_v12  ;;  %v372_v45 = vadd.f32 %v2800_v25, %v333_v36  ;;  %v373_v7 = vadd.f32 %v2800_v25, %v334_v10  ;;  %v1137_v14 = vmul.f32 %v3245_v22, %v2794_v19 }
  0x7f   : > { %v1825_v21 = vadd.f32 %v1793_v0, %v1661_v11  ;;  %v1988_v57 = vadd.f32 %v1956_v52, %v1824_v32  ;;  %v1005_v60 = vadd.f32 %v973_v13, %v841_v40  ;;  %v1138_v41 = vmul.f32 %v3254_v24, %v2794_v19  ;;  %v1234_v52 = vld [vmem:[#allocation2 + $0xc9] sm:$0xff]  ;;  %v3317_v32 = vld [vmem:[#allocation2 + $0xda] sm:$0xff] }
  0x80   : > { %v1006_v8 = vadd.f32 %v974_v42, %v842_v20  ;;  %v404_v37 = vmax.f32 %v372_v45, 0.0  ;;  %v405_v9 = vmax.f32 %v373_v7, 0.0  ;;  %v1301_v50 = vmul.f32 %v2901_v23, %v1233_v46  ;;  %v3319_v40 = vld [vmem:[#allocation2 + $0xe2] sm:$0xff] }
  0x81   : > { %v1989_v56 = vadd.f32 %v1957_v3, %v1825_v21  ;;  %v2243_v38 = vadd.f32 %v2242_v51, %v1988_v57  ;;  %v2282_v2 = vmul.f32 %v1988_v57, %v1988_v57  ;;  %v1169_v25 = vadd.f32 %v1137_v14, %v1005_v60  ;;  %v2664_v51 = vld [vmem:[%s2770_s26 + $0x70] sm:$0xff]   ;;  %v3332_v60 = vld [vmem:[%s3633_s1] ss:$0 sm:$0xff] }
  0x82   : > { %v1170_v39 = vadd.f32 %v1138_v41, %v1006_v8  ;;  %v3292_v48 = vmin.f32 %v404_v37, 6.0  ;;  %v3294_v0 = vmin.f32 %v405_v9, 6.0  ;;  %v1302_v3 = vmul.f32 %v2901_v23, %v1234_v52 }
  0x83   : > { %v2604_v58 = vpack.c.bf16 %v1989_v56, %v1988_v57  ;;  %v2283_v35 = vmul.f32 %v1989_v56, %v1989_v56  ;;  %v2244_v59 = vadd.f32 %v2243_v38, %v1989_v56  ;;  %v2313_v54 = vadd.f32 %v2312_v43, %v2282_v2  ;;  %v3345_v38 = vld [vmem:[%s3634_s2] ss:$0 sm:$0xff] }
  0x84   : > { %v1333_v15 = vadd.f32 %v1301_v50, %v1169_v25  ;;  %523 = vst [vmem:[#allocation2 + $0x151] sm:$0xff] %v3292_v48  ;;  %524 = vst [vmem:[#allocation2 + $0x159] sm:$0xff] %v3294_v0  ;;  %v1465_v12 = vmul.f32 %v3258_v61, %v2906_v29  ;;  %v1466_v31 = vmul.f32 %v3265_v26, %v2906_v29  ;;  %v2565_v45 = vunpack.c.l.bf16 %v2664_v51 }
  0x85   : > { %2671 = vst [vmem:[%s2985_s10 + $0x30] sm:$0xff] %v2604_v58   ;;  %v1630_v43 = vmul.f32 %v2911_v30, %v3297_v4  ;;  %v1631_v5 = vmul.f32 %v2911_v30, %v3299_v53  ;;  %v2314_v11 = vadd.f32 %v2313_v54, %v2283_v35  ;;  %v1334_v36 = vadd.f32 %v1302_v3, %v1170_v39 }
  0x86   : > { %v1794_v10 = vmul.f32 %v2922_v33, %v2965_v47  ;;  %v1795_v13 = vmul.f32 %v2922_v33, %v2967_v49  ;;  %v1497_v20 = vadd.f32 %v1465_v12, %v1333_v15  ;;  %v1958_v42 = vmul.f32 %v2885_v6, %v3317_v32  ;;  %v1235_v15 = vld [vmem:[#allocation2 + $0xd9] sm:$0xff] }
  0x87   : > { %v1959_v21 = vmul.f32 %v2885_v6, %v3319_v40  ;;  %v1498_v7 = vadd.f32 %v1466_v31, %v1334_v36  ;;  %v2566_v14 = vunpack.c.h.bf16 %v2664_v51  ;;  %v647_v47 = vmul.f32 %v3245_v22, %v2785_v16  ;;  %v1236_v51 = vld [vmem:[#allocation2 + $0xe1] sm:$0xff] }
  0x88   : > { %v648_v49 = vmul.f32 %v3254_v24, %v2785_v16  ;;  %v1662_v57 = vadd.f32 %v1630_v43, %v1497_v20  ;;  %v335_v8 = vmul.f32 %v3332_v60, %v2565_v45  ;;  %v811_v41 = vmul.f32 %v1233_v46, %v2788_v17 }
  0x89   : > { %v812_v56 = vmul.f32 %v1234_v52, %v2788_v17  ;;  %v1663_v37 = vadd.f32 %v1631_v5, %v1498_v7  ;;  %v336_v9 = vmul.f32 %v3332_v60, %v2566_v14  ;;  %v975_v22 = vmul.f32 %v3258_v61, %v2791_v18 }
  0x8a   : > { %v976_v24 = vmul.f32 %v3265_v26, %v2791_v18  ;;  %v1826_v50 = vadd.f32 %v1794_v10, %v1662_v57  ;;  %v374_v2 = vadd.f32 %v3345_v38, %v335_v8  ;;  %v843_v46 = vadd.f32 %v811_v41, %v647_v47  ;;  %v3362_v8 = vld [vmem:[#allocation2 + $0xf0] sm:$0xff] }
  0x8b   : > { %v844_v25 = vadd.f32 %v812_v56, %v648_v49  ;;  %v1827_v39 = vadd.f32 %v1795_v13, %v1663_v37  ;;  %v375_v58 = vadd.f32 %v3345_v38, %v336_v9  ;;  %v1139_v35 = vmul.f32 %v3297_v4, %v2794_v19 }
  0x8c   : > { %v1140_v61 = vmul.f32 %v3299_v53, %v2794_v19  ;;  %v1990_v26 = vadd.f32 %v1958_v42, %v1826_v50  ;;  %v406_v52 = vmax.f32 %v374_v2, 0.0  ;;  %v1007_v54 = vadd.f32 %v975_v22, %v843_v46  ;;  %v3378_v2 = vld [vmem:[#allocation2 + $0xf2] sm:$0xff]  ;;  %v3380_v46 = vld [vmem:[#allocation2 + $0xfa] sm:$0xff] }
  0x8d   : > { %v1008_v3 = vadd.f32 %v976_v24, %v844_v25  ;;  %v1991_v12 = vadd.f32 %v1959_v21, %v1827_v39  ;;  %v407_v31 = vmax.f32 %v375_v58, 0.0  ;;  %v1303_v43 = vmul.f32 %v2901_v23, %v1235_v15 }
  0x8e   : > { %v1304_v5 = vmul.f32 %v2901_v23, %v1236_v51  ;;  %v2245_v36 = vadd.f32 %v2244_v59, %v1990_v26  ;;  %v2284_v10 = vmul.f32 %v1990_v26, %v1990_v26  ;;  %v3355_v13 = vmin.f32 %v406_v52, 6.0  ;;  %v3364_v59 = vld [vmem:[#allocation2 + $0xf8] sm:$0xff] }
  0x8f   : > { %v1171_v20 = vadd.f32 %v1139_v35, %v1007_v54  ;;  %v2609_v45 = vpack.c.bf16 %v1991_v12, %v1990_v26  ;;  %v2285_v7 = vmul.f32 %v1991_v12, %v1991_v12  ;;  %v3357_v42 = vmin.f32 %v407_v31, 6.0 }
  0x90   : > { %v1172_v14 = vadd.f32 %v1140_v61, %v1008_v3  ;;  %v2246_v47 = vadd.f32 %v2245_v36, %v1991_v12  ;;  %v2315_v49 = vadd.f32 %v2314_v11, %v2284_v10  ;;  %525 = vst [vmem:[#allocation2 + $0x169] sm:$0xff] %v3355_v13  ;;  %v1467_v57 = vmul.f32 %v3317_v32, %v2906_v29 }
  0x91   : > { %v1335_v21 = vadd.f32 %v1303_v43, %v1171_v20  ;;  %2672 = vst [vmem:[%s2985_s10 + $0x38] sm:$0xff] %v2609_v45   ;;  %526 = vst [vmem:[#allocation2 + $0x171] sm:$0xff] %v3357_v42  ;;  %v1468_v56 = vmul.f32 %v3319_v40, %v2906_v29  ;;  %v1632_v11 = vmul.f32 %v2911_v30, %v3362_v8 }
  0x92   : > { %v1336_v41 = vadd.f32 %v1304_v5, %v1172_v14  ;;  %v1633_v37 = vmul.f32 %v2911_v30, %v3364_v59  ;;  %v2316_v9 = vadd.f32 %v2315_v49, %v2285_v7  ;;  %v1796_v24 = vmul.f32 %v2922_v33, %v3073_v28  ;;  %v3408_v7 = vld [vmem:[#allocation2 + $0x108] sm:$0xff]  ;;  %v3410_v14 = vld [vmem:[#allocation2 + $0x110] sm:$0xff] }
  0x93   : > { %v1499_v22 = vadd.f32 %v1467_v57, %v1335_v21  ;;  %v1797_v50 = vmul.f32 %v2922_v33, %v3075_v55  ;;  %v1960_v39 = vmul.f32 %v2885_v6, %v3378_v2  ;;  %v1961_v58 = vmul.f32 %v2885_v6, %v3380_v46 }
  0x94   : > { %v1500_v25 = vadd.f32 %v1468_v56, %v1336_v41  ;;  %v649_v35 = vmul.f32 %v3297_v4, %v2785_v16  ;;  %v650_v26 = vmul.f32 %v3299_v53, %v2785_v16  ;;  %v813_v52 = vmul.f32 %v1235_v15, %v2788_v17 }
  0x95   : > { %v1664_v61 = vadd.f32 %v1632_v11, %v1499_v22  ;;  %v814_v54 = vmul.f32 %v1236_v51, %v2788_v17  ;;  %v977_v12 = vmul.f32 %v3317_v32, %v2791_v18  ;;  %v978_v31 = vmul.f32 %v3319_v40, %v2791_v18 }
  0x96   : > { %v1665_v3 = vadd.f32 %v1633_v37, %v1500_v25  ;;  %v1141_v6 = vmul.f32 %v3362_v8, %v2794_v19  ;;  %v845_v4 = vadd.f32 %v813_v52, %v649_v35  ;;  %v1142_v53 = vmul.f32 %v3364_v59, %v2794_v19  ;;  %v3426_v35 = vld [vmem:[%s3635_s3 + $0x8] ss:$0 sm:$0xff] }
  0x97   : > { %v1828_v43 = vadd.f32 %v1796_v24, %v1664_v61  ;;  %v846_v5 = vadd.f32 %v814_v54, %v650_v26  ;;  %v1305_v15 = vmul.f32 %v2901_v23, %v3073_v28  ;;  %v1306_v51 = vmul.f32 %v2901_v23, %v3075_v55  ;;  %v3418_v24 = vld [vmem:[#allocation2 + $0x10a] sm:$0xff] }
  0x98   : > { %v1829_v36 = vadd.f32 %v1797_v50, %v1665_v3  ;;  %v1469_v32 = vmul.f32 %v3378_v2, %v2906_v29  ;;  %v1009_v10 = vadd.f32 %v977_v12, %v845_v4  ;;  %v1470_v45 = vmul.f32 %v3380_v46, %v2906_v29  ;;  %v2665_v50 = vld [vmem:[%s2770_s26 + $0x78] sm:$0xff]  }
  0x99   : > { %v1992_v40 = vadd.f32 %v1960_v39, %v1828_v43  ;;  %v1010_v20 = vadd.f32 %v978_v31, %v846_v5  ;;  %v1634_v21 = vmul.f32 %v2911_v30, %v3408_v7  ;;  %v1635_v57 = vmul.f32 %v2911_v30, %v3410_v14  ;;  %v3430_v3 = vld [vmem:[#allocation2 + $0x112] sm:$0xff] }
  0x9a   : > { %v1993_v49 = vadd.f32 %v1961_v58, %v1829_v36  ;;  %v1798_v41 = vmul.f32 %v2922_v33, %v3130_v27  ;;  %v1173_v37 = vadd.f32 %v1141_v6, %v1009_v10  ;;  %v1799_v58 = vmul.f32 %v2922_v33, %v3132_v34 }
  0x9b   : > { %v2247_v56 = vadd.f32 %v2246_v47, %v1992_v40  ;;  %v2286_v11 = vmul.f32 %v1992_v40, %v1992_v40  ;;  %v1174_v22 = vadd.f32 %v1142_v53, %v1010_v20  ;;  %v1962_v47 = vmul.f32 %v3426_v35, %v3418_v24 }
  0x9c   : > { %v2614_v25 = vpack.c.bf16 %v1993_v49, %v1992_v40  ;;  %v2287_v39 = vmul.f32 %v1993_v49, %v1993_v49  ;;  %v1337_v52 = vadd.f32 %v1305_v15, %v1173_v37  ;;  %v1963_v12 = vmul.f32 %v3426_v35, %v3430_v3 }
  0x9d   : > { %v2248_v61 = vadd.f32 %v2247_v56, %v1993_v49  ;;  %v2317_v26 = vadd.f32 %v2316_v9, %v2286_v11  ;;  %v1338_v54 = vadd.f32 %v1306_v51, %v1174_v22  ;;  %v2569_v31 = vunpack.c.l.bf16 %v2665_v50 }
  0x9e   : > { %2673 = vst [vmem:[%s2985_s10 + $0x40] sm:$0xff] %v2614_v25   ;;  %v2570_v6 = vunpack.c.h.bf16 %v2665_v50  ;;  %v651_v43 = vmul.f32 %v3362_v8, %v2785_v16  ;;  %v1501_v5 = vadd.f32 %v1469_v32, %v1337_v52  ;;  %v652_v36 = vmul.f32 %v3364_v59, %v2785_v16 }
  0x9f   : > { %v2318_v4 = vadd.f32 %v2317_v26, %v2287_v39  ;;  %v1502_v53 = vadd.f32 %v1470_v45, %v1338_v54  ;;  %v337_v9 = vmul.f32 %v3332_v60, %v2569_v31  ;;  %v815_v51 = vmul.f32 %v2788_v17, %v3073_v28 }
  0xa0   : > { %v338_v15 = vmul.f32 %v3332_v60, %v2570_v6  ;;  %v816_v40 = vmul.f32 %v2788_v17, %v3075_v55  ;;  %v1666_v10 = vadd.f32 %v1634_v21, %v1501_v5  ;;  %v979_v8 = vmul.f32 %v3378_v2, %v2791_v18  ;;  %v1568_v6 = vld [vmem:[#allocation2 + $0x120] sm:$0xff] }
  0xa1   : > { %v1667_v20 = vadd.f32 %v1635_v57, %v1502_v53  ;;  %v980_v32 = vmul.f32 %v3380_v46, %v2791_v18  ;;  %v376_v59 = vadd.f32 %v3345_v38, %v337_v9  ;;  %v847_v49 = vadd.f32 %v815_v51, %v651_v43  ;;  %v1569_v43 = vld [vmem:[#allocation2 + $0x128] sm:$0xff] }
  0xa2   : > { %v377_v45 = vadd.f32 %v3345_v38, %v338_v15  ;;  %v848_v60 = vadd.f32 %v816_v40, %v652_v36  ;;  %v1830_v56 = vadd.f32 %v1798_v41, %v1666_v10  ;;  %v1143_v28 = vmul.f32 %v3408_v7, %v2794_v19 }
  0xa3   : > { %v1831_v11 = vadd.f32 %v1799_v58, %v1667_v20  ;;  %v1144_v55 = vmul.f32 %v3410_v14, %v2794_v19  ;;  %v408_v21 = vmax.f32 %v376_v59, 0.0  ;;  %v1011_v2 = vadd.f32 %v979_v8, %v847_v49  ;;  %v1896_v20 = vld [vmem:[#allocation2 + $0x122] sm:$0xff]  ;;  %v1897_v8 = vld [vmem:[#allocation2 + $0x12a] sm:$0xff] }
  0xa4   : > { %v409_v57 = vmax.f32 %v377_v45, 0.0  ;;  %v1012_v37 = vadd.f32 %v980_v32, %v848_v60  ;;  %v1994_v22 = vadd.f32 %v1962_v47, %v1830_v56  ;;  %v1307_v50 = vmul.f32 %v2901_v23, %v3130_v27 }
  0xa5   : > { %v1995_v46 = vadd.f32 %v1963_v12, %v1831_v11  ;;  %v1308_v38 = vmul.f32 %v2901_v23, %v3132_v34  ;;  %v3459_v41 = vmin.f32 %v408_v21, 6.0  ;;  %v1175_v39 = vadd.f32 %v1143_v28, %v1011_v2 }
  0xa6   : > { %v3461_v25 = vmin.f32 %v409_v57, 6.0  ;;  %v1176_v58 = vadd.f32 %v1144_v55, %v1012_v37  ;;  %v2288_v52 = vmul.f32 %v1994_v22, %v1994_v22  ;;  %v1471_v12 = vmul.f32 %v3418_v24, %v2906_v29 }
  0xa7   : > { %v2619_v26 = vpack.c.bf16 %v1995_v46, %v1994_v22  ;;  %527 = vst [vmem:[#allocation2 + $0x181] sm:$0xff] %v3459_v41  ;;  %v1339_v47 = vadd.f32 %v1307_v50, %v1175_v39  ;;  %v1472_v31 = vmul.f32 %v3430_v3, %v2906_v29  ;;  %v2249_v5 = vadd.f32 %v2248_v61, %v1994_v22 }
  0xa8   : > { %528 = vst [vmem:[#allocation2 + $0x189] sm:$0xff] %v3461_v25  ;;  %v1340_v54 = vadd.f32 %v1308_v38, %v1176_v58  ;;  %v2319_v53 = vadd.f32 %v2318_v4, %v2288_v52  ;;  %v1636_v36 = vmul.f32 %v2911_v30, %v1568_v6  ;;  %v1637_v9 = vmul.f32 %v2911_v30, %v1569_v43  ;;  %v1571_v52 = vld [vmem:[#allocation2 + $0x140] sm:$0xff] }
  0xa9   : > { %2674 = vst [vmem:[%s2985_s10 + $0x48] sm:$0xff] %v2619_v26   ;;  %v1503_v15 = vadd.f32 %v1471_v12, %v1339_v47  ;;  %v1800_v40 = vmul.f32 %v2922_v33, %v3185_v1  ;;  %v1801_v10 = vmul.f32 %v2922_v33, %v3187_v44  ;;  %v2289_v32 = vmul.f32 %v1995_v46, %v1995_v46 }
  0xaa   : > { %v1504_v51 = vadd.f32 %v1472_v31, %v1340_v54  ;;  %v1964_v59 = vmul.f32 %v3426_v35, %v1896_v20  ;;  %v1965_v61 = vmul.f32 %v3426_v35, %v1897_v8  ;;  %v653_v4 = vmul.f32 %v3408_v7, %v2785_v16 }
  0xab   : > { %v1668_v45 = vadd.f32 %v1636_v36, %v1503_v15  ;;  %v654_v60 = vmul.f32 %v3410_v14, %v2785_v16  ;;  %v817_v56 = vmul.f32 %v2788_v17, %v3130_v27  ;;  %v2250_v11 = vadd.f32 %v2249_v5, %v1995_v46 }
  0xac   : > { %v1669_v49 = vadd.f32 %v1637_v9, %v1504_v51  ;;  %v818_v28 = vmul.f32 %v2788_v17, %v3132_v34  ;;  %v981_v55 = vmul.f32 %v3418_v24, %v2791_v18  ;;  %v982_v21 = vmul.f32 %v3430_v3, %v2791_v18  ;;  %v1570_v3 = vld [vmem:[#allocation2 + $0x138] sm:$0xff] }
  0xad   : > { %v2320_v57 = vadd.f32 %v2319_v53, %v2289_v32  ;;  %v1832_v7 = vadd.f32 %v1800_v40, %v1668_v45  ;;  %v849_v37 = vadd.f32 %v817_v56, %v653_v4  ;;  %v1145_v14 = vmul.f32 %v1568_v6, %v2794_v19  ;;  %v1898_v51 = vld [vmem:[#allocation2 + $0x13a] sm:$0xff] }
  0xae   : > { %v1833_v2 = vadd.f32 %v1801_v10, %v1669_v49  ;;  %v850_v22 = vadd.f32 %v818_v28, %v654_v60  ;;  %v1146_v50 = vmul.f32 %v1569_v43, %v2794_v19  ;;  %v1309_v27 = vmul.f32 %v2901_v23, %v3185_v1 }
  0xaf   : > { %v1996_v46 = vadd.f32 %v1964_v59, %v1832_v7  ;;  %v1013_v38 = vadd.f32 %v981_v55, %v849_v37  ;;  %v1310_v24 = vmul.f32 %v2901_v23, %v3187_v44  ;;  %v1473_v58 = vmul.f32 %v1896_v20, %v2906_v29 }
  0xb0   : > { %v1997_v34 = vadd.f32 %v1965_v61, %v1833_v2  ;;  %v1014_v39 = vadd.f32 %v982_v21, %v850_v22  ;;  %v1474_v26 = vmul.f32 %v1897_v8, %v2906_v29  ;;  %v1638_v47 = vmul.f32 %v2911_v30, %v1570_v3 }
  0xb1   : > { %v2251_v12 = vadd.f32 %v2250_v11, %v1996_v46  ;;  %v2290_v31 = vmul.f32 %v1996_v46, %v1996_v46  ;;  %v1639_v5 = vmul.f32 %v2911_v30, %v1571_v52  ;;  %v1177_v36 = vadd.f32 %v1145_v14, %v1013_v38 }
  0xb2   : > { %v2624_v54 = vpack.c.bf16 %v1997_v34, %v1996_v46  ;;  %v2291_v53 = vmul.f32 %v1997_v34, %v1997_v34  ;;  %v1178_v9 = vadd.f32 %v1146_v50, %v1014_v39  ;;  %v1802_v15 = vmul.f32 %v2922_v33, %v3239_v62 }
  0xb3   : > { %v2321_v40 = vadd.f32 %v2320_v57, %v2290_v31  ;;  %v1803_v10 = vmul.f32 %v2922_v33, %v3241_v63  ;;  %v1966_v32 = vmul.f32 %v3426_v35, %v1898_v51  ;;  %v655_v59 = vmul.f32 %v1568_v6, %v2785_v16  ;;  %v1899_v57 = vld [vmem:[#allocation2 + $0x142] sm:$0xff] }
  0xb4   : > { %2675 = vst [vmem:[%s2985_s10 + $0x50] sm:$0xff] %v2624_v54   ;;  %v1341_v61 = vadd.f32 %v1309_v27, %v1177_v36  ;;  %v1342_v4 = vadd.f32 %v1310_v24, %v1178_v9  ;;  %v656_v45 = vmul.f32 %v1569_v43, %v2785_v16  ;;  %v819_v49 = vmul.f32 %v2788_v17, %v3185_v1 }
  0xb5   : > { %v2252_v60 = vadd.f32 %v2251_v12, %v1997_v34  ;;  %v820_v56 = vmul.f32 %v2788_v17, %v3187_v44  ;;  %v983_v11 = vmul.f32 %v1896_v20, %v2791_v18  ;;  %v984_v28 = vmul.f32 %v1897_v8, %v2791_v18  ;;  %v3523_v34 = vld [vmem:[#allocation2 + $0x150] sm:$0xff] }
  0xb6   : > { %v1505_v55 = vadd.f32 %v1473_v58, %v1341_v61  ;;  %v1506_v21 = vadd.f32 %v1474_v26, %v1342_v4  ;;  %v851_v7 = vadd.f32 %v819_v49, %v655_v59  ;;  %v1147_v6 = vmul.f32 %v1570_v3, %v2794_v19  ;;  %v3525_v58 = vld [vmem:[#allocation2 + $0x158] sm:$0xff] }
  0xb7   : > { %v2322_v2 = vadd.f32 %v2321_v40, %v2291_v53  ;;  %v1967_v43 = vmul.f32 %v3426_v35, %v1899_v57  ;;  %v852_v37 = vadd.f32 %v820_v56, %v656_v45  ;;  %v1148_v1 = vmul.f32 %v1571_v52, %v2794_v19  ;;  %v1900_v40 = vld [vmem:[#allocation2 + $0x152] sm:$0xff] }
  0xb8   : > { %v1670_v22 = vadd.f32 %v1638_v47, %v1505_v55  ;;  %v1671_v14 = vadd.f32 %v1639_v5, %v1506_v21  ;;  %v1015_v50 = vadd.f32 %v983_v11, %v851_v7  ;;  %v1311_v44 = vmul.f32 %v2901_v23, %v3239_v62 }
  0xb9   : > { %v1016_v20 = vadd.f32 %v984_v28, %v852_v37  ;;  %v1312_v8 = vmul.f32 %v2901_v23, %v3241_v63  ;;  %v1475_v27 = vmul.f32 %v1898_v51, %v2906_v29  ;;  %v1476_v46 = vmul.f32 %v1899_v57, %v2906_v29  ;;  %v1901_v28 = vld [vmem:[#allocation2 + $0x15a] sm:$0xff] }
  0xba   : > { %v1834_v38 = vadd.f32 %v1802_v15, %v1670_v22  ;;  %v1835_v24 = vadd.f32 %v1803_v10, %v1671_v14  ;;  %v1179_v39 = vadd.f32 %v1147_v6, %v1015_v50  ;;  %v1640_v26 = vmul.f32 %v2911_v30, %v3523_v34 }
  0xbb   : > { %v1180_v47 = vadd.f32 %v1148_v1, %v1016_v20  ;;  %v1641_v54 = vmul.f32 %v2911_v30, %v3525_v58  ;;  %v1804_v12 = vmul.f32 %v2922_v33, %v3292_v48  ;;  %v1805_v31 = vmul.f32 %v2922_v33, %v3294_v0 }
  0xbc   : > { %v1998_v5 = vadd.f32 %v1966_v32, %v1834_v38  ;;  %v1999_v53 = vadd.f32 %v1967_v43, %v1835_v24  ;;  %v1343_v36 = vadd.f32 %v1311_v44, %v1179_v39  ;;  %v657_v9 = vmul.f32 %v1570_v3, %v2785_v16 }
  0xbd   : > { %v1344_v15 = vadd.f32 %v1312_v8, %v1180_v47  ;;  %v658_v10 = vmul.f32 %v1571_v52, %v2785_v16  ;;  %v821_v59 = vmul.f32 %v2788_v17, %v3239_v62  ;;  %v822_v61 = vmul.f32 %v2788_v17, %v3241_v63 }
  0xbe   : > { %v2629_v4 = vpack.c.bf16 %v1999_v53, %v1998_v5  ;;  %v2253_v45 = vadd.f32 %v2252_v60, %v1998_v5  ;;  %v2292_v49 = vmul.f32 %v1998_v5, %v1998_v5  ;;  %v1968_v32 = vmul.f32 %v3426_v35, %v1900_v40 }
  0xbf   : > { %v1507_v56 = vadd.f32 %v1475_v27, %v1343_v36  ;;  %v1508_v11 = vadd.f32 %v1476_v46, %v1344_v15  ;;  %v853_v55 = vadd.f32 %v821_v59, %v657_v9  ;;  %v854_v3 = vadd.f32 %v822_v61, %v658_v10  ;;  %v3556_v46 = vld [vmem:[#allocation2 + $0x168] sm:$0xff] }
  0xc0   : > { %2676 = vst [vmem:[%s2985_s10 + $0x58] sm:$0xff] %v2629_v4   ;;  %v2323_v21 = vadd.f32 %v2322_v2, %v2292_v49  ;;  %v1969_v52 = vmul.f32 %v3426_v35, %v1901_v28  ;;  %v985_v7 = vmul.f32 %v1898_v51, %v2791_v18  ;;  %v986_v62 = vmul.f32 %v1899_v57, %v2791_v18 }
  0xc1   : > { %v1672_v6 = vadd.f32 %v1640_v26, %v1507_v56  ;;  %v1673_v63 = vadd.f32 %v1641_v54, %v1508_v11  ;;  %v1149_v60 = vmul.f32 %v3523_v34, %v2794_v19  ;;  %v1150_v43 = vmul.f32 %v3525_v58, %v2794_v19  ;;  %v3558_v26 = vld [vmem:[#allocation2 + $0x170] sm:$0xff] }
  0xc2   : > { %v2293_v37 = vmul.f32 %v1999_v53, %v1999_v53  ;;  %v1017_v1 = vadd.f32 %v985_v7, %v853_v55  ;;  %v1018_v22 = vadd.f32 %v986_v62, %v854_v3  ;;  %v1313_v2 = vmul.f32 %v2901_v23, %v3292_v48 }
  0xc3   : > { %v2254_v14 = vadd.f32 %v2253_v45, %v1999_v53  ;;  %v1836_v50 = vadd.f32 %v1804_v12, %v1672_v6  ;;  %v1837_v44 = vadd.f32 %v1805_v31, %v1673_v63  ;;  %v1314_v51 = vmul.f32 %v2901_v23, %v3294_v0  ;;  %v1902_v53 = vld [vmem:[#allocation2 + $0x16a] sm:$0xff]  ;;  %v1903_v45 = vld [vmem:[#allocation2 + $0x172] sm:$0xff] }
  0xc4   : > { %v1181_v57 = vadd.f32 %v1149_v60, %v1017_v1  ;;  %v1182_v20 = vadd.f32 %v1150_v43, %v1018_v22  ;;  %v1477_v8 = vmul.f32 %v1900_v40, %v2906_v29  ;;  %v1478_v27 = vmul.f32 %v1901_v28, %v2906_v29  ;;  %v1576_v22 = vld [vmem:[#allocation2 + $0x180] sm:$0xff] }
  0xc5   : > { %v2324_v38 = vadd.f32 %v2323_v21, %v2293_v37  ;;  %v2000_v24 = vadd.f32 %v1968_v32, %v1836_v50  ;;  %v2001_v39 = vadd.f32 %v1969_v52, %v1837_v44  ;;  %v1642_v47 = vmul.f32 %v2911_v30, %v3556_v46 }
  0xc6   : > { %v1345_v54 = vadd.f32 %v1313_v2, %v1181_v57  ;;  %v1346_v12 = vadd.f32 %v1314_v51, %v1182_v20  ;;  %v1643_v31 = vmul.f32 %v2911_v30, %v3558_v26  ;;  %v1806_v5 = vmul.f32 %v2922_v33, %v3355_v13 }
  0xc7   : > { %v2634_v36 = vpack.c.bf16 %v2001_v39, %v2000_v24  ;;  %v2294_v9 = vmul.f32 %v2000_v24, %v2000_v24  ;;  %v1807_v15 = vmul.f32 %v2922_v33, %v3357_v42  ;;  %v1970_v10 = vmul.f32 %v3426_v35, %v1902_v53 }
  0xc8   : > { %v2255_v59 = vadd.f32 %v2254_v14, %v2000_v24  ;;  %v1509_v61 = vadd.f32 %v1477_v8, %v1345_v54  ;;  %v1510_v4 = vadd.f32 %v1478_v27, %v1346_v12  ;;  %v659_v49 = vmul.f32 %v3523_v34, %v2785_v16  ;;  %v1904_v8 = vld [vmem:[#allocation2 + $0x182] sm:$0xff] }
  0xc9   : > { %2677 = vst [vmem:[%s2985_s10 + $0x60] sm:$0xff] %v2634_v36   ;;  %v2325_v32 = vadd.f32 %v2324_v38, %v2294_v9  ;;  %v1971_v56 = vmul.f32 %v3426_v35, %v1903_v45  ;;  %v660_v11 = vmul.f32 %v3525_v58, %v2785_v16  ;;  %v823_v55 = vmul.f32 %v2788_v17, %v3292_v48 }
  0xca   : > { %v1674_v3 = vadd.f32 %v1642_v47, %v1509_v61  ;;  %v1675_v21 = vadd.f32 %v1643_v31, %v1510_v4  ;;  %v824_v52 = vmul.f32 %v2788_v17, %v3294_v0  ;;  %v987_v7 = vmul.f32 %v1900_v40, %v2791_v18  ;;  %v1577_v40 = vld [vmem:[#allocation2 + $0x188] sm:$0xff] }
  0xcb   : > { %v855_v62 = vadd.f32 %v823_v55, %v659_v49  ;;  %v988_v34 = vmul.f32 %v1901_v28, %v2791_v18  ;;  %v1151_v6 = vmul.f32 %v3556_v46, %v2794_v19  ;;  %v2295_v63 = vmul.f32 %v2001_v39, %v2001_v39  ;;  %v1905_v61 = vld [vmem:[#allocation2 + $0x18a] sm:$0xff] }
  0xcc   : > { %v1838_v60 = vadd.f32 %v1806_v5, %v1674_v3  ;;  %v1839_v43 = vadd.f32 %v1807_v15, %v1675_v21  ;;  %v856_v58 = vadd.f32 %v824_v52, %v660_v11  ;;  %v2256_v37 = vadd.f32 %v2255_v59, %v2001_v39 }
  0xcd   : > { %v1019_v1 = vadd.f32 %v987_v7, %v855_v62  ;;  %v1152_v48 = vmul.f32 %v3558_v26, %v2794_v19  ;;  %v1315_v0 = vmul.f32 %v2901_v23, %v3355_v13  ;;  %v2326_v2 = vadd.f32 %v2325_v32, %v2295_v63 }
  0xce   : > { %v2002_v14 = vadd.f32 %v1970_v10, %v1838_v60  ;;  %v2003_v28 = vadd.f32 %v1971_v56, %v1839_v43  ;;  %v1020_v50 = vadd.f32 %v988_v34, %v856_v58  ;;  %v1316_v51 = vmul.f32 %v2901_v23, %v3357_v42 }
  0xcf   : > { %v1183_v44 = vadd.f32 %v1151_v6, %v1019_v1  ;;  %v1479_v57 = vmul.f32 %v1902_v53, %v2906_v29  ;;  %v1480_v20 = vmul.f32 %v1903_v45, %v2906_v29  ;;  %v1644_v38 = vmul.f32 %v2911_v30, %v1576_v22 }
  0xd0   : > { %v2639_v27 = vpack.c.bf16 %v2003_v28, %v2002_v14  ;;  %v1645_v24 = vmul.f32 %v2911_v30, %v1577_v40  ;;  %v1808_v39 = vmul.f32 %v2922_v33, %v3459_v41  ;;  %v2257_v47 = vadd.f32 %v2256_v37, %v2002_v14 }
  0xd1   : > { %v2296_v54 = vmul.f32 %v2002_v14, %v2002_v14  ;;  %v1184_v12 = vadd.f32 %v1152_v48, %v1020_v50  ;;  %v1347_v31 = vadd.f32 %v1315_v0, %v1183_v44  ;;  %v2297_v5 = vmul.f32 %v2003_v28, %v2003_v28  ;;  %v1906_v44 = vld [vmem:[#allocation2 + $0x19a] sm:$0xff] }
  0xd2   : > { %2678 = vst [vmem:[%s2985_s10 + $0x68] sm:$0xff] %v2639_v27   ;;  %v1809_v36 = vmul.f32 %v2922_v33, %v3461_v25  ;;  %v1972_v9 = vmul.f32 %v3426_v35, %v1904_v8  ;;  %v661_v15 = vmul.f32 %v3556_v46, %v2785_v16  ;;  %v662_v4 = vmul.f32 %v3558_v26, %v2785_v16 }
  0xd3   : > { %v1348_v10 = vadd.f32 %v1316_v51, %v1184_v12  ;;  %v1511_v59 = vadd.f32 %v1479_v57, %v1347_v31  ;;  %v825_v49 = vmul.f32 %v2788_v17, %v3355_v13  ;;  %v2327_v32 = vadd.f32 %v2326_v2, %v2296_v54  ;;  %v2693_v2 = vld [vmem:[#allocation2] sm:$0xff] }
  0xd4   : > { %v826_v56 = vmul.f32 %v2788_v17, %v3357_v42  ;;  %v989_v11 = vmul.f32 %v1902_v53, %v2791_v18  ;;  %v990_v55 = vmul.f32 %v1903_v45, %v2791_v18  ;;  %v1153_v52 = vmul.f32 %v1576_v22, %v2794_v19  ;;  %v1742_v22 = vld [vmem:[#allocation2 + $0x199] sm:$0xff]  ;;  %v1907_v51 = vld [vmem:[#allocation2 + $0x1a2] sm:$0xff] }
  0xd5   : > { %v1512_v3 = vadd.f32 %v1480_v20, %v1348_v10  ;;  %v1676_v21 = vadd.f32 %v1644_v38, %v1511_v59  ;;  %v857_v46 = vadd.f32 %v825_v49, %v661_v15  ;;  %v2258_v7 = vadd.f32 %v2257_v47, %v2003_v28 }
  0xd6   : > { %v1973_v62 = vmul.f32 %v3426_v35, %v1905_v61  ;;  %v858_v16 = vadd.f32 %v826_v56, %v662_v4  ;;  %v1154_v26 = vmul.f32 %v1577_v40, %v2794_v19  ;;  %v1317_v17 = vmul.f32 %v2901_v23, %v3459_v41  ;;  %v1743_v41 = vld [vmem:[#allocation2 + $0x1a1] sm:$0xff] }
  0xd7   : > { %v1677_v13 = vadd.f32 %v1645_v24, %v1512_v3  ;;  %v1840_v34 = vadd.f32 %v1808_v39, %v1676_v21  ;;  %v1021_v6 = vadd.f32 %v989_v11, %v857_v46  ;;  %v1318_v18 = vmul.f32 %v2901_v23, %v3461_v25 }
  0xd8   : > { %v1022_v42 = vadd.f32 %v990_v55, %v858_v16  ;;  %v2328_v53 = vadd.f32 %v2327_v32, %v2297_v5  ;;  %v1481_v58 = vmul.f32 %v1904_v8, %v2906_v29  ;;  %v1482_v37 = vmul.f32 %v1905_v61, %v2906_v29 }
  0xd9   : > { %v1841_v45 = vadd.f32 %v1809_v36, %v1677_v13  ;;  %v2004_v63 = vadd.f32 %v1972_v9, %v1840_v34  ;;  %v1185_v60 = vadd.f32 %v1153_v52, %v1021_v6  ;;  %v1646_v23 = vmul.f32 %v2693_v2, %v2911_v30 }
  0xda   : > { %v1186_v43 = vadd.f32 %v1154_v26, %v1022_v42  ;;  %v1810_v29 = vmul.f32 %v2922_v33, %v1742_v22  ;;  %v1811_v8 = vmul.f32 %v2922_v33, %v1743_v41  ;;  %v1974_v39 = vmul.f32 %v3426_v35, %v1906_v44 }
  0xdb   : > { %v2005_v19 = vadd.f32 %v1973_v62, %v1841_v45  ;;  %v2259_v1 = vadd.f32 %v2258_v7, %v2004_v63  ;;  %v2298_v48 = vmul.f32 %v2004_v63, %v2004_v63  ;;  %v1349_v0 = vadd.f32 %v1317_v17, %v1185_v60 }
  0xdc   : > { %v1350_v40 = vadd.f32 %v1318_v18, %v1186_v43  ;;  %v1975_v30 = vmul.f32 %v3426_v35, %v1907_v51 }
  0xdd   : > { %v2644_v25 = vpack.c.bf16 %v2005_v19, %v2004_v63  ;;  %v2260_v14 = vadd.f32 %v2259_v1, %v2005_v19  ;;  %v2299_v28 = vmul.f32 %v2005_v19, %v2005_v19  ;;  %v2329_v50 = vadd.f32 %v2328_v53, %v2298_v48 }
  0xde   : > { %v1513_v57 = vadd.f32 %v1481_v58, %v1349_v0  ;;  %v1514_v20 = vadd.f32 %v1482_v37, %v1350_v40 }
  0xdf   : > { %2679 = vst [vmem:[%s2985_s10 + $0x70] sm:$0xff] %v2644_v25   ;;  %v2330_v27 = vadd.f32 %v2329_v50, %v2299_v28 }
  0xe0   : > { %v1678_v38 = vadd.f32 %v1646_v23, %v1513_v57  ;;  %v1679_v24 = vadd.f32 %v1646_v23, %v1514_v20 }
  0xe2   : > { %v1842_v47 = vadd.f32 %v1810_v29, %v1678_v38  ;;  %v1843_v54 = vadd.f32 %v1811_v8, %v1679_v24 }
  0xe4   : > { %v2006_v12 = vadd.f32 %v1974_v39, %v1842_v47  ;;  %v2007_v31 = vadd.f32 %v1975_v30, %v1843_v54 }
  0xe6   : > { %v2649_v5 = vpack.c.bf16 %v2007_v31, %v2006_v12  ;;  %v2300_v36 = vmul.f32 %v2006_v12, %v2006_v12  ;;  %v2261_v9 = vadd.f32 %v2260_v14, %v2006_v12  ;;  %v2301_v10 = vmul.f32 %v2007_v31, %v2007_v31 }
  0xe8   : > { %2680 = vst [vmem:[%s2985_s10 + $0x78] sm:$0xff] %v2649_v5   ;;  %v2262_v15 = vadd.f32 %v2261_v9, %v2007_v31  ;;  %v2331_v33 = vadd.f32 %v2330_v27, %v2300_v36 }
  0xea   : > { %v2263_v59 = vrot.slane %v2262_v15, 4  ;;  %v2332_v61 = vadd.f32 %v2331_v33, %v2301_v10 }
  0xec   : > { %v2264_v4 = vadd.f32 %v2263_v59, %v2262_v15  ;;  %v2333_v49 = vrot.slane %v2332_v61, 4 }
  0xee   : > { %v2265_v32 = vrot.slane %v2264_v4, 2  ;;  %v2334_v56 = vadd.f32 %v2333_v49, %v2332_v61 }
  0xf0   : > { %v2266_v35 = vadd.f32 %v2265_v32, %v2264_v4  ;;  %v2335_v11 = vrot.slane %v2334_v56, 2 }
  0xf2   : > { %v2267_v55 = vrot.slane %v2266_v35, 1  ;;  %v2336_v3 = vadd.f32 %v2335_v11, %v2334_v56 }
  0xf4   : > { %v2268_v21 = vadd.f32 %v2267_v55, %v2266_v35  ;;  %v2337_v46 = vrot.slane %v2336_v3, 1 }
  0xf6   : > { %2269 = vst [vmem:[%s235_s22] sm:$0x1] %v2268_v21  ;;  %v2338_v52 = vadd.f32 %v2337_v46, %v2336_v3 }
  0xf8   : > { %2339 = vst [vmem:[%s235_s22 + $0x1] sm:$0x1] %v2338_v52 }
  0xf9 PF: > { %s16_s18 = sadd.s32 1, %s2700_s18  }
  0xfa   : > { %p13_p4 = scmp.ge.s32.totalorder %s16_s18, 4  }
  0xfc   :  { %15 = sbr.rel (!%p13_p4) target bundleno = 1 (0x1), region = 80 }

</bundles_post_ra>
